<compile_context>
chip_gen: v7x
topology: tpu7x:2x2x1
jax: 0.10.0
libtpu: 0.0.40
codegen_flags: <defaults>
</compile_context>

<pallas_src>
import jax
import jax.numpy as jnp
from jax.experimental import pallas as pl
from jax.experimental.pallas import tpu as pltpu

LANE = 128


def _round_up(x, m):
    return (x + m - 1) // m * m


def _double_conv_kernel(x_ref, w1_ref, b1_ref, w2_ref, b2_ref, o_ref,
                        xpad_ref, mid_ref):
    # x_ref:    (1, H, W, Cin)        bf16  one batch element (NHWC)
    # w1_ref:   (3, 3, Cin,  Cm_p)    bf16  BN1 scale folded in, Cout padded
    # b1_ref:   (1, Cm_p)             f32   folded BN1 shift (+conv bias)
    # w2_ref:   (3, 3, Cm_p, Co_p)    bf16  BN2 scale folded in
    # b2_ref:   (1, Co_p)             f32
    # o_ref:    (1, H, W, Co_p)       f32
    # xpad_ref: (H+2, W+2, Cin)       bf16  VMEM scratch (zero halo)
    # mid_ref:  (H+2, W+2, Cm_p)      bf16  VMEM scratch (zero halo)
    _, H, W, _ = o_ref.shape
    Cm_p = w1_ref.shape[3]

    def conv3x3(src_ref, w_ref):
        c_out = w_ref.shape[3]
        acc = jnp.zeros((H * W, c_out), jnp.float32)
        # Hoist the sublane-axis (W) slice out of the ky loop: 3 relayouts
        # instead of 9. (pltpu.roll along W would push this to the XLU, but
        # the hoisted static slice is simpler and already off the hot path.)
        for kx in range(3):
            xs = src_ref[:, kx:kx + W, :]                 # (H+2, W, C)
            for ky in range(3):
                patch = xs[ky:ky + H].reshape(H * W, -1)  # cheap leading-axis slice
                acc = acc + jnp.dot(patch, w_ref[ky, kx],
                                    preferred_element_type=jnp.float32)
        return acc

    # Stage the input with a zero 1-pixel halo in VMEM (replaces HBM jnp.pad).
    xpad_ref[...] = jnp.zeros_like(xpad_ref)
    xpad_ref[1:H + 1, 1:W + 1, :] = x_ref[0]

    # conv1 + folded BN1 + ReLU  -> mid activation stays in VMEM (zero halo).
    h1 = jnp.maximum(conv3x3(xpad_ref, w1_ref) + b1_ref[...], 0.0)
    mid_ref[...] = jnp.zeros_like(mid_ref)
    mid_ref[1:H + 1, 1:W + 1, :] = h1.reshape(H, W, Cm_p).astype(mid_ref.dtype)

    # conv2 + folded BN2 + ReLU  -> lane-dense output store.
    h2 = jnp.maximum(conv3x3(mid_ref, w2_ref) + b2_ref[...], 0.0)
    o_ref[...] = h2.reshape(1, H, W, -1).astype(o_ref.dtype)


def double_conv_nhwc(x, params):
    """x: (N, H, W, Cin) float -> (N, H, W, out_channels) float32."""
    N, H, W, Cin = x.shape
    w1, b1, w2, b2 = params["w1"], params["b1"], params["w2"], params["b2"]
    cm_p = w1.shape[-1]
    co_p = w2.shape[-1]
    cout = params["out_channels"]

    x = x.astype(jnp.bfloat16)  # bf16 activations for the MXU / half HBM traffic

    out = pl.pallas_call(
        _double_conv_kernel,
        out_shape=jax.ShapeDtypeStruct((N, H, W, co_p), jnp.float32),
        grid=(N,),
        in_specs=[
            pl.BlockSpec((1, H, W, Cin), lambda n: (n, 0, 0, 0)),
            pl.BlockSpec((3, 3, Cin, cm_p), lambda n: (0, 0, 0, 0)),
            pl.BlockSpec((1, cm_p), lambda n: (0, 0)),
            pl.BlockSpec((3, 3, cm_p, co_p), lambda n: (0, 0, 0, 0)),
            pl.BlockSpec((1, co_p), lambda n: (0, 0)),
        ],
        out_specs=pl.BlockSpec((1, H, W, co_p), lambda n: (n, 0, 0, 0)),
        scratch_shapes=[
            pltpu.VMEM((H + 2, W + 2, Cin), jnp.bfloat16),
            pltpu.VMEM((H + 2, W + 2, cm_p), jnp.bfloat16),
        ],
        compiler_params=pltpu.CompilerParams(
            dimension_semantics=("parallel",),          # batch is independent
            vmem_limit_bytes=64 * 1024 * 1024,          # above v5e's 16 MiB default
        ),
    )(x, w1, b1, w2, b2)
    return out[..., :cout]


def double_conv_forward(x_nchw, params):
    """Matches DoubleConv.forward: NCHW in/out (transposes only exist to match
    the PyTorch interface; use double_conv_nhwc end-to-end to avoid them)."""
    x = jnp.transpose(x_nchw, (0, 2, 3, 1))
    y = double_conv_nhwc(x, params)
    return jnp.transpose(y, (0, 3, 1, 2))


def _fold_bn_into_conv(w, b, gamma, beta, rmean, rvar, eps=1e-5):
    """Fold conv bias + eval-mode BN into the conv weights + an additive bias."""
    s = gamma / jnp.sqrt(rvar + eps)            # (Cout,)
    w_eff = w * s[None, None, None, :]
    b_eff = (b - rmean) * s + beta
    return w_eff, b_eff


def make_double_conv_params(key, in_channels, out_channels, mid_channels=None):
    if not mid_channels:
        mid_channels = out_channels
    ks = jax.random.split(key, 12)

    def conv_params(kw, kb, cin, cout):
        w = jax.random.normal(kw, (3, 3, cin, cout), jnp.float32) * 0.1
        b = jax.random.normal(kb, (cout,), jnp.float32) * 0.1
        return w, b

    def bn_params(kg, kb2, km, kv, c):
        gamma = 1.0 + 0.1 * jax.random.normal(kg, (c,), jnp.float32)
        beta = 0.1 * jax.random.normal(kb2, (c,), jnp.float32)
        rmean = 0.1 * jax.random.normal(km, (c,), jnp.float32)
        rvar = 0.5 + jnp.abs(jax.random.normal(kv, (c,), jnp.float32))
        return gamma, beta, rmean, rvar

    w1, b1 = conv_params(ks[0], ks[1], in_channels, mid_channels)
    bn1 = bn_params(ks[2], ks[3], ks[4], ks[5], mid_channels)
    w2, b2 = conv_params(ks[6], ks[7], mid_channels, out_channels)
    bn2 = bn_params(ks[8], ks[9], ks[10], ks[11], out_channels)

    w1f, b1f = _fold_bn_into_conv(w1, b1, *bn1)   # f32, unpadded (for reference)
    w2f, b2f = _fold_bn_into_conv(w2, b2, *bn2)

    cm_p = _round_up(mid_channels, LANE)
    co_p = _round_up(out_channels, LANE)

    # Kernel-ready params: zero-padded to lane multiples, weights in bf16.
    w1k = jnp.zeros((3, 3, in_channels, cm_p), jnp.bfloat16)
    w1k = w1k.at[..., :mid_channels].set(w1f.astype(jnp.bfloat16))
    b1k = jnp.zeros((1, cm_p), jnp.float32).at[:, :mid_channels].set(b1f)
    w2k = jnp.zeros((3, 3, cm_p, co_p), jnp.bfloat16)
    w2k = w2k.at[:, :, :mid_channels, :out_channels].set(w2f.astype(jnp.bfloat16))
    b2k = jnp.zeros((1, co_p), jnp.float32).at[:, :out_channels].set(b2f)

    return dict(
        w1=w1k, b1=b1k, w2=w2k, b2=b2k,
        out_channels=out_channels,
        ref=dict(w1=w1f, b1=b1f, w2=w2f, b2=b2f),
    )


def _reference_forward(x_nchw, params):
    """Pure-JAX reference mirroring the kernel numerics (bf16 MXU inputs,
    f32 accumulation, folded BN)."""
    r = params["ref"]

    def step(x, w, b):
        y = jax.lax.conv_general_dilated(
            x.astype(jnp.bfloat16), w.astype(jnp.bfloat16),
            window_strides=(1, 1), padding="SAME",
            dimension_numbers=("NHWC", "HWIO", "NHWC"),
            preferred_element_type=jnp.float32)
        return jnp.maximum(y + b.reshape(1, 1, 1, -1), 0.0)

    x = jnp.transpose(x_nchw, (0, 2, 3, 1))
    x = step(x, r["w1"], r["b1"])
    x = step(x, r["w2"], r["b2"])
    return jnp.transpose(x, (0, 3, 1, 2))


if __name__ == "__main__":
    key = jax.random.PRNGKey(0)
    k_x, k_p = jax.random.split(key)

    N, Cin, H, W = 2, 4, 16, 16
    Cout = 8
    x = jax.random.normal(k_x, (N, Cin, H, W), jnp.float32)
    params = make_double_conv_params(k_p, Cin, Cout)

    out = jax.block_until_ready(double_conv_forward(x, params))
    ref = _reference_forward(x, params)

    assert out.shape == (N, Cout, H, W)
    err = float(jnp.max(jnp.abs(out - ref)))
    assert err < 1e-2, f"max abs err {err}"

    print("KERNEL_OK")
</pallas_src>

<mosaic_0001>
module attributes {stable_mosaic.version = 11 : i64} {
  func.func @_double_conv_kernel(%arg0: i32, %arg1: memref<1x16x16x4xbf16, #tpu.memory_space<vmem>>, %arg2: memref<3x3x4x128xbf16, #tpu.memory_space<vmem>>, %arg3: memref<1x128xf32, #tpu.memory_space<vmem>>, %arg4: memref<3x3x128x128xbf16, #tpu.memory_space<vmem>>, %arg5: memref<1x128xf32, #tpu.memory_space<vmem>>, %arg6: memref<1x16x16x128xf32, #tpu.memory_space<vmem>>, %arg7: memref<18x18x4xbf16, #tpu.memory_space<vmem>>, %arg8: memref<18x18x128xbf16, #tpu.memory_space<vmem>>) attributes {dimension_semantics = [#tpu.dimension_semantics<parallel>], iteration_bounds = array<i64: 2>, scalar_prefetch = 0 : i64, scratch_operands = 2 : i64, tpu.core_type = #tpu.core_type<tc>, window_params = [{transform_indices = @transform_0, window_bounds = array<i64: 1, 16, 16, 4>}, {pipeline_mode = #tpu.pipeline_mode<synchronous>, transform_indices = @transform_1, window_bounds = array<i64: 3, 3, 4, 128>}, {pipeline_mode = #tpu.pipeline_mode<synchronous>, transform_indices = @transform_2, window_bounds = array<i64: 1, 128>}, {pipeline_mode = #tpu.pipeline_mode<synchronous>, transform_indices = @transform_3, window_bounds = array<i64: 3, 3, 128, 128>}, {pipeline_mode = #tpu.pipeline_mode<synchronous>, transform_indices = @transform_4, window_bounds = array<i64: 1, 128>}, {transform_indices = @transform_5, window_bounds = array<i64: 1, 16, 16, 128>}]} {
    %cst = arith.constant 0.000000e+00 : bf16
    %0 = vector.broadcast %cst : bf16 to vector<18x18x4xbf16>
    %c0 = arith.constant 0 : index
    %c0_0 = arith.constant 0 : index
    %c0_1 = arith.constant 0 : index
    %1 = vector.load %arg7[%c0, %c0_0, %c0_1] : memref<18x18x4xbf16, #tpu.memory_space<vmem>>, vector<18x18x4xbf16>
    tpu.vector_store %arg7[%c0, %c0_0, %c0_1], %0 {strides = array<i32>} : memref<18x18x4xbf16, #tpu.memory_space<vmem>>, vector<18x18x4xbf16>,
    %c0_2 = arith.constant 0 : index
    %c0_3 = arith.constant 0 : index
    %c0_4 = arith.constant 0 : index
    %c0_5 = arith.constant 0 : index
    %2 = vector.load %arg1[%c0_2, %c0_3, %c0_4, %c0_5] : memref<1x16x16x4xbf16, #tpu.memory_space<vmem>>, vector<1x16x16x4xbf16>
    %3 = vector.shape_cast %2 : vector<1x16x16x4xbf16> to vector<16x16x4xbf16>
    %c1 = arith.constant 1 : index
    %c1_6 = arith.constant 1 : index
    %c0_7 = arith.constant 0 : index
    %4 = vector.load %arg7[%c1, %c1_6, %c0_7] : memref<18x18x4xbf16, #tpu.memory_space<vmem>>, vector<16x16x4xbf16>
    tpu.vector_store %arg7[%c1, %c1_6, %c0_7], %3 {strides = array<i32>} : memref<18x18x4xbf16, #tpu.memory_space<vmem>>, vector<16x16x4xbf16>,
    %cst_8 = arith.constant 0.000000e+00 : f32
    %5 = vector.broadcast %cst_8 : f32 to vector<256x128xf32>
    %c0_9 = arith.constant 0 : index
    %c0_10 = arith.constant 0 : index
    %c0_11 = arith.constant 0 : index
    %6 = vector.load %arg7[%c0_9, %c0_10, %c0_11] : memref<18x18x4xbf16, #tpu.memory_space<vmem>>, vector<18x16x4xbf16>
    %7 = vector.extract_strided_slice %6 {offsets = [0, 0, 0], sizes = [16, 16, 4], strides = [1, 1, 1]} : vector<18x16x4xbf16> to vector<16x16x4xbf16>
    %8 = vector.shape_cast %7 : vector<16x16x4xbf16> to vector<256x4xbf16>
    %c0_12 = arith.constant 0 : index
    %c0_13 = arith.constant 0 : index
    %c0_14 = arith.constant 0 : index
    %c0_15 = arith.constant 0 : index
    %9 = vector.load %arg2[%c0_12, %c0_13, %c0_14, %c0_15] : memref<3x3x4x128xbf16, #tpu.memory_space<vmem>>, vector<1x1x4x128xbf16>
    %10 = vector.shape_cast %9 : vector<1x1x4x128xbf16> to vector<4x128xbf16>
    %cst_16 = arith.constant dense<0.000000e+00> : vector<256x128xf32>
    %11 = tpu.matmul %8, %10, %cst_16 {dimension_numbers = #tpu.dot_dimension_numbers<[1], [0], [0], [1], [0, 0, 1, 1], [], []>} : vector<256x4xbf16>, vector<4x128xbf16>, vector<256x128xf32> -> vector<256x128xf32>
    %12 = arith.addf %5, %11 : vector<256x128xf32>
    %13 = vector.extract_strided_slice %6 {offsets = [1, 0, 0], sizes = [16, 16, 4], strides = [1, 1, 1]} : vector<18x16x4xbf16> to vector<16x16x4xbf16>
    %14 = vector.shape_cast %13 : vector<16x16x4xbf16> to vector<256x4xbf16>
    %c1_17 = arith.constant 1 : index
    %c0_18 = arith.constant 0 : index
    %c0_19 = arith.constant 0 : index
    %c0_20 = arith.constant 0 : index
    %15 = vector.load %arg2[%c1_17, %c0_18, %c0_19, %c0_20] : memref<3x3x4x128xbf16, #tpu.memory_space<vmem>>, vector<1x1x4x128xbf16>
    %16 = vector.shape_cast %15 : vector<1x1x4x128xbf16> to vector<4x128xbf16>
    %cst_21 = arith.constant dense<0.000000e+00> : vector<256x128xf32>
    %17 = tpu.matmul %14, %16, %cst_21 {dimension_numbers = #tpu.dot_dimension_numbers<[1], [0], [0], [1], [0, 0, 1, 1], [], []>} : vector<256x4xbf16>, vector<4x128xbf16>, vector<256x128xf32> -> vector<256x128xf32>
    %18 = arith.addf %12, %17 : vector<256x128xf32>
    %19 = vector.extract_strided_slice %6 {offsets = [2, 0, 0], sizes = [16, 16, 4], strides = [1, 1, 1]} : vector<18x16x4xbf16> to vector<16x16x4xbf16>
    %20 = vector.shape_cast %19 : vector<16x16x4xbf16> to vector<256x4xbf16>
    %c2 = arith.constant 2 : index
    %c0_22 = arith.constant 0 : index
    %c0_23 = arith.constant 0 : index
    %c0_24 = arith.constant 0 : index
    %21 = vector.load %arg2[%c2, %c0_22, %c0_23, %c0_24] : memref<3x3x4x128xbf16, #tpu.memory_space<vmem>>, vector<1x1x4x128xbf16>
    %22 = vector.shape_cast %21 : vector<1x1x4x128xbf16> to vector<4x128xbf16>
    %cst_25 = arith.constant dense<0.000000e+00> : vector<256x128xf32>
    %23 = tpu.matmul %20, %22, %cst_25 {dimension_numbers = #tpu.dot_dimension_numbers<[1], [0], [0], [1], [0, 0, 1, 1], [], []>} : vector<256x4xbf16>, vector<4x128xbf16>, vector<256x128xf32> -> vector<256x128xf32>
    %24 = arith.addf %18, %23 : vector<256x128xf32>
    %c0_26 = arith.constant 0 : index
    %c1_27 = arith.constant 1 : index
    %c0_28 = arith.constant 0 : index
    %25 = vector.load %arg7[%c0_26, %c1_27, %c0_28] : memref<18x18x4xbf16, #tpu.memory_space<vmem>>, vector<18x16x4xbf16>
    %26 = vector.extract_strided_slice %25 {offsets = [0, 0, 0], sizes = [16, 16, 4], strides = [1, 1, 1]} : vector<18x16x4xbf16> to vector<16x16x4xbf16>
    %27 = vector.shape_cast %26 : vector<16x16x4xbf16> to vector<256x4xbf16>
    %c0_29 = arith.constant 0 : index
    %c1_30 = arith.constant 1 : index
    %c0_31 = arith.constant 0 : index
    %c0_32 = arith.constant 0 : index
    %28 = vector.load %arg2[%c0_29, %c1_30, %c0_31, %c0_32] : memref<3x3x4x128xbf16, #tpu.memory_space<vmem>>, vector<1x1x4x128xbf16>
    %29 = vector.shape_cast %28 : vector<1x1x4x128xbf16> to vector<4x128xbf16>
    %cst_33 = arith.constant dense<0.000000e+00> : vector<256x128xf32>
    %30 = tpu.matmul %27, %29, %cst_33 {dimension_numbers = #tpu.dot_dimension_numbers<[1], [0], [0], [1], [0, 0, 1, 1], [], []>} : vector<256x4xbf16>, vector<4x128xbf16>, vector<256x128xf32> -> vector<256x128xf32>
    %31 = arith.addf %24, %30 : vector<256x128xf32>
    %32 = vector.extract_strided_slice %25 {offsets = [1, 0, 0], sizes = [16, 16, 4], strides = [1, 1, 1]} : vector<18x16x4xbf16> to vector<16x16x4xbf16>
    %33 = vector.shape_cast %32 : vector<16x16x4xbf16> to vector<256x4xbf16>
    %c1_34 = arith.constant 1 : index
    %c1_35 = arith.constant 1 : index
    %c0_36 = arith.constant 0 : index
    %c0_37 = arith.constant 0 : index
    %34 = vector.load %arg2[%c1_34, %c1_35, %c0_36, %c0_37] : memref<3x3x4x128xbf16, #tpu.memory_space<vmem>>, vector<1x1x4x128xbf16>
    %35 = vector.shape_cast %34 : vector<1x1x4x128xbf16> to vector<4x128xbf16>
    %cst_38 = arith.constant dense<0.000000e+00> : vector<256x128xf32>
    %36 = tpu.matmul %33, %35, %cst_38 {dimension_numbers = #tpu.dot_dimension_numbers<[1], [0], [0], [1], [0, 0, 1, 1], [], []>} : vector<256x4xbf16>, vector<4x128xbf16>, vector<256x128xf32> -> vector<256x128xf32>
    %37 = arith.addf %31, %36 : vector<256x128xf32>
    %38 = vector.extract_strided_slice %25 {offsets = [2, 0, 0], sizes = [16, 16, 4], strides = [1, 1, 1]} : vector<18x16x4xbf16> to vector<16x16x4xbf16>
    %39 = vector.shape_cast %38 : vector<16x16x4xbf16> to vector<256x4xbf16>
    %c2_39 = arith.constant 2 : index
    %c1_40 = arith.constant 1 : index
    %c0_41 = arith.constant 0 : index
    %c0_42 = arith.constant 0 : index
    %40 = vector.load %arg2[%c2_39, %c1_40, %c0_41, %c0_42] : memref<3x3x4x128xbf16, #tpu.memory_space<vmem>>, vector<1x1x4x128xbf16>
    %41 = vector.shape_cast %40 : vector<1x1x4x128xbf16> to vector<4x128xbf16>
    %cst_43 = arith.constant dense<0.000000e+00> : vector<256x128xf32>
    %42 = tpu.matmul %39, %41, %cst_43 {dimension_numbers = #tpu.dot_dimension_numbers<[1], [0], [0], [1], [0, 0, 1, 1], [], []>} : vector<256x4xbf16>, vector<4x128xbf16>, vector<256x128xf32> -> vector<256x128xf32>
    %43 = arith.addf %37, %42 : vector<256x128xf32>
    %c0_44 = arith.constant 0 : index
    %c2_45 = arith.constant 2 : index
    %c0_46 = arith.constant 0 : index
    %44 = vector.load %arg7[%c0_44, %c2_45, %c0_46] : memref<18x18x4xbf16, #tpu.memory_space<vmem>>, vector<18x16x4xbf16>
    %45 = vector.extract_strided_slice %44 {offsets = [0, 0, 0], sizes = [16, 16, 4], strides = [1, 1, 1]} : vector<18x16x4xbf16> to vector<16x16x4xbf16>
    %46 = vector.shape_cast %45 : vector<16x16x4xbf16> to vector<256x4xbf16>
    %c0_47 = arith.constant 0 : index
    %c2_48 = arith.constant 2 : index
    %c0_49 = arith.constant 0 : index
    %c0_50 = arith.constant 0 : index
    %47 = vector.load %arg2[%c0_47, %c2_48, %c0_49, %c0_50] : memref<3x3x4x128xbf16, #tpu.memory_space<vmem>>, vector<1x1x4x128xbf16>
    %48 = vector.shape_cast %47 : vector<1x1x4x128xbf16> to vector<4x128xbf16>
    %cst_51 = arith.constant dense<0.000000e+00> : vector<256x128xf32>
    %49 = tpu.matmul %46, %48, %cst_51 {dimension_numbers = #tpu.dot_dimension_numbers<[1], [0], [0], [1], [0, 0, 1, 1], [], []>} : vector<256x4xbf16>, vector<4x128xbf16>, vector<256x128xf32> -> vector<256x128xf32>
    %50 = arith.addf %43, %49 : vector<256x128xf32>
    %51 = vector.extract_strided_slice %44 {offsets = [1, 0, 0], sizes = [16, 16, 4], strides = [1, 1, 1]} : vector<18x16x4xbf16> to vector<16x16x4xbf16>
    %52 = vector.shape_cast %51 : vector<16x16x4xbf16> to vector<256x4xbf16>
    %c1_52 = arith.constant 1 : index
    %c2_53 = arith.constant 2 : index
    %c0_54 = arith.constant 0 : index
    %c0_55 = arith.constant 0 : index
    %53 = vector.load %arg2[%c1_52, %c2_53, %c0_54, %c0_55] : memref<3x3x4x128xbf16, #tpu.memory_space<vmem>>, vector<1x1x4x128xbf16>
    %54 = vector.shape_cast %53 : vector<1x1x4x128xbf16> to vector<4x128xbf16>
    %cst_56 = arith.constant dense<0.000000e+00> : vector<256x128xf32>
    %55 = tpu.matmul %52, %54, %cst_56 {dimension_numbers = #tpu.dot_dimension_numbers<[1], [0], [0], [1], [0, 0, 1, 1], [], []>} : vector<256x4xbf16>, vector<4x128xbf16>, vector<256x128xf32> -> vector<256x128xf32>
    %56 = arith.addf %50, %55 : vector<256x128xf32>
    %57 = vector.extract_strided_slice %44 {offsets = [2, 0, 0], sizes = [16, 16, 4], strides = [1, 1, 1]} : vector<18x16x4xbf16> to vector<16x16x4xbf16>
    %58 = vector.shape_cast %57 : vector<16x16x4xbf16> to vector<256x4xbf16>
    %c2_57 = arith.constant 2 : index
    %c2_58 = arith.constant 2 : index
    %c0_59 = arith.constant 0 : index
    %c0_60 = arith.constant 0 : index
    %59 = vector.load %arg2[%c2_57, %c2_58, %c0_59, %c0_60] : memref<3x3x4x128xbf16, #tpu.memory_space<vmem>>, vector<1x1x4x128xbf16>
    %60 = vector.shape_cast %59 : vector<1x1x4x128xbf16> to vector<4x128xbf16>
    %cst_61 = arith.constant dense<0.000000e+00> : vector<256x128xf32>
    %61 = tpu.matmul %58, %60, %cst_61 {dimension_numbers = #tpu.dot_dimension_numbers<[1], [0], [0], [1], [0, 0, 1, 1], [], []>} : vector<256x4xbf16>, vector<4x128xbf16>, vector<256x128xf32> -> vector<256x128xf32>
    %62 = arith.addf %56, %61 : vector<256x128xf32>
    %c0_62 = arith.constant 0 : index
    %c0_63 = arith.constant 0 : index
    %63 = vector.load %arg3[%c0_62, %c0_63] : memref<1x128xf32, #tpu.memory_space<vmem>>, vector<1x128xf32>
    %64 = vector.broadcast %63 : vector<1x128xf32> to vector<256x128xf32>
    %65 = arith.addf %62, %64 : vector<256x128xf32>
    %cst_64 = arith.constant 0.000000e+00 : f32
    %66 = vector.broadcast %cst_64 : f32 to vector<256x128xf32>
    %67 = arith.maximumf %65, %66 : vector<256x128xf32>
    %cst_65 = arith.constant 0.000000e+00 : bf16
    %68 = vector.broadcast %cst_65 : bf16 to vector<18x18x128xbf16>
    %c0_66 = arith.constant 0 : index
    %c0_67 = arith.constant 0 : index
    %c0_68 = arith.constant 0 : index
    %69 = vector.load %arg8[%c0_66, %c0_67, %c0_68] : memref<18x18x128xbf16, #tpu.memory_space<vmem>>, vector<18x18x128xbf16>
    tpu.vector_store %arg8[%c0_66, %c0_67, %c0_68], %68 {strides = array<i32>} : memref<18x18x128xbf16, #tpu.memory_space<vmem>>, vector<18x18x128xbf16>,
    %70 = vector.shape_cast %67 : vector<256x128xf32> to vector<16x16x128xf32>
    %71 = arith.truncf %70 : vector<16x16x128xf32> to vector<16x16x128xbf16>
    %c1_69 = arith.constant 1 : index
    %c1_70 = arith.constant 1 : index
    %c0_71 = arith.constant 0 : index
    %72 = vector.load %arg8[%c1_69, %c1_70, %c0_71] : memref<18x18x128xbf16, #tpu.memory_space<vmem>>, vector<16x16x128xbf16>
    tpu.vector_store %arg8[%c1_69, %c1_70, %c0_71], %71 {strides = array<i32>} : memref<18x18x128xbf16, #tpu.memory_space<vmem>>, vector<16x16x128xbf16>,
    %cst_72 = arith.constant 0.000000e+00 : f32
    %73 = vector.broadcast %cst_72 : f32 to vector<256x128xf32>
    %c0_73 = arith.constant 0 : index
    %c0_74 = arith.constant 0 : index
    %c0_75 = arith.constant 0 : index
    %74 = vector.load %arg8[%c0_73, %c0_74, %c0_75] : memref<18x18x128xbf16, #tpu.memory_space<vmem>>, vector<18x16x128xbf16>
    %75 = vector.extract_strided_slice %74 {offsets = [0, 0, 0], sizes = [16, 16, 128], strides = [1, 1, 1]} : vector<18x16x128xbf16> to vector<16x16x128xbf16>
    %76 = vector.shape_cast %75 : vector<16x16x128xbf16> to vector<256x128xbf16>
    %c0_76 = arith.constant 0 : index
    %c0_77 = arith.constant 0 : index
    %c0_78 = arith.constant 0 : index
    %c0_79 = arith.constant 0 : index
    %77 = vector.load %arg4[%c0_76, %c0_77, %c0_78, %c0_79] : memref<3x3x128x128xbf16, #tpu.memory_space<vmem>>, vector<1x1x128x128xbf16>
    %78 = vector.shape_cast %77 : vector<1x1x128x128xbf16> to vector<128x128xbf16>
    %cst_80 = arith.constant dense<0.000000e+00> : vector<256x128xf32>
    %79 = tpu.matmul %76, %78, %cst_80 {dimension_numbers = #tpu.dot_dimension_numbers<[1], [0], [0], [1], [0, 0, 1, 1], [], []>} : vector<256x128xbf16>, vector<128x128xbf16>, vector<256x128xf32> -> vector<256x128xf32>
    %80 = arith.addf %73, %79 : vector<256x128xf32>
    %81 = vector.extract_strided_slice %74 {offsets = [1, 0, 0], sizes = [16, 16, 128], strides = [1, 1, 1]} : vector<18x16x128xbf16> to vector<16x16x128xbf16>
    %82 = vector.shape_cast %81 : vector<16x16x128xbf16> to vector<256x128xbf16>
    %c1_81 = arith.constant 1 : index
    %c0_82 = arith.constant 0 : index
    %c0_83 = arith.constant 0 : index
    %c0_84 = arith.constant 0 : index
    %83 = vector.load %arg4[%c1_81, %c0_82, %c0_83, %c0_84] : memref<3x3x128x128xbf16, #tpu.memory_space<vmem>>, vector<1x1x128x128xbf16>
    %84 = vector.shape_cast %83 : vector<1x1x128x128xbf16> to vector<128x128xbf16>
    %cst_85 = arith.constant dense<0.000000e+00> : vector<256x128xf32>
    %85 = tpu.matmul %82, %84, %cst_85 {dimension_numbers = #tpu.dot_dimension_numbers<[1], [0], [0], [1], [0, 0, 1, 1], [], []>} : vector<256x128xbf16>, vector<128x128xbf16>, vector<256x128xf32> -> vector<256x128xf32>
    %86 = arith.addf %80, %85 : vector<256x128xf32>
    %87 = vector.extract_strided_slice %74 {offsets = [2, 0, 0], sizes = [16, 16, 128], strides = [1, 1, 1]} : vector<18x16x128xbf16> to vector<16x16x128xbf16>
    %88 = vector.shape_cast %87 : vector<16x16x128xbf16> to vector<256x128xbf16>
    %c2_86 = arith.constant 2 : index
    %c0_87 = arith.constant 0 : index
    %c0_88 = arith.constant 0 : index
    %c0_89 = arith.constant 0 : index
    %89 = vector.load %arg4[%c2_86, %c0_87, %c0_88, %c0_89] : memref<3x3x128x128xbf16, #tpu.memory_space<vmem>>, vector<1x1x128x128xbf16>
    %90 = vector.shape_cast %89 : vector<1x1x128x128xbf16> to vector<128x128xbf16>
    %cst_90 = arith.constant dense<0.000000e+00> : vector<256x128xf32>
    %91 = tpu.matmul %88, %90, %cst_90 {dimension_numbers = #tpu.dot_dimension_numbers<[1], [0], [0], [1], [0, 0, 1, 1], [], []>} : vector<256x128xbf16>, vector<128x128xbf16>, vector<256x128xf32> -> vector<256x128xf32>
    %92 = arith.addf %86, %91 : vector<256x128xf32>
    %c0_91 = arith.constant 0 : index
    %c1_92 = arith.constant 1 : index
    %c0_93 = arith.constant 0 : index
    %93 = vector.load %arg8[%c0_91, %c1_92, %c0_93] : memref<18x18x128xbf16, #tpu.memory_space<vmem>>, vector<18x16x128xbf16>
    %94 = vector.extract_strided_slice %93 {offsets = [0, 0, 0], sizes = [16, 16, 128], strides = [1, 1, 1]} : vector<18x16x128xbf16> to vector<16x16x128xbf16>
    %95 = vector.shape_cast %94 : vector<16x16x128xbf16> to vector<256x128xbf16>
    %c0_94 = arith.constant 0 : index
    %c1_95 = arith.constant 1 : index
    %c0_96 = arith.constant 0 : index
    %c0_97 = arith.constant 0 : index
    %96 = vector.load %arg4[%c0_94, %c1_95, %c0_96, %c0_97] : memref<3x3x128x128xbf16, #tpu.memory_space<vmem>>, vector<1x1x128x128xbf16>
    %97 = vector.shape_cast %96 : vector<1x1x128x128xbf16> to vector<128x128xbf16>
    %cst_98 = arith.constant dense<0.000000e+00> : vector<256x128xf32>
    %98 = tpu.matmul %95, %97, %cst_98 {dimension_numbers = #tpu.dot_dimension_numbers<[1], [0], [0], [1], [0, 0, 1, 1], [], []>} : vector<256x128xbf16>, vector<128x128xbf16>, vector<256x128xf32> -> vector<256x128xf32>
    %99 = arith.addf %92, %98 : vector<256x128xf32>
    %100 = vector.extract_strided_slice %93 {offsets = [1, 0, 0], sizes = [16, 16, 128], strides = [1, 1, 1]} : vector<18x16x128xbf16> to vector<16x16x128xbf16>
    %101 = vector.shape_cast %100 : vector<16x16x128xbf16> to vector<256x128xbf16>
    %c1_99 = arith.constant 1 : index
    %c1_100 = arith.constant 1 : index
    %c0_101 = arith.constant 0 : index
    %c0_102 = arith.constant 0 : index
    %102 = vector.load %arg4[%c1_99, %c1_100, %c0_101, %c0_102] : memref<3x3x128x128xbf16, #tpu.memory_space<vmem>>, vector<1x1x128x128xbf16>
    %103 = vector.shape_cast %102 : vector<1x1x128x128xbf16> to vector<128x128xbf16>
    %cst_103 = arith.constant dense<0.000000e+00> : vector<256x128xf32>
    %104 = tpu.matmul %101, %103, %cst_103 {dimension_numbers = #tpu.dot_dimension_numbers<[1], [0], [0], [1], [0, 0, 1, 1], [], []>} : vector<256x128xbf16>, vector<128x128xbf16>, vector<256x128xf32> -> vector<256x128xf32>
    %105 = arith.addf %99, %104 : vector<256x128xf32>
    %106 = vector.extract_strided_slice %93 {offsets = [2, 0, 0], sizes = [16, 16, 128], strides = [1, 1, 1]} : vector<18x16x128xbf16> to vector<16x16x128xbf16>
    %107 = vector.shape_cast %106 : vector<16x16x128xbf16> to vector<256x128xbf16>
    %c2_104 = arith.constant 2 : index
    %c1_105 = arith.constant 1 : index
    %c0_106 = arith.constant 0 : index
    %c0_107 = arith.constant 0 : index
    %108 = vector.load %arg4[%c2_104, %c1_105, %c0_106, %c0_107] : memref<3x3x128x128xbf16, #tpu.memory_space<vmem>>, vector<1x1x128x128xbf16>
    %109 = vector.shape_cast %108 : vector<1x1x128x128xbf16> to vector<128x128xbf16>
    %cst_108 = arith.constant dense<0.000000e+00> : vector<256x128xf32>
    %110 = tpu.matmul %107, %109, %cst_108 {dimension_numbers = #tpu.dot_dimension_numbers<[1], [0], [0], [1], [0, 0, 1, 1], [], []>} : vector<256x128xbf16>, vector<128x128xbf16>, vector<256x128xf32> -> vector<256x128xf32>
    %111 = arith.addf %105, %110 : vector<256x128xf32>
    %c0_109 = arith.constant 0 : index
    %c2_110 = arith.constant 2 : index
    %c0_111 = arith.constant 0 : index
    %112 = vector.load %arg8[%c0_109, %c2_110, %c0_111] : memref<18x18x128xbf16, #tpu.memory_space<vmem>>, vector<18x16x128xbf16>
    %113 = vector.extract_strided_slice %112 {offsets = [0, 0, 0], sizes = [16, 16, 128], strides = [1, 1, 1]} : vector<18x16x128xbf16> to vector<16x16x128xbf16>
    %114 = vector.shape_cast %113 : vector<16x16x128xbf16> to vector<256x128xbf16>
    %c0_112 = arith.constant 0 : index
    %c2_113 = arith.constant 2 : index
    %c0_114 = arith.constant 0 : index
    %c0_115 = arith.constant 0 : index
    %115 = vector.load %arg4[%c0_112, %c2_113, %c0_114, %c0_115] : memref<3x3x128x128xbf16, #tpu.memory_space<vmem>>, vector<1x1x128x128xbf16>
    %116 = vector.shape_cast %115 : vector<1x1x128x128xbf16> to vector<128x128xbf16>
    %cst_116 = arith.constant dense<0.000000e+00> : vector<256x128xf32>
    %117 = tpu.matmul %114, %116, %cst_116 {dimension_numbers = #tpu.dot_dimension_numbers<[1], [0], [0], [1], [0, 0, 1, 1], [], []>} : vector<256x128xbf16>, vector<128x128xbf16>, vector<256x128xf32> -> vector<256x128xf32>
    %118 = arith.addf %111, %117 : vector<256x128xf32>
    %119 = vector.extract_strided_slice %112 {offsets = [1, 0, 0], sizes = [16, 16, 128], strides = [1, 1, 1]} : vector<18x16x128xbf16> to vector<16x16x128xbf16>
    %120 = vector.shape_cast %119 : vector<16x16x128xbf16> to vector<256x128xbf16>
    %c1_117 = arith.constant 1 : index
    %c2_118 = arith.constant 2 : index
    %c0_119 = arith.constant 0 : index
    %c0_120 = arith.constant 0 : index
    %121 = vector.load %arg4[%c1_117, %c2_118, %c0_119, %c0_120] : memref<3x3x128x128xbf16, #tpu.memory_space<vmem>>, vector<1x1x128x128xbf16>
    %122 = vector.shape_cast %121 : vector<1x1x128x128xbf16> to vector<128x128xbf16>
    %cst_121 = arith.constant dense<0.000000e+00> : vector<256x128xf32>
    %123 = tpu.matmul %120, %122, %cst_121 {dimension_numbers = #tpu.dot_dimension_numbers<[1], [0], [0], [1], [0, 0, 1, 1], [], []>} : vector<256x128xbf16>, vector<128x128xbf16>, vector<256x128xf32> -> vector<256x128xf32>
    %124 = arith.addf %118, %123 : vector<256x128xf32>
    %125 = vector.extract_strided_slice %112 {offsets = [2, 0, 0], sizes = [16, 16, 128], strides = [1, 1, 1]} : vector<18x16x128xbf16> to vector<16x16x128xbf16>
    %126 = vector.shape_cast %125 : vector<16x16x128xbf16> to vector<256x128xbf16>
    %c2_122 = arith.constant 2 : index
    %c2_123 = arith.constant 2 : index
    %c0_124 = arith.constant 0 : index
    %c0_125 = arith.constant 0 : index
    %127 = vector.load %arg4[%c2_122, %c2_123, %c0_124, %c0_125] : memref<3x3x128x128xbf16, #tpu.memory_space<vmem>>, vector<1x1x128x128xbf16>
    %128 = vector.shape_cast %127 : vector<1x1x128x128xbf16> to vector<128x128xbf16>
    %cst_126 = arith.constant dense<0.000000e+00> : vector<256x128xf32>
    %129 = tpu.matmul %126, %128, %cst_126 {dimension_numbers = #tpu.dot_dimension_numbers<[1], [0], [0], [1], [0, 0, 1, 1], [], []>} : vector<256x128xbf16>, vector<128x128xbf16>, vector<256x128xf32> -> vector<256x128xf32>
    %130 = arith.addf %124, %129 : vector<256x128xf32>
    %c0_127 = arith.constant 0 : index
    %c0_128 = arith.constant 0 : index
    %131 = vector.load %arg5[%c0_127, %c0_128] : memref<1x128xf32, #tpu.memory_space<vmem>>, vector<1x128xf32>
    %132 = vector.broadcast %131 : vector<1x128xf32> to vector<256x128xf32>
    %133 = arith.addf %130, %132 : vector<256x128xf32>
    %cst_129 = arith.constant 0.000000e+00 : f32
    %134 = vector.broadcast %cst_129 : f32 to vector<256x128xf32>
    %135 = arith.maximumf %133, %134 : vector<256x128xf32>
    %136 = vector.shape_cast %135 : vector<256x128xf32> to vector<1x16x16x128xf32>
    %c0_130 = arith.constant 0 : index
    %c0_131 = arith.constant 0 : index
    %c0_132 = arith.constant 0 : index
    %c0_133 = arith.constant 0 : index
    %137 = vector.load %arg6[%c0_130, %c0_131, %c0_132, %c0_133] : memref<1x16x16x128xf32, #tpu.memory_space<vmem>>, vector<1x16x16x128xf32>
    tpu.vector_store %arg6[%c0_130, %c0_131, %c0_132, %c0_133], %136 {strides = array<i32>} : memref<1x16x16x128xf32, #tpu.memory_space<vmem>>, vector<1x16x16x128xf32>,
    return
  }
  func.func @transform_0(%arg0: i32) -> (i32, i32, i32, i32) {
    %c0_i32 = arith.constant 0 : i32
    %c0_i32_0 = arith.constant 0 : i32
    %c0_i32_1 = arith.constant 0 : i32
    %c0_i32_2 = arith.constant 0 : i32
    return %arg0, %c0_i32, %c0_i32_0, %c0_i32_1 : i32, i32, i32, i32
  }
  func.func @transform_1(%arg0: i32) -> (i32, i32, i32, i32) {
    %c0_i32 = arith.constant 0 : i32
    %c0_i32_0 = arith.constant 0 : i32
    %c0_i32_1 = arith.constant 0 : i32
    %c0_i32_2 = arith.constant 0 : i32
    %c0_i32_3 = arith.constant 0 : i32
    return %c0_i32, %c0_i32_0, %c0_i32_1, %c0_i32_2 : i32, i32, i32, i32
  }
  func.func @transform_2(%arg0: i32) -> (i32, i32) {
    %c0_i32 = arith.constant 0 : i32
    %c0_i32_0 = arith.constant 0 : i32
    %c0_i32_1 = arith.constant 0 : i32
    return %c0_i32, %c0_i32_0 : i32, i32
  }
  func.func @transform_3(%arg0: i32) -> (i32, i32, i32, i32) {
    %c0_i32 = arith.constant 0 : i32
    %c0_i32_0 = arith.constant 0 : i32
    %c0_i32_1 = arith.constant 0 : i32
    %c0_i32_2 = arith.constant 0 : i32
    %c0_i32_3 = arith.constant 0 : i32
    return %c0_i32, %c0_i32_0, %c0_i32_1, %c0_i32_2 : i32, i32, i32, i32
  }
  func.func @transform_4(%arg0: i32) -> (i32, i32) {
    %c0_i32 = arith.constant 0 : i32
    %c0_i32_0 = arith.constant 0 : i32
    %c0_i32_1 = arith.constant 0 : i32
    return %c0_i32, %c0_i32_0 : i32, i32
  }
  func.func @transform_5(%arg0: i32) -> (i32, i32, i32, i32) {
    %c0_i32 = arith.constant 0 : i32
    %c0_i32_0 = arith.constant 0 : i32
    %c0_i32_1 = arith.constant 0 : i32
    %c0_i32_2 = arith.constant 0 : i32
    return %arg0, %c0_i32, %c0_i32_0, %c0_i32_1 : i32, i32, i32, i32
  }
}

</mosaic_0001>

<bundles_post_ra>
// kernel: tpu_custom_call.1
= control target key start
LH: loop header
LB: loop body
LE: loop exit
PB: predicated region body
PF: predicated region fallthrough
CT: control target
= control target key end

     0   :  { %10 = vsyncpa [#allocation5], 0  ;;  %s12616_s0 = inlined_call_operand.hbm [shape: bf16[2,16,16,4], index: 0, kind: input, shape index: {}]   ;;  %s12617_s1 = inlined_call_operand.hbm [shape: bf16[3,3,4,128], index: 1, kind: input, shape index: {}]   ;;  %s12618_s2 = inlined_call_operand.hbm [shape: f32[1,128], index: 2, kind: input, shape index: {}]   ;;  %s12619_s3 = inlined_call_operand.hbm [shape: bf16[3,3,128,128], index: 3, kind: input, shape index: {}]   ;;  %s12620_s4 = inlined_call_operand.hbm [shape: f32[1,128], index: 4, kind: input, shape index: {}]   ;;  %s12621_s5 = inlined_call_operand.hbm [shape: f32[2,16,16,128], index: 5, kind: output, shape index: {}]  }
   0x1   :  { %12 = vsyncpa [#allocation5 + $0x1], 0 }
   0x2   :  { %13 = vsyncpa [#allocation8], 0 }
   0x3   :  { %14 = vsyncpa [#allocation11], 0 }
   0x4   :  { %15 = vsyncpa [#allocation6], 0 }
   0x5   :  { %17 = vsyncpa [#allocation6 + $0x1], 0  ;;  %s10304_s18 = smov 0   ;;  %s10306_s19 = smov 0  }
   0x6   :  { %s10308_s20 = smov 0   ;;  %s10310_s21 = smov 0  }
   0x7 LB: > { %s10325_s22 = sadd.s32 4294967295, %s10259_s21   ;;  %s7747_s23 = sadd.s32 4294967294, %s10259_s21   ;;  %s10259_s21 = sphi %s10310_s21, %s12756_s21   ;;  %s10255_s20 = sphi %s10308_s20, %s12755_s20   ;;  %s10251_s19 = sphi %s10306_s19, %s12754_s19   ;;  %s10247_s18 = sphi %s10304_s18, %s12753_s18  }
   0x8   : > { %p43_p0 = scmp.ne.s32.totalorder %s10251_s19, %s10247_s18  ;;  %p12622_p1 = scmp.eq.s32.totalorder %s10325_s22, 0 }
   0x9   : > { %p157_p3 = scmp.eq.s32.totalorder %s7747_s23, 1  ;;  %p7748_p5 = scmp.ge.s32.totalorder %s10259_s21, 1 }
   0xa   : > { %p10334_p4 = por %p12622_p1, %p43_p0  ;;  %p164_p7 = scmp.lt.s32.totalorder %s10259_s21, 3 }
   0xb   : > { %p10339_p6 = por %p157_p3, %p43_p0  ;;  %s10261_s27 = smov [#allocation7]  }
   0xc   : > { %s12659_s24 = scalar_select %p10334_p4, 1, 0 }
   0xd   : > { %s12660_s25 = scalar_select %p10339_p6, 1, 0 }
   0xe   : > { %p10344_p8 = pnand %p7748_p5, %p164_p7  ;;  %s176_s28 = sshll.u32 %s10261_s27, 4  ;;  %s10348_s28 = int_to_ptr.vmem [resolvable:$true] %s176_s28 }
   0xf   : > { %s10262_s30 = smov [#allocation10]   ;;  %s10043_s9 = scalar_lea.hbm %s12617_s1, 288 }
  0x10   : > { %s12661_s26 = scalar_select %p10344_p8, 1, 0 }
  0x11   : > { %p9861_p9 = pneg %p10344_p8  ;;  %s200_s6 = sshll.u32 %s10262_s30, 4  ;;  %s10359_s6 = int_to_ptr.vmem [resolvable:$true] %s200_s6 }
  0x12   : > { %p10044_p12 = scmp.ne.s32.totalorder %s12617_s1, %s10043_s9  ;;  %p10050_p5 = scmp.lt.u32.totalorder %s10043_s9, %s12617_s1 }
  0x13   : > { %p10355_p11 = pnand %p9861_p9, %p12622_p1 }
  0x15   : > { %p10369_p13 = pneg %p10355_p11 }
  0x17   : > { %p10046_p0 = pnand %p10369_p13, %p10044_p12 }
  0x19   : > { %p10047_p3 = pneg %p10046_p0 }
  0x1b   : > { %p10052_p7 = pnand %p10050_p5, %p10047_p3 }
  0x1d   : > { %10055 = shalt.err (!%p10052_p7)
}
  0x1e   : > { %s10056_s15 = scalar_lea.vmem %s10348_s28, 288  ;;  %p10064_p2 = scmp.lt.s32.totalorder %s10348_s28, %s10348_s28 }
  0x1f   : > { %p10057_p9 = scmp.ne.s32.totalorder %s10348_s28, %s10056_s15  ;;  %p10065_p6 = scmp.lt.s32.totalorder %s10056_s15, %s10056_s15 }
  0x21   : > { %p10059_p10 = pnand %p10057_p9, %p10369_p13  ;;  %p10066_p12 = por %p10065_p6, %p10064_p2 }
  0x23   : > { %p10060_p1 = pneg %p10059_p10 }
  0x25   : > { %p10067_p0 = pnand %p10066_p12, %p10060_p1 }
  0x27   : > { %10070 = shalt.err (!%p10067_p0)
}
  0x28   : > { %s10263_s16 = smov 32   ;;  %s10264_s17 = smov 2  }
  0x29   : > { %9864 = dma.hbm_to_vmem [thread:$0]  (!%p10355_p11), %s12617_s1, 288, %s10348_s28, [#allocation8], %s10263_s16, %s10263_s16, %s10264_s17  }
  0x2a   : > { %s10071_s8 = scalar_lea.hbm %s12619_s3, 9216 }
  0x2b   : > { %p10072_p2 = scmp.ne.s32.totalorder %s12619_s3, %s10071_s8  ;;  %p10078_p10 = scmp.lt.u32.totalorder %s10071_s8, %s12619_s3 }
  0x2d   : > { %p10074_p1 = pnand %p10072_p2, %p10369_p13 }
  0x2f   : > { %p10075_p6 = pneg %p10074_p1 }
  0x31   : > { %p10080_p3 = pnand %p10078_p10, %p10075_p6 }
  0x33   : > { %10083 = shalt.err (!%p10080_p3)
}
  0x34   : > { %s10084_s28 = scalar_lea.vmem %s10359_s6, 9216  ;;  %p10092_p12 = scmp.lt.s32.totalorder %s10359_s6, %s10359_s6 }
  0x35   : > { %p10085_p5 = scmp.ne.s32.totalorder %s10359_s6, %s10084_s28  ;;  %p10093_p0 = scmp.lt.s32.totalorder %s10084_s28, %s10084_s28 }
  0x37   : > { %p10087_p7 = pnand %p10085_p5, %p10369_p13  ;;  %p10094_p2 = por %p10093_p0, %p10092_p12 }
  0x39   : > { %p10088_p9 = pneg %p10087_p7 }
  0x3b   : > { %p10095_p1 = pnand %p10094_p2, %p10088_p9 }
  0x3d   : > { %10098 = shalt.err (!%p10095_p1)
}
  0x3e   : > { %s10265_s14 = smov 64   ;;  %s10266_s15 = smov 4  }
  0x3f   : > { %9870 = dma.hbm_to_vmem [thread:$0]  (!%p10355_p11), %s12619_s3, 9216, %s10359_s6, [#allocation11], %s10265_s14, %s10265_s14, %s10266_s15  }
  0x40   : > { %s10267_s23 = smov [#allocation9]   ;;  %s10268_s30 = smov [#allocation12]  }
  0x41   : > { %s190_s27 = sshll.u32 %s10267_s23, 4  ;;  %s214_s7 = sshll.u32 %s10268_s30, 4  ;;  %s191_s27 = int_to_ptr.vmem [resolvable:$true] %s190_s27  ;;  %s10416_s7 = int_to_ptr.vmem [resolvable:$true] %s214_s7 }
  0x42   : > { %s10099_s10 = scalar_lea.hbm %s12618_s2, 16 }
  0x43   : > { %p10100_p6 = scmp.ne.s32.totalorder %s12618_s2, %s10099_s10  ;;  %p10106_p5 = scmp.lt.u32.totalorder %s10099_s10, %s12618_s2 }
  0x45   : > { %p10102_p10 = pnand %p10100_p6, %p10369_p13 }
  0x47   : > { %p10103_p3 = pneg %p10102_p10 }
  0x49   : > { %p10108_p7 = pnand %p10106_p5, %p10103_p3 }
  0x4b   : > { %10111 = shalt.err (!%p10108_p7)
}
  0x4c   : > { %s10112_s16 = scalar_lea.vmem %s191_s27, 16  ;;  %s10119_s17 = scalar_lea.vmem %s191_s27, 32 }
  0x4d   : > { %p10113_p9 = scmp.ne.s32.totalorder %s191_s27, %s10112_s16  ;;  %p10120_p2 = scmp.lt.s32.totalorder %s191_s27, %s191_s27 }
  0x4e   : > { %p10121_p1 = scmp.lt.s32.totalorder %s10119_s17, %s10112_s16 }
  0x4f   : > { %p10115_p12 = pnand %p10113_p9, %p10369_p13 }
  0x50   : > { %p10122_p4 = por %p10121_p1, %p10120_p2 }
  0x51   : > { %p10116_p0 = pneg %p10115_p12 }
  0x53   : > { %p10123_p8 = pnand %p10122_p4, %p10116_p0 }
  0x55   : > { %10126 = shalt.err (!%p10123_p8)
}
  0x56   : > { %9867 = dma.hbm_to_vmem [thread:$0]  (!%p10355_p11), %s12618_s2, 16, %s191_s27, [#allocation8]  }
  0x57   : > { %s10127_s10 = scalar_lea.hbm %s12620_s4, 16 }
  0x58   : > { %p10128_p6 = scmp.ne.s32.totalorder %s12620_s4, %s10127_s10  ;;  %p10134_p4 = scmp.lt.u32.totalorder %s10127_s10, %s12620_s4 }
  0x5a   : > { %p10130_p10 = pnand %p10128_p6, %p10369_p13 }
  0x5c   : > { %p10131_p3 = pneg %p10130_p10 }
  0x5e   : > { %p10136_p8 = pnand %p10134_p4, %p10131_p3 }
  0x60   : > { %10139 = shalt.err (!%p10136_p8)
}
  0x61   : > { %s10140_s27 = scalar_lea.vmem %s10416_s7, 16  ;;  %s10147_s16 = scalar_lea.vmem %s10416_s7, 32 }
  0x62   : > { %p10141_p5 = scmp.ne.s32.totalorder %s10416_s7, %s10140_s27  ;;  %p10148_p12 = scmp.lt.s32.totalorder %s10416_s7, %s10416_s7 }
  0x63   : > { %p10149_p0 = scmp.lt.s32.totalorder %s10147_s16, %s10140_s27 }
  0x64   : > { %p10143_p7 = pnand %p10141_p5, %p10369_p13 }
  0x65   : > { %p10150_p2 = por %p10149_p0, %p10148_p12 }
  0x66   : > { %p10144_p9 = pneg %p10143_p7 }
  0x68   : > { %p10151_p1 = pnand %p10150_p2, %p10144_p9 }
  0x6a   : > { %10154 = shalt.err (!%p10151_p1)
}
  0x6b   : > { %9873 = dma.hbm_to_vmem [thread:$0]  (!%p10355_p11), %s12620_s4, 16, %s10416_s7, [#allocation11]  }
  0x6c   : > { %s10461_s12 = sadd.s32 1, %s10259_s21   ;;  %s30_s30 = sadd.s32 1, %s10255_s20 }
  0x6d   : > { %s27_s29 = ssub.s32 %s10259_s21, %s10461_s12  ;;  %p37_p6 = scmp.ne.s32.totalorder %s10255_s20, %s10251_s19 }
  0x6e   : > { %p28_p13 = scmp.eq.s32.totalorder %s27_s29, 0  ;;  %p38_p10 = scmp.eq.s32.totalorder %s10259_s21, 0 }
  0x6f   : > { %p12664_p4 = scmp.eq.s32.totalorder %s10325_s22, 1  ;;  %p9886_p5 = scmp.lt.s32.totalorder %s10259_s21, 2 }
  0x70   : > { %s10470_s8 = scalar_select %p28_p13, %s10255_s20, %s30_s30  }
  0x71   : > { %p39_p3 = por %p38_p10, %p37_p6  ;;  %p10474_p8 = por %p12664_p4, %p37_p6 }
  0x72   : > { %s225_s10 = sand.u32 1, %s10255_s20   ;;  %s8163_s7 = sshll.u32 %s10259_s21, 11 }
  0x73   : > { %s7754_s11 = sshll.u32 %s225_s10, 7  ;;  %s10484_s6 = scalar_lea.hbm %s12616_s0, %s8163_s7 }
  0x74   : > { %s229_s27 = scalar_lea.vmem [#allocation4], %s7754_s11  ;;  %p10488_p11 = pnand %p9886_p5, %p39_p3 }
  0x75   : > { %s236_s16 = sshll.u32 %s229_s27, 4  ;;  %s10492_s23 = scalar_lea.sflag [#allocation5], %s225_s10  ;;  %s10486_s16 = int_to_ptr.vmem [resolvable:$true] %s236_s16 }
  0x76   : > { %s10155_s29 = scalar_lea.hbm %s10484_s6, 2048  ;;  %p10157_p9 = pneg %p10488_p11 }
  0x77   : > { %p10156_p7 = scmp.ne.s32.totalorder %s10484_s6, %s10155_s29  ;;  %s10160_s7 = scalar_lea.hbm %s12616_s0, 4096 }
  0x78   : > { %p10161_p2 = scmp.lt.u32.totalorder %s10484_s6, %s12616_s0  ;;  %p10162_p1 = scmp.lt.u32.totalorder %s10160_s7, %s10155_s29 }
  0x79   : > { %p10158_p12 = pnand %p10157_p9, %p10156_p7  ;;  %p10164_p6 = scmp.lt.u32.totalorder %s10155_s29, %s10484_s6 }
  0x7a   : > { %p10163_p13 = por %p10162_p1, %p10161_p2 }
  0x7b   : > { %p10159_p0 = pneg %p10158_p12 }
  0x7c   : > { %p10165_p10 = por %p10164_p6, %p10163_p13 }
  0x7e   : > { %p10166_p3 = pnand %p10165_p10, %p10159_p0 }
  0x80   : > { %10169 = shalt.err (!%p10166_p3)
}
  0x81   : > { %s10170_s10 = scalar_lea.vmem %s10486_s16, 2048  ;;  %s10269_s27 = smov [#allocation4]  }
  0x82   : > { %p10171_p4 = scmp.ne.s32.totalorder %s10486_s16, %s10170_s10  ;;  %s10175_s30 = sshll.u32 %s10269_s27, 4  ;;  %s10176_s30 = int_to_ptr.vmem [resolvable:$false] %s10175_s30 }
  0x83   : > { %s10177_s11 = scalar_lea.vmem %s10176_s30, 4096  ;;  %p10178_p12 = scmp.lt.s32.totalorder %s10486_s16, %s10176_s30 }
  0x84   : > { %p10173_p5 = pnand %p10171_p4, %p10157_p9  ;;  %p10179_p2 = scmp.lt.s32.totalorder %s10177_s11, %s10170_s10 }
  0x86   : > { %p10174_p7 = pneg %p10173_p5  ;;  %p10180_p1 = por %p10179_p2, %p10178_p12 }
  0x88   : > { %p10181_p13 = pnand %p10180_p1, %p10174_p7 }
  0x8a   : > { %10184 = shalt.err (!%p10181_p13)
}
  0x8b   : > { %9877 = dma.hbm_to_vmem [thread:$0]  (!%p10488_p11), %s10484_s6, 2048, %s10486_s16, %s10492_s23, %s10265_s14, %s10265_s14, %s10266_s15  }
  0x8c   : > { %p12667_p9 = scmp.ne.s32.totalorder %s12661_s26, 0 }
  0x8e   : > { %248 = sbr.rel (%p12667_p9) target bundleno = 1792 (0x700), region = 40 }
  0x95   : > { %s10526_s29 = sand.u32 1, %s10251_s19   ;;  %p12668_p0 = scmp.ne.s32.totalorder %s12659_s24, 0 }
  0x96   : > { %s7758_s7 = sshll.u32 %s10526_s29, 7  ;;  %s251_s13 = scalar_lea.sflag [#allocation5], %s10526_s29 }
  0x97   : > { %s10530_s28 = scalar_lea.vmem [#allocation4], %s7758_s7 }
  0x98   : > { %10230 = dma.done.wait (%p12668_p0), %s251_s13, 2048  }
  0x99   : > { %10232 = vsyncadd (%p12668_p0), %s251_s13, 4294965248  ;;  %p12669_p11 = scmp.eq.s32.totalorder %s10325_s22, 0 }
  0x9b   : > { %10234 = dma.done.wait (%p12669_p11), [#allocation8], 304   ;;  %p12670_p6 = pmov %p12669_p11 }
  0x9d   : > { %10236 = vsyncadd (%p12670_p6), [#allocation8], 4294966992  ;;  %p12671_p10 = pmov %p12670_p6 }
  0x9e   : > { %p12672_p3 = pmov %p12670_p6 }
  0x9f   : > { %10238 = dma.done.wait (%p12671_p10), [#allocation11], 9232  }
  0xa0   : > { %10240 = vsyncadd (%p12672_p3), [#allocation11], 4294958064  ;;  %vm298_vm0 = vcmask 27648   ;;  %vm301_vm1 = vcmask 24576   ;;  %v10270_v0 = vmov 0   ;;  %vm995_vm2 = vcmask 1041408  }
  0xa1   : > { %303 = vst.msk [vmem:[#allocation2 + $0xc] sm:$0xf] %vm298_vm0, %v10270_v0  ;;  %304 = vst.msk [vmem:[#allocation2 + $0x10] sm:$0xf] %vm298_vm0, %v10270_v0  ;;  %vm386_vm3 = vsmask.f32 256 }
  0xa2   : > { %305 = vst.msk [vmem:[#allocation2 + $0x14] sm:$0x1] %vm301_vm1, %v10270_v0  ;;  %302 = vst.msk [vmem:[#allocation2 + $0x8] sm:$0x1] %vm301_vm1, %v10270_v0  ;;  %vm387_vm4 = vsmask.f32 4368 }
  0xa3   : > { %299 = vst.msk [vmem:[#allocation2] sm:$0xf] %vm298_vm0, %v10270_v0  ;;  %300 = vst.msk [vmem:[#allocation2 + $0x4] sm:$0xf] %vm298_vm0, %v10270_v0  ;;  %vm711_vm5 = vsmask.f32 7938 }
  0xa4   : > { %306 = vst.msk [vmem:[#allocation2 + $0x18] sm:$0xf] %vm298_vm0, %v10270_v0  ;;  %307 = vst.msk [vmem:[#allocation2 + $0x1c] sm:$0xf] %vm298_vm0, %v10270_v0  ;;  %v865_v1 = vld [vmem:[#allocation7 + $0x6] sm:$0x3] }
  0xa5   : > { %308 = vst.msk [vmem:[#allocation2 + $0x20] sm:$0x1] %vm301_vm1, %v10270_v0  ;;  %311 = vst.msk [vmem:[#allocation2 + $0x2c] sm:$0x1] %vm301_vm1, %v10270_v0  ;;  %v354_v2 = vld [vmem:[%s10530_s28] sm:$0xf]  ;;  %9832 = vmatprep.subr.msk.bf16.mxu0 %vm995_vm2, %v865_v1 }
  0xa6   : > { %309 = vst.msk [vmem:[#allocation2 + $0x24] sm:$0xf] %vm298_vm0, %v10270_v0  ;;  %310 = vst.msk [vmem:[#allocation2 + $0x28] sm:$0xf] %vm298_vm0, %v10270_v0  ;;  %v355_v3 = vld [vmem:[%s10530_s28 + $0x4] sm:$0xf] }
  0xa7   : > { %312 = vst.msk [vmem:[#allocation2 + $0x30] sm:$0xf] %vm298_vm0, %v10270_v0  ;;  %313 = vst.msk [vmem:[#allocation2 + $0x34] sm:$0xf] %vm298_vm0, %v10270_v0  ;;  %v997_v4 = vsel %vm995_vm2, %v865_v1, 0  ;;  %v390_v5 = vshrl.u32 %v354_v2, 16 }
  0xa8   : > { %314 = vst.msk [vmem:[#allocation2 + $0x38] sm:$0x1] %vm301_vm1, %v10270_v0  ;;  %317 = vst.msk [vmem:[#allocation2 + $0x44] sm:$0x1] %vm301_vm1, %v10270_v0  ;;  %v393_v6 = vshll.u32 %v354_v2, 16  ;;  %v398_v7 = vshrl.u32 %v355_v3, 16  ;;  %8567 = vmatpush3.bf16.msra.mxu0 %v997_v4 }
  0xa9   : > { %315 = vst.msk [vmem:[#allocation2 + $0x3c] sm:$0xf] %vm298_vm0, %v10270_v0  ;;  %316 = vst.msk [vmem:[#allocation2 + $0x40] sm:$0xf] %vm298_vm0, %v10270_v0  ;;  %v12673_v8 = vmov 0  ;;  %v401_v9 = vshll.u32 %v355_v3, 16 }
  0xaa   : > { %318 = vst.msk [vmem:[#allocation2 + $0x48] sm:$0xf] %vm298_vm0, %v10270_v0  ;;  %319 = vst.msk [vmem:[#allocation2 + $0x4c] sm:$0xf] %vm298_vm0, %v10270_v0  ;;  %v713_v10 = vld [vmem:[#allocation2 + $0xc] sm:$0xf] }
  0xab   : > { %320 = vst.msk [vmem:[#allocation2 + $0x50] sm:$0x1] %vm301_vm1, %v10270_v0  ;;  %323 = vst.msk [vmem:[#allocation2 + $0x5c] sm:$0x1] %vm301_vm1, %v10270_v0  ;;  %v863_v11 = vld [vmem:[#allocation7] sm:$0x3] }
  0xac   : > { %321 = vst.msk [vmem:[#allocation2 + $0x54] sm:$0xf] %vm298_vm0, %v10270_v0  ;;  %322 = vst.msk [vmem:[#allocation2 + $0x58] sm:$0xf] %vm298_vm0, %v10270_v0  ;;  %v392_v12 = vrot.slane %v390_v5, 7  ;;  %v400_v13 = vrot.slane %v398_v7, 7  ;;  %9833 = vmatprep.subr.msk.bf16.mxu0 %vm995_vm2, %v863_v11 }
  0xad   : > { %324 = vst.msk [vmem:[#allocation2 + $0x60] sm:$0xf] %vm298_vm0, %v10270_v0  ;;  %325 = vst.msk [vmem:[#allocation2 + $0x64] sm:$0xf] %vm298_vm0, %v10270_v0  ;;  %v356_v15 = vld [vmem:[%s10530_s28 + $0x8] sm:$0xf] }
  0xae   : > { %326 = vst.msk [vmem:[#allocation2 + $0x68] sm:$0x1] %vm301_vm1, %v10270_v0  ;;  %329 = vst.msk [vmem:[#allocation2 + $0x74] sm:$0x1] %vm301_vm1, %v10270_v0  ;;  %v357_v16 = vld [vmem:[%s10530_s28 + $0xc] sm:$0xf]  ;;  %v395_v23 = vor.u32 %v393_v6, %v392_v12  ;;  %v403_v25 = vor.u32 %v401_v9, %v400_v13 }
  0xaf   : > { %327 = vst.msk [vmem:[#allocation2 + $0x6c] sm:$0xf] %vm298_vm0, %v10270_v0  ;;  %328 = vst.msk [vmem:[#allocation2 + $0x70] sm:$0xf] %vm298_vm0, %v10270_v0  ;;  %v719_v18 = vld [vmem:[#allocation2 + $0x14] sm:$0x1] }
  0xb0   : > { %330 = vst.msk [vmem:[#allocation2 + $0x78] sm:$0xf] %vm298_vm0, %v10270_v0  ;;  %331 = vst.msk [vmem:[#allocation2 + $0x7c] sm:$0xf] %vm298_vm0, %v10270_v0  ;;  %v407_v19 = vshrl.u32 %v356_v15, 16  ;;  %v410_v20 = vshll.u32 %v356_v15, 16 }
  0xb1   : > { %332 = vst.msk [vmem:[#allocation2 + $0x80] sm:$0x1] %vm301_vm1, %v10270_v0  ;;  %335 = vst.msk [vmem:[#allocation2 + $0x8c] sm:$0x1] %vm301_vm1, %v10270_v0  ;;  %v415_v21 = vshrl.u32 %v357_v16, 16  ;;  %v418_v22 = vshll.u32 %v357_v16, 16 }
  0xb2   : > { %333 = vst.msk [vmem:[#allocation2 + $0x84] sm:$0xf] %vm298_vm0, %v10270_v0  ;;  %334 = vst.msk [vmem:[#allocation2 + $0x88] sm:$0xf] %vm298_vm0, %v10270_v0  ;;  %v396_v24 = vrot.slane %v392_v12, 4  ;;  %v405_v26 = vrot.slane %v400_v13, 4 }
  0xb3   : > { %336 = vst.msk [vmem:[#allocation2 + $0x90] sm:$0xf] %vm298_vm0, %v10270_v0  ;;  %337 = vst.msk [vmem:[#allocation2 + $0x94] sm:$0xf] %vm298_vm0, %v10270_v0  ;;  %v722_v27 = vld [vmem:[#allocation2 + $0x18] sm:$0xf] }
  0xb4   : > { %338 = vst.msk [vmem:[#allocation2 + $0x98] sm:$0x1] %vm301_vm1, %v10270_v0  ;;  %341 = vst.msk [vmem:[#allocation2 + $0xa4] sm:$0x1] %vm301_vm1, %v10270_v0  ;;  %v358_v28 = vld [vmem:[%s10530_s28 + $0x10] sm:$0xf] }
  0xb5   : > { %339 = vst.msk [vmem:[#allocation2 + $0x9c] sm:$0xf] %vm298_vm0, %v10270_v0  ;;  %340 = vst.msk [vmem:[#allocation2 + $0xa0] sm:$0xf] %vm298_vm0, %v10270_v0  ;;  %v409_v29 = vrot.slane %v407_v19, 7  ;;  %v10731_v30 = vrot.slane %v415_v21, 7 }
  0xb6   : > { %342 = vst.msk [vmem:[#allocation2 + $0xa8] sm:$0xf] %vm298_vm0, %v10270_v0  ;;  %343 = vst.msk [vmem:[#allocation2 + $0xac] sm:$0xf] %vm298_vm0, %v10270_v0  ;;  %v359_v31 = vld [vmem:[%s10530_s28 + $0x14] sm:$0xf] }
  0xb7   : > { %344 = vst.msk [vmem:[#allocation2 + $0xb0] sm:$0x1] %vm301_vm1, %v10270_v0  ;;  %347 = vst.msk [vmem:[#allocation2 + $0xbc] sm:$0x1] %vm301_vm1, %v10270_v0  ;;  %v424_v32 = vshrl.u32 %v358_v28, 16  ;;  %v427_v36 = vshll.u32 %v358_v28, 16  ;;  %v412_v39 = vor.u32 %v410_v20, %v409_v29  ;;  %v420_v41 = vor.u32 %v418_v22, %v10731_v30 }
  0xb8   : > { %345 = vst.msk [vmem:[#allocation2 + $0xb4] sm:$0xf] %vm298_vm0, %v10270_v0  ;;  %346 = vst.msk [vmem:[#allocation2 + $0xb8] sm:$0xf] %vm298_vm0, %v10270_v0  ;;  %v360_v37 = vld [vmem:[%s10530_s28 + $0x18] sm:$0xf] }
  0xb9   : > { %348 = vst.msk [vmem:[#allocation2 + $0xc0] sm:$0xf] %vm298_vm0, %v10270_v0  ;;  %349 = vst.msk [vmem:[#allocation2 + $0xc4] sm:$0xf] %vm298_vm0, %v10270_v0  ;;  %v361_v38 = vld [vmem:[%s10530_s28 + $0x1c] sm:$0xf] }
  0xba   : > { %350 = vst.msk [vmem:[#allocation2 + $0xc8] sm:$0x1] %vm301_vm1, %v10270_v0  ;;  %353 = vst.msk [vmem:[#allocation2 + $0xd4] sm:$0x1] %vm301_vm1, %v10270_v0  ;;  %vm946_vm9 = vcmask 31744   ;;  %v413_v40 = vrot.slane %v409_v29, 4 }
  0xbb   : > { %351 = vst.msk [vmem:[#allocation2 + $0xcc] sm:$0xf] %vm298_vm0, %v10270_v0  ;;  %352 = vst.msk [vmem:[#allocation2 + $0xd0] sm:$0xf] %vm298_vm0, %v10270_v0  ;;  %v426_v42 = vrot.slane %v424_v32, 7  ;;  %v432_v43 = vshrl.u32 %v359_v31, 16 }
  0xbc   : > { %3703 = vst [vmem:[#allocation3] sm:$0xf] %v10270_v0  ;;  %3704 = vst [vmem:[#allocation3 + $0x4] sm:$0xf] %v10270_v0  ;;  %v435_v44 = vshll.u32 %v359_v31, 16  ;;  %v441_v45 = vshrl.u32 %v360_v37, 16 }
  0xbd   : > { %3705 = vst [vmem:[#allocation3 + $0x8] sm:$0x1] %v10270_v0  ;;  %3706 = vst [vmem:[#allocation3 + $0xc] sm:$0xf] %v10270_v0  ;;  %v362_v46 = vld [vmem:[%s10530_s28 + $0x20] sm:$0xf]  ;;  %v429_v52 = vor.u32 %v427_v36, %v426_v42 }
  0xbe   : > { %3707 = vst [vmem:[#allocation3 + $0x10] sm:$0xf] %v10270_v0  ;;  %3708 = vst [vmem:[#allocation3 + $0x14] sm:$0x1] %v10270_v0  ;;  %v729_v49 = vld [vmem:[#allocation2 + $0x24] sm:$0xf] }
  0xbf   : > { %3709 = vst [vmem:[#allocation3 + $0x18] sm:$0xf] %v10270_v0  ;;  %3710 = vst [vmem:[#allocation3 + $0x1c] sm:$0xf] %v10270_v0  ;;  %v444_v50 = vshll.u32 %v360_v37, 16  ;;  %v449_v51 = vshrl.u32 %v361_v38, 16 }
  0xc0   : > { %3711 = vst [vmem:[#allocation3 + $0x20] sm:$0x1] %v10270_v0  ;;  %3712 = vst [vmem:[#allocation3 + $0x24] sm:$0xf] %v10270_v0  ;;  %v430_v53 = vrot.slane %v426_v42, 4  ;;  %v10750_v54 = vrot.slane %v432_v43, 7 }
  0xc1   : > { %3713 = vst [vmem:[#allocation3 + $0x28] sm:$0xf] %v10270_v0  ;;  %3714 = vst [vmem:[#allocation3 + $0x2c] sm:$0x1] %v10270_v0  ;;  %v443_v55 = vrot.slane %v441_v45, 7  ;;  %v10752_v57 = vrot.slane %v449_v51, 7 }
  0xc2   : > { %3715 = vst [vmem:[#allocation3 + $0x30] sm:$0xf] %v10270_v0  ;;  %3716 = vst [vmem:[#allocation3 + $0x34] sm:$0xf] %v10270_v0  ;;  %v736_v56 = vld [vmem:[#allocation2 + $0x30] sm:$0xf]  ;;  %v437_v63 = vor.u32 %v435_v44, %v10750_v54 }
  0xc3   : > { %3717 = vst [vmem:[#allocation3 + $0x38] sm:$0x1] %v10270_v0  ;;  %3718 = vst [vmem:[#allocation3 + $0x3c] sm:$0xf] %v10270_v0  ;;  %v452_v58 = vshll.u32 %v361_v38, 16  ;;  %v458_v60 = vshrl.u32 %v362_v46, 16  ;;  %v446_v1 = vor.u32 %v444_v50, %v443_v55 }
  0xc4   : > { %3719 = vst [vmem:[#allocation3 + $0x40] sm:$0xf] %v10270_v0  ;;  %3720 = vst [vmem:[#allocation3 + $0x44] sm:$0x1] %v10270_v0  ;;  %v363_v59 = vld [vmem:[%s10530_s28 + $0x24] sm:$0xf] }
  0xc5   : > { %3721 = vst [vmem:[#allocation3 + $0x48] sm:$0xf] %v10270_v0  ;;  %3722 = vst [vmem:[#allocation3 + $0x4c] sm:$0xf] %v10270_v0  ;;  %v461_v61 = vshll.u32 %v362_v46, 16  ;;  %v1169_v62 = vsel %vm995_vm2, %v863_v11, 0  ;;  %v454_v4 = vor.u32 %v452_v58, %v10752_v57 }
  0xc6   : > { %3723 = vst [vmem:[#allocation3 + $0x50] sm:$0x1] %v10270_v0  ;;  %3724 = vst [vmem:[#allocation3 + $0x54] sm:$0xf] %v10270_v0  ;;  %v743_v2 = vld [vmem:[#allocation2 + $0x3c] sm:$0xf] }
  0xc7   : > { %3725 = vst [vmem:[#allocation3 + $0x58] sm:$0xf] %v10270_v0  ;;  %3726 = vst [vmem:[#allocation3 + $0x5c] sm:$0x1] %v10270_v0  ;;  %v447_v3 = vrot.slane %v443_v55, 4  ;;  %v460_v5 = vrot.slane %v458_v60, 7 }
  0xc8   : > { %3727 = vst [vmem:[#allocation3 + $0x60] sm:$0xf] %v10270_v0  ;;  %3728 = vst [vmem:[#allocation3 + $0x64] sm:$0xf] %v10270_v0  ;;  %v364_v6 = vld [vmem:[%s10530_s28 + $0x28] sm:$0xf] }
  0xc9   : > { %3729 = vst [vmem:[#allocation3 + $0x68] sm:$0x1] %v10270_v0  ;;  %3730 = vst [vmem:[#allocation3 + $0x6c] sm:$0xf] %v10270_v0  ;;  %v365_v7 = vld [vmem:[%s10530_s28 + $0x2c] sm:$0xf]  ;;  %v463_v15 = vor.u32 %v461_v61, %v460_v5 }
  0xca   : > { %3731 = vst [vmem:[#allocation3 + $0x70] sm:$0xf] %v10270_v0  ;;  %3732 = vst [vmem:[#allocation3 + $0x74] sm:$0x1] %v10270_v0  ;;  %v466_v12 = vshrl.u32 %v363_v59, 16  ;;  %v464_v16 = vrot.slane %v460_v5, 4 }
  0xcb   : > { %3733 = vst [vmem:[#allocation3 + $0x78] sm:$0xf] %v10270_v0  ;;  %3734 = vst [vmem:[#allocation3 + $0x7c] sm:$0xf] %v10270_v0  ;;  %v366_v19 = vld [vmem:[%s10530_s28 + $0x30] sm:$0xf] }
  0xcc   : > { %3735 = vst [vmem:[#allocation3 + $0x80] sm:$0x1] %v10270_v0  ;;  %3736 = vst [vmem:[#allocation3 + $0x84] sm:$0xf] %v10270_v0  ;;  %v10775_v20 = vrot.slane %v466_v12, 7  ;;  %v475_v21 = vshrl.u32 %v364_v6, 16 }
  0xcd   : > { %3737 = vst [vmem:[#allocation3 + $0x88] sm:$0xf] %v10270_v0  ;;  %3738 = vst [vmem:[#allocation3 + $0x8c] sm:$0x1] %v10270_v0  ;;  %v478_v22 = vshll.u32 %v364_v6, 16  ;;  %vm2795_vm13 = vcmask 1042432  }
  0xce   : > { %3739 = vst [vmem:[#allocation3 + $0x90] sm:$0xf] %v10270_v0  ;;  %3740 = vst [vmem:[#allocation3 + $0x94] sm:$0xf] %v10270_v0  ;;  %v477_v29 = vrot.slane %v475_v21, 7  ;;  %vm2796_vm14 = vcmask 1046532  }
  0xcf   : > { %3741 = vst [vmem:[#allocation3 + $0x98] sm:$0x1] %v10270_v0  ;;  %3742 = vst [vmem:[#allocation3 + $0x9c] sm:$0xf] %v10270_v0  ;;  %v750_v32 = vld [vmem:[#allocation2 + $0x48] sm:$0xf] }
  0xd0   : > { %3743 = vst [vmem:[#allocation3 + $0xa0] sm:$0xf] %v10270_v0  ;;  %3744 = vst [vmem:[#allocation3 + $0xa4] sm:$0x1] %v10270_v0  ;;  %v369_v38 = vld [vmem:[%s10530_s28 + $0x3c] sm:$0xf] }
  0xd1   : > { %3745 = vst [vmem:[#allocation3 + $0xa8] sm:$0xf] %v10270_v0  ;;  %3746 = vst [vmem:[#allocation3 + $0xac] sm:$0xf] %v10270_v0  ;;  %v757_v43 = vld [vmem:[#allocation2 + $0x54] sm:$0xf] }
  0xd2   : > { %3747 = vst [vmem:[#allocation3 + $0xb0] sm:$0x1] %v10270_v0  ;;  %3748 = vst [vmem:[#allocation3 + $0xb4] sm:$0xf] %v10270_v0  ;;  %v370_v44 = vld [vmem:[%s10530_s28 + $0x40] sm:$0xf] }
  0xd3   : > { %3749 = vst [vmem:[#allocation3 + $0xb8] sm:$0xf] %v10270_v0  ;;  %3750 = vst [vmem:[#allocation3 + $0xbc] sm:$0x1] %v10270_v0  ;;  %v517_v60 = vshrl.u32 %v369_v38, 16  ;;  %v520_v61 = vshll.u32 %v369_v38, 16 }
  0xd4   : > { %3751 = vst [vmem:[#allocation3 + $0xc0] sm:$0xf] %v10270_v0  ;;  %3752 = vst [vmem:[#allocation3 + $0xc4] sm:$0xf] %v10270_v0  ;;  %vm1592_vm10 = vsmask.f32 3328 }
  0xd5   : > { %3753 = vst [vmem:[#allocation3 + $0xc8] sm:$0x1] %v10270_v0  ;;  %3754 = vst [vmem:[#allocation3 + $0xcc] sm:$0xf] %v10270_v0  ;;  %vm1593_vm11 = vsmask.f32 7440 }
  0xd6   : > { %3755 = vst [vmem:[#allocation3 + $0xd0] sm:$0xf] %v10270_v0  ;;  %3756 = vst [vmem:[#allocation3 + $0xd4] sm:$0x1] %v10270_v0  ;;  %s7763_s24 = sshll.u32 %s10526_s29, 8  ;;  %s8196_s14 = sshll.u32 %s10325_s22, 12 }
  0xd7   : > { %vm10711_vm6 = vmor %vm386_vm3, %vm387_vm4  ;;  %s12503_s26 = scalar_lea.vmem [#allocation13], %s7763_s24  ;;  %s12567_s17 = scalar_lea.hbm %s12621_s5, %s8196_s14 }
  0xd8   : > { %v12674_v8 = vsel %vm10711_vm6, 4294967295, %v12673_v8  ;;  %vm10717_vm7 = vmand %vm298_vm0, %vm711_vm5  ;;  %v404_v33 = vsel %vm10711_vm6, %v396_v24, %v403_v25  ;;  %v421_v47 = vsel %vm10711_vm6, %v413_v40, %v420_v41  ;;  %v455_v13 = vsel %vm10711_vm6, %v447_v3, %v454_v4  ;;  %v367_v24 = vld [vmem:[%s10530_s28 + $0x34] sm:$0xf]  ;;  %s7636_s15 = sshll.u32 %s12503_s26, 4  ;;  %s7623_s22 = scalar_lea.sflag [#allocation6], %s10526_s29  ;;  %s12569_s15 = int_to_ptr.vmem [resolvable:$true] %s7636_s15 }
  0xd9   : > { %12675 = vst [vmem:[#allocation18_spill] sm:$0xff] %v12674_v8  ;;  %vm10726_vm8 = vmand %vm301_vm1, %vm386_vm3  ;;  %v714_v34 = vsel %vm10717_vm7, %v395_v23, %v713_v10  ;;  %v723_v48 = vsel %vm10717_vm7, %v412_v39, %v722_v27  ;;  %v730_v0 = vsel %vm10717_vm7, %v429_v52, %v729_v49  ;;  %v438_v10 = vsel %vm10711_vm6, %v430_v53, %v437_v63  ;;  %v372_v63 = vld [vmem:[%s10530_s28 + $0x48] sm:$0xf]  ;;  %s10185_s23 = scalar_lea.vmem %s12569_s15, 4096  ;;  %s10271_s10 = smov [#allocation13]  }
  0xda   : > { %v720_v35 = vsel %vm10726_vm8, %v405_v26, %v719_v18  ;;  %715 = vst [vmem:[#allocation2 + $0xc] sm:$0xf] %v714_v34  ;;  %716 = vst.msk [vmem:[#allocation2 + $0x10] sm:$0xf] %vm298_vm0, %v404_v33  ;;  %v737_v11 = vsel %vm10717_vm7, %v446_v1, %v736_v56  ;;  %v469_v18 = vshll.u32 %v363_v59, 16  ;;  %v483_v23 = vshrl.u32 %v365_v7, 16  ;;  %p10186_p4 = scmp.ne.s32.totalorder %s12569_s15, %s10185_s23 }
  0xdb   : > { %721 = vst [vmem:[#allocation2 + $0x14] sm:$0x1] %v720_v35  ;;  %724 = vst [vmem:[#allocation2 + $0x18] sm:$0xf] %v723_v48  ;;  %v744_v26 = vsel %vm10717_vm7, %v463_v15, %v743_v2  ;;  %v486_v27 = vshll.u32 %v365_v7, 16  ;;  %v492_v34 = vshrl.u32 %v366_v19, 16  ;;  %v480_v40 = vor.u32 %v478_v22, %v477_v29 }
  0xdc   : > { %725 = vst.msk [vmem:[#allocation2 + $0x1c] sm:$0xf] %vm298_vm0, %v421_v47  ;;  %731 = vst [vmem:[#allocation2 + $0x24] sm:$0xf] %v730_v0  ;;  %v471_v28 = vor.u32 %v469_v18, %v10775_v20  ;;  %v10783_v31 = vrot.slane %v483_v23, 7  ;;  %v495_v35 = vshll.u32 %v366_v19, 16  ;;  %p10187_p5 = pnand %p10186_p4, %p10474_p8 }
  0xdd   : > { %732 = vst.msk [vmem:[#allocation2 + $0x28] sm:$0xf] %vm298_vm0, %v438_v10  ;;  %738 = vst [vmem:[#allocation2 + $0x30] sm:$0xf] %v737_v11  ;;  %v368_v33 = vld [vmem:[%s10530_s28 + $0x38] sm:$0xf]  ;;  %v751_v51 = vsel %vm10717_vm7, %v480_v40, %v750_v32 }
  0xde   : > { %739 = vst.msk [vmem:[#allocation2 + $0x34] sm:$0xf] %vm298_vm0, %v455_v13  ;;  %745 = vst [vmem:[#allocation2 + $0x3c] sm:$0xf] %v744_v26  ;;  %v500_v36 = vshrl.u32 %v367_v24, 16  ;;  %v503_v37 = vshll.u32 %v367_v24, 16  ;;  %v472_v39 = vsel %vm10711_vm6, %v464_v16, %v471_v28  ;;  %v488_v42 = vor.u32 %v486_v27, %v10783_v31  ;;  %p10188_p7 = pneg %p10187_p5 }
  0xdf   : > { %v481_v41 = vrot.slane %v477_v29, 4  ;;  %746 = vst.msk [vmem:[#allocation2 + $0x40] sm:$0xf] %vm298_vm0, %v472_v39  ;;  %v494_v45 = vrot.slane %v492_v34, 7  ;;  %v509_v47 = vshrl.u32 %v368_v33, 16  ;;  %v512_v52 = vshll.u32 %v368_v33, 16  ;;  %vm11098_vm12 = vmor %vm1592_vm10, %vm1593_vm11 }
  0xe0   : > { %v10794_v46 = vrot.slane %v500_v36, 7  ;;  %v371_v48 = vld [vmem:[%s10530_s28 + $0x44] sm:$0xf]  ;;  %752 = vst [vmem:[#allocation2 + $0x48] sm:$0xf] %v751_v51  ;;  %v529_v3 = vshll.u32 %v370_v44, 16  ;;  %vm11458_vm15 = vmor %vm2795_vm13, %vm2796_vm14 }
  0xe1   : > { %v10762_v9 = vld [vmem:[#allocation2 + $0xc] sm:$0xff]   ;;  %v489_v50 = vsel %vm10711_vm6, %v481_v41, %v488_v42  ;;  %v497_v55 = vor.u32 %v495_v35, %v494_v45  ;;  %v498_v56 = vrot.slane %v494_v45, 4  ;;  %v511_v59 = vrot.slane %v509_v47, 7  ;;  %v764_v2 = vld [vmem:[#allocation2 + $0x60] sm:$0xf]  ;;  %s10189_s27 = sshll.u32 %s10271_s10, 4  ;;  %s10190_s27 = int_to_ptr.vmem [resolvable:$false] %s10189_s27 }
  0xe2   : > { %8568 = vmatprep.mubr.msk.bf16.mxu0 %vm946_vm9, %v10762_v9  ;;  %753 = vst.msk [vmem:[#allocation2 + $0x4c] sm:$0xf] %vm298_vm0, %v489_v50  ;;  %v505_v58 = vor.u32 %v503_v37, %v10794_v46  ;;  %v534_v4 = vshrl.u32 %v371_v48, 16  ;;  %v10815_v7 = vrot.slane %v517_v60, 7  ;;  %v771_v11 = vld [vmem:[#allocation2 + $0x6c] sm:$0xf]  ;;  %p10192_p12 = scmp.lt.s32.totalorder %s12569_s15, %s10190_s27 }
  0xe3   : > { %v10778_v25 = vld [vmem:[#allocation2 + $0x18] sm:$0xff]   ;;  %v758_v1 = vsel %vm10717_vm7, %v497_v55, %v757_v43  ;;  %v514_v5 = vor.u32 %v512_v52, %v511_v59  ;;  %v515_v6 = vrot.slane %v511_v59, 4  ;;  %v537_v13 = vshll.u32 %v371_v48, 16  ;;  %v374_v29 = vld [vmem:[%s10530_s28 + $0x50] sm:$0xf]  ;;  %s10191_s30 = scalar_lea.vmem %s10190_s27, 8192 }
  0xe4   : > { %8569 = vmatmul.mubr.msk.bf16.vlgmr.msra.gmra.mrb[0].mxu0 %vm946_vm9, %v10778_v25  ;;  %v10797_v49 = vld [vmem:[#allocation2 + $0x24] sm:$0xff]   ;;  %v506_v0 = vsel %vm10711_vm6, %v498_v56, %v505_v58  ;;  %759 = vst [vmem:[#allocation2 + $0x54] sm:$0xf] %v758_v1  ;;  %v10819_v12 = vrot.slane %v534_v4, 7  ;;  %v373_v15 = vld [vmem:[%s10530_s28 + $0x4c] sm:$0xf]  ;;  %v522_v21 = vor.u32 %v520_v61, %v10815_v7  ;;  %p10193_p2 = scmp.lt.s32.totalorder %s10191_s30, %s10185_s23 }
  0xe5   : > { %8601 = vmatpush3.bf16.msra.mxu0 %v1169_v62  ;;  %v10803_v53 = vld [vmem:[#allocation2 + $0x30] sm:$0xff]   ;;  %8572 = vmatprep.mubr.msk.bf16.mxu0 %vm946_vm9, %v10797_v49  ;;  %v526_v62 = vshrl.u32 %v370_v44, 16  ;;  %760 = vst.msk [vmem:[#allocation2 + $0x58] sm:$0xf] %vm298_vm0, %v506_v0  ;;  %v543_v16 = vshrl.u32 %v372_v63, 16  ;;  %v546_v18 = vshll.u32 %v372_v63, 16  ;;  %v765_v22 = vsel %vm10717_vm7, %v514_v5, %v764_v2 }
  0xe6   : > { %v10822_v19 = vld [vmem:[#allocation2 + $0x3c] sm:$0xff]   ;;  %v778_v24 = vld [vmem:[#allocation2 + $0x78] sm:$0xf]  ;;  %766 = vst [vmem:[#allocation2 + $0x60] sm:$0xf] %v765_v22  ;;  %v539_v27 = vor.u32 %v537_v13, %v10819_v12  ;;  %v523_v33 = vsel %vm10711_vm6, %v515_v6, %v522_v21  ;;  %v551_v35 = vshrl.u32 %v373_v15, 16  ;;  %p10194_p1 = por %p10193_p2, %p10192_p12 }
  0xe7   : > { %v528_v10 = vrot.slane %v526_v62, 7  ;;  %v545_v28 = vrot.slane %v543_v16, 7  ;;  %v375_v32 = vld [vmem:[%s10530_s28 + $0x54] sm:$0xf]  ;;  %767 = vst.msk [vmem:[#allocation2 + $0x64] sm:$0xf] %vm298_vm0, %v523_v33 }
  0xe8   : > { %v554_v40 = vshll.u32 %v373_v15, 16  ;;  %v376_v41 = vld [vmem:[%s10530_s28 + $0x58] sm:$0xf]  ;;  %v10843_v42 = vrot.slane %v551_v35, 7  ;;  %v560_v43 = vshrl.u32 %v374_v29, 16  ;;  %v563_v44 = vshll.u32 %v374_v29, 16  ;;  %p10195_p13 = pnand %p10194_p1, %p10188_p7 }
  0xe9   : > { %v531_v23 = vor.u32 %v529_v3, %v528_v10  ;;  %v532_v26 = vrot.slane %v528_v10, 4  ;;  %v10836_v36 = vld [vmem:[#allocation2 + $0x48] sm:$0xff]   ;;  %v548_v38 = vor.u32 %v546_v18, %v545_v28  ;;  %v549_v39 = vrot.slane %v545_v28, 4  ;;  %v785_v58 = vld [vmem:[#allocation2 + $0x84] sm:$0xf] }
  0xea   : > { %v568_v45 = vshrl.u32 %v375_v32, 16  ;;  %v377_v47 = vld [vmem:[%s10530_s28 + $0x5c] sm:$0xf]  ;;  %v571_v51 = vshll.u32 %v375_v32, 16  ;;  %v556_v52 = vor.u32 %v554_v40, %v10843_v42  ;;  %v562_v55 = vrot.slane %v560_v43, 7 }
  0xeb   : > { %v772_v34 = vsel %vm10717_vm7, %v531_v23, %v771_v11  ;;  %v540_v37 = vsel %vm10711_vm6, %v532_v26, %v539_v27  ;;  %v779_v50 = vsel %vm10717_vm7, %v548_v38, %v778_v24  ;;  %v378_v59 = vld [vmem:[%s10530_s28 + $0x60] sm:$0xf]  ;;  %v577_v60 = vshrl.u32 %v376_v41, 16  ;;  %v379_v0 = vld [vmem:[%s10530_s28 + $0x64] sm:$0xf] }
  0xec   : > { %8573 = vmatmul.mubr.msk.bf16.gmra.mrb[4].mxu0 %vm946_vm9, %v10803_v53  ;;  %773 = vst [vmem:[#allocation2 + $0x6c] sm:$0xf] %v772_v34  ;;  %774 = vst.msk [vmem:[#allocation2 + $0x70] sm:$0xf] %vm298_vm0, %v540_v37  ;;  %v10846_v48 = vld [vmem:[#allocation2 + $0x54] sm:$0xff]   ;;  %v10851_v56 = vrot.slane %v568_v45, 7  ;;  %v557_v1 = vsel %vm10711_vm6, %v549_v39, %v556_v52  ;;  %v565_v2 = vor.u32 %v563_v44, %v562_v55 }
  0xed   : > { %8576 = vmatprep.mubr.msk.bf16.mxu0 %vm946_vm9, %v10822_v19  ;;  %780 = vst [vmem:[#allocation2 + $0x78] sm:$0xf] %v779_v50  ;;  %v580_v61 = vshll.u32 %v376_v41, 16  ;;  %v585_v62 = vshrl.u32 %v377_v47, 16  ;;  %v588_v63 = vshll.u32 %v377_v47, 16  ;;  %v566_v3 = vrot.slane %v562_v55, 4 }
  0xee   : > { %v573_v4 = vor.u32 %v571_v51, %v10851_v56  ;;  %v792_v5 = vld [vmem:[#allocation2 + $0x90] sm:$0xf]  ;;  %v380_v6 = vld [vmem:[%s10530_s28 + $0x68] sm:$0xf]  ;;  %781 = vst.msk [vmem:[#allocation2 + $0x7c] sm:$0xf] %vm298_vm0, %v557_v1  ;;  %v786_v18 = vsel %vm10717_vm7, %v565_v2, %v785_v58 }
  0xef   : > { %v579_v10 = vrot.slane %v577_v60, 7  ;;  %v10864_v11 = vrot.slane %v585_v62, 7  ;;  %v594_v13 = vshrl.u32 %v378_v59, 16  ;;  %v381_v15 = vld [vmem:[%s10530_s28 + $0x6c] sm:$0xf]  ;;  %v597_v21 = vshll.u32 %v378_v59, 16 }
  0xf0   : > { %v574_v16 = vsel %vm10711_vm6, %v566_v3, %v573_v4  ;;  %v10871_v22 = vld [vmem:[#allocation2 + $0x60] sm:$0xff]   ;;  %787 = vst [vmem:[#allocation2 + $0x84] sm:$0xf] %v786_v18  ;;  %v799_v27 = vld [vmem:[#allocation2 + $0x9c] sm:$0xf]  ;;  %v602_v32 = vshrl.u32 %v379_v0, 16 }
  0xf1   : > { %788 = vst.msk [vmem:[#allocation2 + $0x88] sm:$0xf] %vm298_vm0, %v574_v16  ;;  %v582_v23 = vor.u32 %v580_v61, %v579_v10  ;;  %v583_v24 = vrot.slane %v579_v10, 4  ;;  %v590_v26 = vor.u32 %v588_v63, %v10864_v11  ;;  %v596_v29 = vrot.slane %v594_v13, 7  ;;  %v382_v40 = vld [vmem:[%s10530_s28 + $0x70] sm:$0xf] }
  0xf2   : > { %v605_v33 = vshll.u32 %v379_v0, 16  ;;  %v611_v34 = vshrl.u32 %v380_v6, 16  ;;  %v614_v38 = vshll.u32 %v380_v6, 16  ;;  %v619_v39 = vshrl.u32 %v381_v15, 16  ;;  %v806_v47 = vld [vmem:[#allocation2 + $0xa8] sm:$0xf] }
  0xf3   : > { %v10875_v28 = vld [vmem:[#allocation2 + $0x6c] sm:$0xff]   ;;  %v591_v35 = vsel %vm10711_vm6, %v583_v24, %v590_v26  ;;  %v793_v37 = vsel %vm10717_vm7, %v582_v23, %v792_v5  ;;  %v599_v41 = vor.u32 %v597_v21, %v596_v29  ;;  %v600_v43 = vrot.slane %v596_v29, 4  ;;  %v383_v52 = vld [vmem:[%s10530_s28 + $0x74] sm:$0xf]  ;;  %v813_v62 = vld [vmem:[#allocation2 + $0xb4] sm:$0xf] }
  0xf4   : > { %8577 = vmatmul.mubr.msk.bf16.gmra.mrb[8].mxu0 %vm946_vm9, %v10836_v36  ;;  %794 = vst [vmem:[#allocation2 + $0x90] sm:$0xf] %v793_v37  ;;  %795 = vst.msk [vmem:[#allocation2 + $0x94] sm:$0xf] %vm298_vm0, %v591_v35  ;;  %v10883_v44 = vrot.slane %v602_v32, 7  ;;  %v613_v45 = vrot.slane %v611_v34, 7 }
  0xf5   : > { %8580 = vmatprep.mubr.msk.bf16.mxu0 %vm946_vm9, %v10846_v48  ;;  %v10887_v50 = vrot.slane %v619_v39, 7  ;;  %v622_v51 = vshll.u32 %v381_v15, 16  ;;  %v628_v55 = vshrl.u32 %v382_v40, 16  ;;  %v631_v58 = vshll.u32 %v382_v40, 16  ;;  %v384_v2 = vld [vmem:[%s10530_s28 + $0x78] sm:$0xf] }
  0xf6   : > { %v607_v59 = vor.u32 %v605_v33, %v10883_v44  ;;  %v800_v60 = vsel %vm10717_vm7, %v599_v41, %v799_v27  ;;  %v616_v61 = vor.u32 %v614_v38, %v613_v45  ;;  %v617_v63 = vrot.slane %v613_v45, 4  ;;  %v385_v3 = vld [vmem:[%s10530_s28 + $0x7c] sm:$0xf]  ;;  %v10902_v10 = vld [vmem:[#allocation2 + $0x78] sm:$0xff]   ;;  %v820_v38 = vld [vmem:[#allocation2 + $0xc0] sm:$0xf] }
  0xf7   : > { %801 = vst [vmem:[#allocation2 + $0x9c] sm:$0xf] %v800_v60  ;;  %v624_v0 = vor.u32 %v622_v51, %v10887_v50  ;;  %v630_v1 = vrot.slane %v628_v55, 7  ;;  %v636_v6 = vshrl.u32 %v383_v52, 16  ;;  %v639_v21 = vshll.u32 %v383_v52, 16 }
  0xf8   : > { %v608_v4 = vsel %vm10711_vm6, %v600_v43, %v607_v59  ;;  %v807_v5 = vsel %vm10717_vm7, %v616_v61, %v806_v47  ;;  %v10904_v13 = vld [vmem:[#allocation2 + $0x84] sm:$0xff]   ;;  %v645_v24 = vshrl.u32 %v384_v2, 16  ;;  %v648_v26 = vshll.u32 %v384_v2, 16  ;;  %v1333_v37 = vld [vmem:[#allocation7 + $0xc] sm:$0x3] }
  0xf9   : > { %802 = vst.msk [vmem:[#allocation2 + $0xa0] sm:$0xf] %vm298_vm0, %v608_v4  ;;  %v625_v15 = vsel %vm10711_vm6, %v617_v63, %v624_v0  ;;  %808 = vst [vmem:[#allocation2 + $0xa8] sm:$0xf] %v807_v5  ;;  %v633_v16 = vor.u32 %v631_v58, %v630_v1  ;;  %v634_v18 = vrot.slane %v630_v1, 4  ;;  %v10910_v23 = vrot.slane %v636_v6, 7  ;;  %9834 = vmatprep.subr.msk.bf16.mxu0 %vm995_vm2, %v1333_v37 }
  0xfa   : > { %809 = vst.msk [vmem:[#allocation2 + $0xac] sm:$0xf] %vm298_vm0, %v625_v15  ;;  %v653_v27 = vshrl.u32 %v385_v3, 16  ;;  %v656_v32 = vshll.u32 %v385_v3, 16  ;;  %v647_v34 = vrot.slane %v645_v24, 7  ;;  %v9951_v59 = vld [vmem:[#allocation2] sm:$0xff]  }
  0xfb   : > { %v814_v29 = vsel %vm10717_vm7, %v633_v16, %v813_v62  ;;  %v641_v33 = vor.u32 %v639_v21, %v10910_v23  ;;  %v10926_v45 = vld [vmem:[#allocation2 + $0x90] sm:$0xff]   ;;  %v422_v60 = vrot.slane %v10731_v30, 4  ;;  %v439_v61 = vrot.slane %v10750_v54, 4  ;;  %v726_v62 = vld [vmem:[#allocation2 + $0x20] sm:$0x1] }
  0xfc   : > { %8581 = vmatmul.mubr.msk.bf16.gmra.mrb[12].mxu0 %vm946_vm9, %v10871_v22  ;;  %815 = vst [vmem:[#allocation2 + $0xb4] sm:$0xf] %v814_v29  ;;  %v10915_v35 = vrot.slane %v653_v27, 7  ;;  %v650_v40 = vor.u32 %v648_v26, %v647_v34  ;;  %v651_v41 = vrot.slane %v647_v34, 4  ;;  %v733_v0 = vld [vmem:[#allocation2 + $0x2c] sm:$0x1] }
  0xfd   : > { %8584 = vmatprep.mubr.msk.bf16.mxu0 %vm946_vm9, %v10875_v28  ;;  %v642_v39 = vsel %vm10711_vm6, %v634_v18, %v641_v33  ;;  %v727_v63 = vsel %vm10726_vm8, %v422_v60, %v726_v62  ;;  %v734_v1 = vsel %vm10726_vm8, %v439_v61, %v733_v0  ;;  %v456_v2 = vrot.slane %v10752_v57, 4  ;;  %v10961_v3 = vld [vmem:[#allocation7 + $0x2] sm:$0x3]  ;;  %v740_v4 = vld [vmem:[#allocation2 + $0x38] sm:$0x1] }
  0xfe   : > { %v658_v43 = vor.u32 %v656_v32, %v10915_v35  ;;  %816 = vst.msk [vmem:[#allocation2 + $0xb8] sm:$0xf] %vm298_vm0, %v642_v39  ;;  %v821_v51 = vsel %vm10717_vm7, %v650_v40, %v820_v38  ;;  %728 = vst [vmem:[#allocation2 + $0x20] sm:$0x1] %v727_v63  ;;  %v473_v30 = vrot.slane %v10775_v20, 4  ;;  %v1343_v54 = vsel %vm995_vm2, %v1333_v37, 0 }
  0xff   : > { %822 = vst [vmem:[#allocation2 + $0xc0] sm:$0xf] %v821_v51  ;;  %735 = vst [vmem:[#allocation2 + $0x2c] sm:$0x1] %v734_v1  ;;  %v747_v5 = vld [vmem:[#allocation2 + $0x44] sm:$0x1]  ;;  %v741_v57 = vsel %vm10726_vm8, %v456_v2, %v740_v4 }
 0x100   : > { %v659_v47 = vsel %vm10711_vm6, %v651_v41, %v658_v43  ;;  %v10932_v52 = vld [vmem:[#allocation2 + $0x9c] sm:$0xff]   ;;  %v748_v20 = vsel %vm10726_vm8, %v473_v30, %v747_v5  ;;  %742 = vst [vmem:[#allocation2 + $0x38] sm:$0x1] %v741_v57  ;;  %v754_v6 = vld [vmem:[#allocation2 + $0x50] sm:$0x1]  ;;  %v507_v15 = vrot.slane %v10794_v46, 4 }
 0x101   : > { %823 = vst.msk [vmem:[#allocation2 + $0xc4] sm:$0xf] %vm298_vm0, %v659_v47  ;;  %v10939_v55 = vld [vmem:[#allocation2 + $0xa8] sm:$0xff]   ;;  %749 = vst [vmem:[#allocation2 + $0x44] sm:$0x1] %v748_v20  ;;  %v524_v21 = vrot.slane %v10815_v7, 4 }
 0x102   : > { %v761_v18 = vld [vmem:[#allocation2 + $0x5c] sm:$0x1]  ;;  %v768_v24 = vld [vmem:[#allocation2 + $0x68] sm:$0x1]  ;;  %v541_v46 = vrot.slane %v10819_v12, 4  ;;  %v558_v29 = vrot.slane %v10843_v42, 4 }
 0x103   : > { %v769_v26 = vsel %vm10726_vm8, %v524_v21, %v768_v24  ;;  %v775_v27 = vld [vmem:[#allocation2 + $0x74] sm:$0x1]  ;;  %v782_v32 = vld [vmem:[#allocation2 + $0x80] sm:$0x1]  ;;  %v575_v33 = vrot.slane %v10851_v56, 4  ;;  %v592_v37 = vrot.slane %v10864_v11, 4 }
 0x104   : > { %8585 = vmatmul.mubr.msk.bf16.gmra.mrb[16].mxu0 %vm946_vm9, %v10902_v10  ;;  %770 = vst [vmem:[#allocation2 + $0x68] sm:$0x1] %v769_v26  ;;  %v776_v7 = vsel %vm10726_vm8, %v541_v46, %v775_v27  ;;  %v783_v12 = vsel %vm10726_vm8, %v558_v29, %v782_v32  ;;  %v789_v34 = vld [vmem:[#allocation2 + $0x8c] sm:$0x1]  ;;  %v796_v42 = vld [vmem:[#allocation2 + $0x98] sm:$0x1] }
 0x105   : > { %8588 = vmatprep.mubr.msk.bf16.mxu0 %vm946_vm9, %v10904_v13  ;;  %v10941_v58 = vld [vmem:[#allocation2 + $0xb4] sm:$0xff]   ;;  %777 = vst [vmem:[#allocation2 + $0x74] sm:$0x1] %v776_v7  ;;  %784 = vst [vmem:[#allocation2 + $0x80] sm:$0x1] %v783_v12  ;;  %v790_v38 = vsel %vm10726_vm8, %v575_v33, %v789_v34  ;;  %v797_v39 = vsel %vm10726_vm8, %v592_v37, %v796_v42  ;;  %v609_v40 = vrot.slane %v10883_v44, 4 }
 0x106   : > { %791 = vst [vmem:[#allocation2 + $0x8c] sm:$0x1] %v790_v38  ;;  %798 = vst [vmem:[#allocation2 + $0x98] sm:$0x1] %v797_v39  ;;  %v803_v56 = vld [vmem:[#allocation2 + $0xa4] sm:$0x1] }
 0x107   : > { %v804_v11 = vsel %vm10726_vm8, %v609_v40, %v803_v56  ;;  %v626_v41 = vrot.slane %v10887_v50, 4  ;;  %v810_v43 = vld [vmem:[#allocation2 + $0xb0] sm:$0x1]  ;;  %v643_v47 = vrot.slane %v10910_v23, 4  ;;  %v817_v51 = vld [vmem:[#allocation2 + $0xbc] sm:$0x1] }
 0x108   : > { %v10947_v14 = vld [vmem:[#allocation2 + $0xc0] sm:$0xff]   ;;  %805 = vst [vmem:[#allocation2 + $0xa4] sm:$0x1] %v804_v11  ;;  %v2078_v50 = vsel %vm995_vm2, %v10961_v3, 0  ;;  %v11033_v23 = vld [vmem:[#allocation7 + $0x8] sm:$0x3] }
 0x109   : > { %v811_v44 = vsel %vm10726_vm8, %v626_v41, %v810_v43  ;;  %v1541_v61 = vld [vmem:[#allocation2 + $0xc] sm:$0xf]  ;;  %v1544_v63 = vld [vmem:[#allocation2 + $0x18] sm:$0xf]  ;;  %v11065_v2 = vld [vmem:[#allocation2 + $0x8] sm:$0x1] }
 0x10a   : > { %812 = vst [vmem:[#allocation2 + $0xb0] sm:$0x1] %v811_v44  ;;  %v1620_v62 = vshrl.u32 %v1541_v61, 16  ;;  %v1644_v4 = vshrl.u32 %v1544_v63, 16  ;;  %v1647_v5 = vshll.u32 %v1544_v63, 16  ;;  %vm4174_vm0 = vcmask 1043456  }
 0x10b   : > { %v11078_v26 = vld [vmem:[#allocation2 + $0x14] sm:$0x1]  ;;  %v824_v7 = vld [vmem:[#allocation2 + $0xc8] sm:$0x1]  ;;  %v1550_v38 = vld [vmem:[#allocation2 + $0x30] sm:$0xf] }
 0x10c   : > { %8589 = vmatmul.mubr.msk.bf16.gmra.mrb[20].mxu0 %vm946_vm9, %v10926_v45  ;;  %v1646_v24 = vrot.slane %v1644_v4, 4  ;;  %v1649_v46 = vrot.slane %v1647_v5, 5  ;;  %v11082_v12 = vld [vmem:[#allocation2 + $0x28] sm:$0xf]  ;;  %v11090_v39 = vld [vmem:[#allocation2 + $0x34] sm:$0xf] }
 0x10d   : > { %8592 = vmatprep.mubr.msk.bf16.mxu0 %vm946_vm9, %v10932_v52  ;;  %v1639_v56 = vshll.u32 %v11078_v26, 16  ;;  %v11094_v11 = vld [vmem:[#allocation2 + $0x20] sm:$0x1]  ;;  %v1681_v44 = vshrl.u32 %v11082_v12, 16  ;;  %v1553_v63 = vld [vmem:[#allocation2 + $0x3c] sm:$0xf] }
 0x10e   : > { %v1650_v17 = vor.u32 %v1649_v46, %v1646_v24  ;;  %v11119_v4 = vld [vmem:[#allocation2 + $0x2c] sm:$0x1]  ;;  %v11288_v8 = vld [vmem:[#allocation2 + $0x98] sm:$0x1]  ;;  %vm4180_vm1 = vcmask 1040384  }
 0x10f   : > { %v1687_v46 = vshll.u32 %v11119_v4, 16  ;;  %12689 = vst [vmem:[#allocation26_spill] sm:$0xff] %v11288_v8  ;;  %vm11709_vm4 = vmand %vm4180_vm1, %vm386_vm3 }
 0x114   : > { %8593 = vmatmul.mubr.msk.bf16.gmra.mrb[24].mxu0 %vm946_vm9, %v10939_v55 }
 0x115   : > { %8596 = vmatprep.mubr.msk.bf16.mxu0 %vm946_vm9, %v10941_v58 }
 0x11c   : > { %8597 = vmatmul.mubr.msk.bf16.gmra.mrb[28].mxu0 %vm946_vm9, %v10947_v14 }
 0x11d   : > { %8602 = vmatprep.mubr.msk.bf16.mxu0 %vm946_vm9, %v9951_v59  ;;  %v818_v59 = vsel %vm10726_vm8, %v643_v47, %v817_v51  ;;  %v1677_v47 = vshll.u32 %v11082_v12, 16  ;;  %v1692_v51 = vshrl.u32 %v1550_v38, 16 }
 0x11e   : > { %819 = vst [vmem:[#allocation2 + $0xbc] sm:$0x1] %v818_v59  ;;  %v1695_v59 = vshll.u32 %v1550_v38, 16 }
 0x11f   : > { %v1694_v5 = vrot.slane %v1692_v51, 4 }
 0x124   : > { %8603 = vmatmul.mubr.msk.bf16.vlgmr.msra.gmra.mrb[0].mxu0 %vm946_vm9, %v10762_v9  ;;  %v490_v9 = vrot.slane %v10783_v31, 4  ;;  %v762_v31 = vsel %vm10726_vm8, %v507_v15, %v761_v18  ;;  %v1547_v15 = vld [vmem:[#allocation2 + $0x24] sm:$0xf] }
 0x125   : > { %8635 = vmatpush3.bf16.msra.mxu0 %v1343_v54  ;;  %8606 = vmatprep.mubr.msk.bf16.mxu0 %vm946_vm9, %v10778_v25  ;;  %763 = vst [vmem:[#allocation2 + $0x5c] sm:$0x1] %v762_v31  ;;  %v1671_v27 = vshll.u32 %v1547_v15, 16 }
 0x126   : > { %9835 = vmatprep.subr.msk.bf16.mxu0 %vm995_vm2, %v10961_v3  ;;  %v755_v16 = vsel %vm10726_vm8, %v490_v9, %v754_v6  ;;  %v11069_v3 = vld [vmem:[#allocation2 + $0x1c] sm:$0xf]  ;;  %v1622_v9 = vrot.slane %v1620_v62, 4 }
 0x127   : > { %756 = vst [vmem:[#allocation2 + $0x50] sm:$0x1] %v755_v16  ;;  %v1653_v16 = vshll.u32 %v11069_v3, 16  ;;  %v1657_v18 = vshrl.u32 %v11069_v3, 16  ;;  %v1673_v43 = vrot.slane %v1671_v27, 5  ;;  %v9952_v27 = vld [vmem:[#allocation2 + $0xcc] sm:$0xff]  }
 0x129   : > { %v11088_v37 = vrot.slane %v1653_v16, 5  ;;  %v1659_v42 = vrot.slane %v1657_v18, 4  ;;  %v11128_v16 = vld [vmem:[#allocation2 + $0x38] sm:$0x1] }
 0x12c   : > { %8607 = vmatmul.mubr.msk.bf16.gmra.mrb[4].mxu0 %vm946_vm9, %v10797_v49 }
 0x12d   : > { %8610 = vmatprep.mubr.msk.bf16.mxu0 %vm946_vm9, %v10803_v53 }
 0x134   : > { %8611 = vmatmul.mubr.msk.bf16.gmra.mrb[8].mxu0 %vm946_vm9, %v10822_v19 }
 0x135   : > { %8614 = vmatprep.mubr.msk.bf16.mxu0 %vm946_vm9, %v10836_v36 }
 0x13c   : > { %8615 = vmatmul.mubr.msk.bf16.gmra.mrb[12].mxu0 %vm946_vm9, %v10846_v48 }
 0x13d   : > { %8618 = vmatprep.mubr.msk.bf16.mxu0 %vm946_vm9, %v10871_v22 }
 0x144   : > { %8619 = vmatmul.mubr.msk.bf16.gmra.mrb[16].mxu0 %vm946_vm9, %v10875_v28 }
 0x145   : > { %8622 = vmatprep.mubr.msk.bf16.mxu0 %vm946_vm9, %v10902_v10 }
 0x14c   : > { %8623 = vmatmul.mubr.msk.bf16.gmra.mrb[20].mxu0 %vm946_vm9, %v10904_v13 }
 0x14d   : > { %8626 = vmatprep.mubr.msk.bf16.mxu0 %vm946_vm9, %v10926_v45 }
 0x154   : > { %8627 = vmatmul.mubr.msk.bf16.gmra.mrb[24].mxu0 %vm946_vm9, %v10932_v52 }
 0x155   : > { %8630 = vmatprep.mubr.msk.bf16.mxu0 %vm946_vm9, %v10939_v55 }
 0x15c   : > { %8631 = vmatmul.mubr.msk.bf16.gmra.mrb[28].mxu0 %vm946_vm9, %v10941_v58 }
 0x15d   : > { %8636 = vmatprep.mubr.msk.bf16.mxu0 %vm946_vm9, %v10778_v25  ;;  %v1538_v25 = vld [vmem:[#allocation2] sm:$0xf] }
 0x164   : > { %8637 = vmatmul.mubr.msk.bf16.vlgmr.msra.gmra.mrb[0].mxu0 %vm946_vm9, %v10797_v49  ;;  %v11053_v49 = vld [vmem:[#allocation2 + $0x4] sm:$0xf] }
 0x165   : > { %8669 = vmatpush3.bf16.msra.mxu0 %v2078_v50  ;;  %8640 = vmatprep.mubr.msk.bf16.mxu0 %vm946_vm9, %v10803_v53  ;;  %v1596_v53 = vshrl.u32 %v1538_v25, 16  ;;  %v1605_v60 = vshll.u32 %v11053_v49, 16  ;;  %v1701_v50 = vshll.u32 %v11090_v39, 16 }
 0x166   : > { %9836 = vmatprep.subr.msk.bf16.mxu0 %vm995_vm2, %v11033_v23 }
 0x167   : > { %v11061_v0 = vrot.slane %v1605_v60, 5  ;;  %v1663_v60 = vshll.u32 %v11094_v11, 16 }
 0x16c   : > { %8641 = vmatmul.mubr.msk.bf16.gmra.mrb[4].mxu0 %vm946_vm9, %v10822_v19  ;;  %v1599_v19 = vshll.u32 %v1538_v25, 16  ;;  %v1705_v25 = vshrl.u32 %v11090_v39, 16 }
 0x16d   : > { %8644 = vmatprep.mubr.msk.bf16.mxu0 %vm946_vm9, %v10836_v36  ;;  %v1609_v36 = vshrl.u32 %v11053_v49, 16 }
 0x16f   : > { %v1611_v1 = vrot.slane %v1609_v36, 4 }
 0x171   : > { %v1612_v20 = vor.u32 %v1611_v1, %v11061_v0  ;;  %v11113_v1 = vrot.slane %v1677_v47, 5  ;;  %v2306_v47 = vsel %vm995_vm2, %v11033_v23, 0 }
 0x173   : > { %v1613_v32 = vrot.slane %v1612_v20, 4 }
 0x174   : > { %8645 = vmatmul.mubr.msk.bf16.gmra.mrb[8].mxu0 %vm946_vm9, %v10846_v48  ;;  %v11057_v48 = vld [vmem:[#allocation2 + $0x10] sm:$0xf] }
 0x175   : > { %8648 = vmatprep.mubr.msk.bf16.mxu0 %vm946_vm9, %v10871_v22  ;;  %v1623_v22 = vshll.u32 %v1541_v61, 16  ;;  %v1629_v30 = vshll.u32 %v11057_v48, 16  ;;  %v1633_v54 = vshrl.u32 %v11057_v48, 16 }
 0x177   : > { %v1625_v6 = vrot.slane %v1623_v22, 5  ;;  %v11076_v21 = vrot.slane %v1629_v30, 5  ;;  %v1635_v31 = vrot.slane %v1633_v54, 4  ;;  %v1641_v22 = vrot.slane %v1639_v56, 5  ;;  %v11115_v54 = vld [vmem:[#allocation2 + $0x40] sm:$0xf] }
 0x178   : > { %v1683_v30 = vrot.slane %v1681_v44, 4  ;;  %v1729_v18 = vshrl.u32 %v11115_v54, 16 }
 0x179   : > { %v1626_v34 = vor.u32 %v1625_v6, %v1622_v9  ;;  %v1636_v40 = vor.u32 %v1635_v31, %v11076_v21  ;;  %v1665_v9 = vrot.slane %v1663_v60, 5  ;;  %v1716_v6 = vshrl.u32 %v1553_v63, 16 }
 0x17a   : > { %v1731_v56 = vrot.slane %v1729_v18, 4 }
 0x17b   : > { %v1637_v62 = vrot.slane %v1636_v40, 4  ;;  %v1718_v38 = vrot.slane %v1716_v6, 4 }
 0x17c   : > { %8649 = vmatmul.mubr.msk.bf16.gmra.mrb[12].mxu0 %vm946_vm9, %v10875_v28  ;;  %v1598_v28 = vrot.slane %v1596_v53, 4  ;;  %v1627_v53 = vrot.slane %v1626_v34, 4 }
 0x17d   : > { %8652 = vmatprep.mubr.msk.bf16.mxu0 %vm946_vm9, %v10902_v10  ;;  %v1601_v10 = vrot.slane %v1599_v19, 5  ;;  %v1660_v19 = vor.u32 %v1659_v42, %v11088_v37  ;;  %v1642_v24 = vsel %vm11098_vm12, %v1637_v62, %v1641_v22  ;;  %v1711_v42 = vshll.u32 %v11128_v16, 16  ;;  %v11166_v62 = vld [vmem:[#allocation2 + $0x58] sm:$0xf]  ;;  %v1562_v22 = vld [vmem:[#allocation2 + $0x60] sm:$0xf] }
 0x17e   : > { %v1777_v6 = vshrl.u32 %v11166_v62, 16 }
 0x17f   : > { %v1602_v57 = vor.u32 %v1601_v10, %v1598_v28  ;;  %v1651_v28 = vrot.slane %v1650_v17, 4  ;;  %v1661_v20 = vrot.slane %v1660_v19, 4  ;;  %v1559_v19 = vld [vmem:[#allocation2 + $0x54] sm:$0xf] }
 0x181   : > { %v1603_v29 = vrot.slane %v1602_v57, 4  ;;  %v1707_v57 = vrot.slane %v1705_v25, 4  ;;  %v1666_v34 = vsel %vm11098_vm12, %v1661_v20, %v1665_v9  ;;  %v1764_v20 = vshrl.u32 %v1559_v19, 16 }
 0x182   : > { %v1767_v9 = vshll.u32 %v1559_v19, 16 }
 0x183   : > { %v1608_v36 = vsel %vm11098_vm12, %v1603_v29, %v11061_v0  ;;  %v1697_v0 = vrot.slane %v1695_v59, 5 }
 0x184   : > { %8653 = vmatmul.mubr.msk.bf16.gmra.mrb[16].mxu0 %vm946_vm9, %v10904_v13  ;;  %v660_v13 = vrot.slane %v10915_v35, 4  ;;  %v1668_v35 = vshrl.u32 %v1547_v15, 16  ;;  %v1719_v15 = vshll.u32 %v1553_v63, 16 }
 0x185   : > { %8656 = vmatprep.mubr.msk.bf16.mxu0 %vm946_vm9, %v10926_v45  ;;  %v1615_v45 = vshll.u32 %v11065_v2, 16  ;;  %v1698_v29 = vor.u32 %v1697_v0, %v1694_v5  ;;  %v11169_v5 = vld [vmem:[#allocation2 + $0x64] sm:$0xf] }
 0x186   : > { %v825_v33 = vsel %vm10726_vm8, %v660_v13, %v824_v7  ;;  %v1670_v41 = vrot.slane %v1668_v35, 4  ;;  %v11121_v13 = vrot.slane %v1701_v50, 5  ;;  %v1556_v35 = vld [vmem:[#allocation2 + $0x48] sm:$0xf]  ;;  %v1689_v50 = vrot.slane %v1687_v46, 5 }
 0x187   : > { %826 = vst [vmem:[#allocation2 + $0xc8] sm:$0x1] %v825_v33  ;;  %v11142_v33 = vld [vmem:[#allocation2 + $0x4c] sm:$0xf]  ;;  %v1740_v17 = vshrl.u32 %v1556_v35, 16  ;;  %v1699_v25 = vrot.slane %v1698_v29, 4 }
 0x188   : > { %v1674_v10 = vor.u32 %v1673_v43, %v1670_v41  ;;  %v1743_v41 = vshll.u32 %v1556_v35, 16  ;;  %v1749_v44 = vshll.u32 %v11142_v33, 16  ;;  %v1753_v51 = vshrl.u32 %v11142_v33, 16 }
 0x18a   : > { %v11138_v7 = vrot.slane %v1674_v10, 4  ;;  %v1742_v10 = vrot.slane %v1740_v17, 4  ;;  %v11171_v0 = vrot.slane %v1749_v44, 5 }
 0x18c   : > { %8657 = vmatmul.mubr.msk.bf16.gmra.mrb[20].mxu0 %vm946_vm9, %v10932_v52  ;;  %v1617_v52 = vrot.slane %v1615_v45, 5  ;;  %v1632_v45 = vsel %vm11098_vm12, %v1627_v53, %v11076_v21  ;;  %v1684_v21 = vor.u32 %v1683_v30, %v11113_v1  ;;  %v1680_v23 = vsel %vm11098_vm12, %v11138_v7, %v11113_v1  ;;  %v11184_v7 = vld [vmem:[#allocation2 + $0x50] sm:$0x1] }
 0x18d   : > { %8660 = vmatprep.mubr.msk.bf16.mxu0 %vm946_vm9, %v10939_v55  ;;  %v11151_v43 = vcombine.low %v1632_v45, %v1642_v24  ;;  %v1745_v30 = vrot.slane %v1743_v41, 5  ;;  %v1773_v1 = vshll.u32 %v11166_v62, 16  ;;  %v1791_v45 = vshll.u32 %v1562_v22, 16 }
 0x18e   : > { %v1618_v61 = vsel %vm11098_vm12, %v1613_v32, %v1617_v52  ;;  %v1708_v32 = vor.u32 %v1707_v57, %v11121_v13  ;;  %v11147_v52 = vld [vmem:[#allocation2 + $0x44] sm:$0x1]  ;;  %v1685_v59 = vrot.slane %v1684_v21, 4  ;;  %v1755_v57 = vrot.slane %v1753_v51, 4  ;;  %v1565_v21 = vld [vmem:[#allocation2 + $0x6c] sm:$0xf] }
 0x18f   : > { %v7830_v31 = vcombine.low %v1608_v36, %v1618_v61  ;;  %v1713_v36 = vrot.slane %v1711_v42, 5  ;;  %v1735_v61 = vshll.u32 %v11147_v52, 16  ;;  %v1801_v24 = vshrl.u32 %v11169_v5, 16 }
 0x190   : > { %v1709_v53 = vrot.slane %v1708_v32, 4  ;;  %v1746_v29 = vor.u32 %v1745_v30, %v1742_v10  ;;  %v1756_v32 = vor.u32 %v1755_v57, %v11171_v0  ;;  %v1769_v42 = vrot.slane %v1767_v9, 5  ;;  %v1568_v9 = vld [vmem:[#allocation2 + $0x78] sm:$0xf] }
 0x191   : > { %v1737_v18 = vrot.slane %v1735_v61, 5  ;;  %v1793_v41 = vrot.slane %v1791_v45, 5  ;;  %v1759_v44 = vshll.u32 %v11184_v7, 16  ;;  %v1815_v19 = vshll.u32 %v1565_v21, 16 }
 0x192   : > { %v1714_v46 = vsel %vm11098_vm12, %v1709_v53, %v1713_v36  ;;  %v11202_v53 = vld [vmem:[#allocation2 + $0x5c] sm:$0x1]  ;;  %v1747_v10 = vrot.slane %v1746_v29, 4  ;;  %v1757_v30 = vrot.slane %v1756_v32, 4  ;;  %v11229_v29 = vld [vmem:[#allocation2 + $0x74] sm:$0x1] }
 0x193   : > { %12684 = vst [vmem:[#allocation21_spill] sm:$0xff] %v11229_v29 }
 0x194   : > { %8661 = vmatmul.mubr.msk.bf16.gmra.mrb[24].mxu0 %vm946_vm9, %v10941_v58  ;;  %v1725_v58 = vshll.u32 %v11115_v54, 16 }
 0x195   : > { %8664 = vmatprep.mubr.msk.bf16.mxu0 %vm946_vm9, %v10947_v14  ;;  %v1656_v14 = vsel %vm11098_vm12, %v1651_v28, %v11088_v37  ;;  %v1721_v37 = vrot.slane %v1719_v15, 5  ;;  %v1788_v15 = vshrl.u32 %v1562_v22, 16 }
 0x196   : > { %v11149_v40 = vrot.slane %v1725_v58, 5  ;;  %v11159_v60 = vcombine.low %v1656_v14, %v1666_v34  ;;  %v1690_v58 = vsel %vm11098_vm12, %v1685_v59, %v1689_v50  ;;  %v1704_v14 = vsel %vm11098_vm12, %v1699_v25, %v11121_v13 }
 0x197   : > { %v1722_v63 = vor.u32 %v1721_v37, %v1718_v38  ;;  %v1766_v34 = vrot.slane %v1764_v20, 4  ;;  %v11187_v38 = vld [vmem:[#allocation2 + $0x70] sm:$0xf]  ;;  %v11189_v37 = vld [vmem:[#allocation7 + $0xe] sm:$0x3]  ;;  %v11193_v13 = vrot.slane %v1773_v1, 5  ;;  %v11200_v25 = vcombine.low %v1680_v23, %v1690_v58 }
 0x198   : > { %v1732_v28 = vor.u32 %v1731_v56, %v11149_v40  ;;  %12682 = vst [vmem:[#allocation19_spill] sm:$0xff] %v11187_v38  ;;  %v1779_v56 = vrot.slane %v1777_v6, 4  ;;  %v1790_v17 = vrot.slane %v1788_v15, 4  ;;  %v1803_v59 = vrot.slane %v1801_v24, 4  ;;  %v11220_v58 = vld [vmem:[#allocation2 + $0x7c] sm:$0xf] }
 0x199   : > { %v1723_v35 = vrot.slane %v1722_v63, 4  ;;  %v1812_v50 = vshrl.u32 %v1565_v21, 16  ;;  %v1821_v36 = vshll.u32 %v11187_v38, 16  ;;  %v1825_v61 = vshrl.u32 %v11187_v38, 16  ;;  %12683 = vst [vmem:[#allocation20_spill] sm:$0xff] %v11220_v58 }
 0x19a   : > { %v1770_v63 = vor.u32 %v1769_v42, %v1766_v34  ;;  %v1780_v57 = vor.u32 %v1779_v56, %v11193_v13  ;;  %v1794_v20 = vor.u32 %v1793_v41, %v1790_v17  ;;  %v1761_v1 = vrot.slane %v1759_v44, 5  ;;  %v11316_v38 = vld [vmem:[#allocation2 + $0xb8] sm:$0xf] }
 0x19b   : > { %v1728_v22 = vsel %vm11098_vm12, %v1723_v35, %v11149_v40  ;;  %v1783_v6 = vshll.u32 %v11202_v53, 16  ;;  %v1814_v45 = vrot.slane %v1812_v50, 4  ;;  %v1827_v24 = vrot.slane %v1825_v61, 4  ;;  %v11241_v61 = vld [vmem:[#allocation2 + $0x88] sm:$0xf] }
 0x19c   : > { %8665 = vmatmul.mubr.msk.bf16.gmra.mrb[28].mxu0 %vm946_vm9, %v9952_v27  ;;  %v1733_v27 = vrot.slane %v1732_v28, 4  ;;  %v11215_v28 = vld [vmem:[#allocation2 + $0x68] sm:$0x1]  ;;  %v1839_v35 = vshll.u32 %v1568_v9, 16  ;;  %v1795_v21 = vrot.slane %v1794_v20, 4  ;;  %v1845_v32 = vshll.u32 %v11220_v58, 16 }
 0x19d   : > { %8670 = vmatprep.mubr.msk.bf16.mxu0 %vm946_vm9, %v7830_v31  ;;  %v1797_v31 = vshll.u32 %v11169_v5, 16  ;;  %v1807_v40 = vshll.u32 %v11215_v28, 16  ;;  %v1849_v34 = vshrl.u32 %v11220_v58, 16  ;;  %v1752_v42 = vsel %vm11098_vm12, %v1747_v10, %v11171_v0  ;;  %12685 = vst [vmem:[#allocation22_spill] sm:$0xff] %v11241_v61 }
 0x19e   : > { %v1738_v23 = vsel %vm11098_vm12, %v1733_v27, %v1737_v18  ;;  %v1817_v18 = vrot.slane %v1815_v19, 5  ;;  %v1762_v56 = vsel %vm11098_vm12, %v1757_v30, %v1761_v1  ;;  %v1781_v17 = vrot.slane %v1780_v57, 4  ;;  %v11254_v1 = vld [vmem:[#allocation2 + $0x94] sm:$0xf] }
 0x19f   : > { %v11198_v51 = vrot.slane %v1797_v31, 5  ;;  %v11223_v31 = vrot.slane %v1821_v36, 5  ;;  %v11227_v27 = vcombine.low %v1728_v22, %v1738_v23  ;;  %v1785_v41 = vrot.slane %v1783_v6, 5  ;;  %v1571_v36 = vld [vmem:[#allocation2 + $0x84] sm:$0xf]  ;;  %12686 = vst [vmem:[#allocation23_spill] sm:$0xff] %v11254_v1 }
 0x1a0   : > { %v1818_v50 = vor.u32 %v1817_v18, %v1814_v45  ;;  %v1831_v23 = vshll.u32 %v11229_v29, 16  ;;  %v11247_v10 = vcombine.low %v1752_v42, %v1762_v56  ;;  %v11252_v57 = vrot.slane %v1845_v32, 5  ;;  %v11256_v6 = vld [vmem:[#allocation2 + $0x80] sm:$0x1] }
 0x1a1   : > { %v1804_v15 = vor.u32 %v1803_v59, %v11198_v51  ;;  %v1809_v59 = vrot.slane %v1807_v40, 5  ;;  %v1828_v19 = vor.u32 %v1827_v24, %v11223_v31  ;;  %v1800_v30 = vsel %vm11098_vm12, %v1795_v21, %v11198_v51  ;;  %12687 = vst [vmem:[#allocation24_spill] sm:$0xff] %v11256_v6 }
 0x1a2   : > { %v1851_v20 = vrot.slane %v1849_v34, 4  ;;  %v1869_v45 = vshll.u32 %v11241_v61, 16  ;;  %v1873_v40 = vshrl.u32 %v11241_v61, 16  ;;  %v1786_v18 = vsel %vm11098_vm12, %v1781_v17, %v1785_v41 }
 0x1a3   : > { %v1805_v44 = vrot.slane %v1804_v15, 4  ;;  %v1860_v15 = vshrl.u32 %v1571_v36, 16  ;;  %v1819_v24 = vrot.slane %v1818_v50, 4  ;;  %v1855_v42 = vshll.u32 %v11256_v6, 16 }
 0x1a4   : > { %8671 = vmatmul.mubr.msk.bf16.vlgmr.msra.gmra.mrb[0].mxu0 %vm946_vm9, %v11151_v43  ;;  %v1852_v34 = vor.u32 %v1851_v20, %v11252_v57  ;;  %v1893_v56 = vshll.u32 %v11254_v1, 16  ;;  %v1897_v17 = vshrl.u32 %v11254_v1, 16  ;;  %v1875_v50 = vrot.slane %v1873_v40, 4  ;;  %v1577_v40 = vld [vmem:[#allocation2 + $0x9c] sm:$0xf] }
 0x1a5   : > { %8703 = vmatpush3.bf16.msra.mxu0 %v2306_v47  ;;  %8674 = vmatprep.mubr.msk.bf16.mxu0 %vm946_vm9, %v11159_v60  ;;  %v11208_v47 = vcombine.low %v1704_v14, %v1714_v46  ;;  %v1771_v14 = vrot.slane %v1770_v63, 4  ;;  %v1836_v46 = vshrl.u32 %v1568_v9, 16  ;;  %v1841_v63 = vrot.slane %v1839_v35, 5  ;;  %v1574_v9 = vld [vmem:[#allocation2 + $0x90] sm:$0xf] }
 0x1a6   : > { %9837 = vmatprep.subr.msk.bf16.mxu0 %vm995_vm2, %v11189_v37  ;;  %v1810_v51 = vsel %vm11098_vm12, %v1805_v44, %v1809_v59  ;;  %v1884_v21 = vshrl.u32 %v1574_v9, 16  ;;  %v1887_v32 = vshll.u32 %v1574_v9, 16  ;;  %v1862_v41 = vrot.slane %v1860_v15, 4 }
 0x1a7   : > { %v1776_v22 = vsel %vm11098_vm12, %v1771_v14, %v11193_v13  ;;  %v1838_v0 = vrot.slane %v1836_v46, 4  ;;  %v1863_v13 = vshll.u32 %v1571_v36, 16  ;;  %v1829_v14 = vrot.slane %v1828_v19, 4 }
 0x1a8   : > { %v1833_v46 = vrot.slane %v1831_v23, 5  ;;  %v11272_v59 = vrot.slane %v1869_v45, 5  ;;  %v11274_v19 = vcombine.low %v1776_v22, %v1786_v18  ;;  %v11276_v36 = vcombine.low %v1800_v30, %v1810_v51 }
 0x1a9   : > { %v1842_v35 = vor.u32 %v1841_v63, %v1838_v0  ;;  %v1865_v44 = vrot.slane %v1863_v13, 5  ;;  %v1824_v23 = vsel %vm11098_vm12, %v1819_v24, %v11223_v31  ;;  %v11281_v0 = vld [vmem:[#allocation2 + $0x8c] sm:$0x1]  ;;  %v1886_v63 = vrot.slane %v1884_v21, 4  ;;  %v11290_v31 = vld [vmem:[#allocation2 + $0xa0] sm:$0xf] }
 0x1aa   : > { %12688 = vst [vmem:[#allocation25_spill] sm:$0xff] %v11281_v0  ;;  %v1889_v20 = vrot.slane %v1887_v32, 5  ;;  %v1834_v9 = vsel %vm11098_vm12, %v1829_v14, %v1833_v46  ;;  %v11285_v13 = vrot.slane %v1893_v56, 5  ;;  %v1899_v45 = vrot.slane %v1897_v17, 4  ;;  %12690 = vst [vmem:[#allocation27_spill] sm:$0xff] %v11290_v31 }
 0x1ab   : > { %v1843_v15 = vrot.slane %v1842_v35, 4  ;;  %v1853_v22 = vrot.slane %v1852_v34, 4  ;;  %v1857_v18 = vrot.slane %v1855_v42, 5  ;;  %v1866_v30 = vor.u32 %v1865_v44, %v1862_v41  ;;  %v1580_v35 = vld [vmem:[#allocation2 + $0xa8] sm:$0xf] }
 0x1ac   : > { %8675 = vmatmul.mubr.msk.bf16.gmra.mrb[4].mxu0 %vm946_vm9, %v11200_v25  ;;  %v1876_v51 = vor.u32 %v1875_v50, %v11272_v59  ;;  %v1879_v24 = vshll.u32 %v11281_v0, 16  ;;  %v11293_v21 = vcombine.low %v1824_v23, %v1834_v9  ;;  %v1890_v32 = vor.u32 %v1889_v20, %v1886_v63  ;;  %v11295_v56 = vld [vmem:[#allocation2 + $0xac] sm:$0xf] }
 0x1ad   : > { %8678 = vmatprep.mubr.msk.bf16.mxu0 %vm946_vm9, %v11208_v47  ;;  %v1908_v14 = vshrl.u32 %v1577_v40, 16  ;;  %v1911_v46 = vshll.u32 %v1577_v40, 16  ;;  %12691 = vst [vmem:[#allocation28_spill] sm:$0xff] %v11295_v56  ;;  %v1900_v34 = vor.u32 %v1899_v45, %v11285_v13  ;;  %v1903_v42 = vshll.u32 %v11288_v8, 16 }
 0x1ae   : > { %v1917_v17 = vshll.u32 %v11290_v31, 16  ;;  %v1921_v41 = vshrl.u32 %v11290_v31, 16  ;;  %v1848_v44 = vsel %vm11098_vm12, %v1843_v15, %v11252_v57  ;;  %v1858_v50 = vsel %vm11098_vm12, %v1853_v22, %v1857_v18  ;;  %v11314_v15 = vld [vmem:[#allocation2 + $0xa4] sm:$0x1]  ;;  %v1583_v22 = vld [vmem:[#allocation2 + $0xb4] sm:$0xf] }
 0x1af   : > { %v1867_v23 = vrot.slane %v1866_v30, 4  ;;  %v1877_v63 = vrot.slane %v1876_v51, 4  ;;  %v1932_v20 = vshrl.u32 %v1580_v35, 16  ;;  %v1935_v9 = vshll.u32 %v1580_v35, 16  ;;  %12692 = vst [vmem:[#allocation29_spill] sm:$0xff] %v11314_v15 }
 0x1b0   : > { %v1941_v45 = vshll.u32 %v11295_v56, 16  ;;  %v1945_v40 = vshrl.u32 %v11295_v56, 16  ;;  %v1881_v8 = vrot.slane %v1879_v24, 5  ;;  %v1891_v31 = vrot.slane %v1890_v32, 4  ;;  %v11342_v56 = vld [vmem:[#allocation2 + $0xbc] sm:$0x1] }
 0x1b1   : > { %v1910_v0 = vrot.slane %v1908_v14, 4  ;;  %v1913_v1 = vrot.slane %v1911_v46, 5  ;;  %v1901_v61 = vrot.slane %v1900_v34, 4  ;;  %v1905_v6 = vrot.slane %v1903_v42, 5  ;;  %v11326_v46 = vld [vmem:[#allocation2 + $0xb0] sm:$0x1] }
 0x1b2   : > { %v1919_v29 = vrot.slane %v1917_v17, 5  ;;  %v1923_v58 = vrot.slane %v1921_v41, 4  ;;  %v11312_v57 = vcombine.low %v1848_v44, %v1858_v50  ;;  %v1934_v18 = vrot.slane %v1932_v20, 4 }
 0x1b3   : > { %v1937_v30 = vrot.slane %v1935_v9, 5  ;;  %v1943_v51 = vrot.slane %v1941_v45, 5  ;;  %v1947_v35 = vrot.slane %v1945_v40, 4  ;;  %v1872_v24 = vsel %vm11098_vm12, %v1867_v23, %v11272_v59 }
 0x1b4   : > { %8679 = vmatmul.mubr.msk.bf16.gmra.mrb[8].mxu0 %vm946_vm9, %v11227_v27  ;;  %v1882_v32 = vsel %vm11098_vm12, %v1877_v63, %v1881_v8  ;;  %v1896_v14 = vsel %vm11098_vm12, %v1891_v31, %v11285_v13  ;;  %v1906_v34 = vsel %vm11098_vm12, %v1901_v61, %v1905_v6  ;;  %v1914_v42 = vor.u32 %v1913_v1, %v1910_v0 }
 0x1b5   : > { %8682 = vmatprep.mubr.msk.bf16.mxu0 %vm946_vm9, %v11247_v10  ;;  %v1924_v17 = vor.u32 %v1923_v58, %v1919_v29  ;;  %v1927_v41 = vshll.u32 %v11314_v15, 16  ;;  %v1956_v8 = vshrl.u32 %v1583_v22, 16  ;;  %v1959_v59 = vshll.u32 %v1583_v22, 16 }
 0x1b6   : > { %v1965_v44 = vshll.u32 %v11316_v38, 16  ;;  %v1969_v13 = vshrl.u32 %v11316_v38, 16  ;;  %v1938_v31 = vor.u32 %v1937_v30, %v1934_v18  ;;  %v1948_v50 = vor.u32 %v1947_v35, %v1943_v51 }
 0x1b7   : > { %v1951_v23 = vshll.u32 %v11326_v46, 16  ;;  %v11338_v63 = vcombine.low %v1872_v24, %v1882_v32  ;;  %v11340_v61 = vcombine.low %v1896_v14, %v1906_v34  ;;  %v1915_v58 = vrot.slane %v1914_v42, 4 }
 0x1b8   : > { %v1925_v1 = vrot.slane %v1924_v17, 4  ;;  %v1929_v6 = vrot.slane %v1927_v41, 5  ;;  %v1958_v0 = vrot.slane %v1956_v8, 4  ;;  %v1961_v20 = vrot.slane %v1959_v59, 5 }
 0x1b9   : > { %v1967_v9 = vrot.slane %v1965_v44, 5  ;;  %v1971_v45 = vrot.slane %v1969_v13, 4  ;;  %v1939_v40 = vrot.slane %v1938_v31, 4  ;;  %v1949_v22 = vrot.slane %v1948_v50, 4  ;;  %v2911_v13 = vld [vmem:[#allocation7 + $0x4] sm:$0x3] }
 0x1ba   : > { %v1953_v15 = vrot.slane %v1951_v23, 5  ;;  %v1920_v18 = vsel %vm11098_vm12, %v1915_v58, %v1919_v29  ;;  %v1930_v30 = vsel %vm11098_vm12, %v1925_v1, %v1929_v6  ;;  %v1962_v35 = vor.u32 %v1961_v20, %v1958_v0 }
 0x1bb   : > { %v1972_v24 = vor.u32 %v1971_v45, %v1967_v9  ;;  %v1975_v32 = vshll.u32 %v11342_v56, 16  ;;  %v1944_v14 = vsel %vm11098_vm12, %v1939_v40, %v1943_v51  ;;  %v11357_v42 = vcombine.low %v1920_v18, %v1930_v30 }
 0x1bc   : > { %8683 = vmatmul.mubr.msk.bf16.gmra.mrb[12].mxu0 %vm946_vm9, %v11274_v19  ;;  %v1954_v34 = vsel %vm11098_vm12, %v1949_v22, %v1953_v15  ;;  %v1963_v29 = vrot.slane %v1962_v35, 4  ;;  %v2534_v44 = vsel %vm995_vm2, %v11189_v37, 0  ;;  %v11394_v37 = vld [vmem:[#allocation2 + $0xc4] sm:$0xf] }
 0x1bd   : > { %8686 = vmatprep.mubr.msk.bf16.mxu0 %vm946_vm9, %v11276_v36  ;;  %v11359_v17 = vcombine.low %v1944_v14, %v1954_v34  ;;  %v1973_v41 = vrot.slane %v1972_v24, 4  ;;  %v1977_v8 = vrot.slane %v1975_v32, 5  ;;  %v2283_v23 = vshll.u32 %v11394_v37, 16 }
 0x1be   : > { %v1968_v59 = vsel %vm11098_vm12, %v1963_v29, %v1967_v9  ;;  %v2287_v58 = vshrl.u32 %v11394_v37, 16  ;;  %v11402_v9 = vld [vmem:[#allocation2 + $0xc8] sm:$0x1]  ;;  %v3009_v34 = vsel %vm995_vm2, %v2911_v13, 0  ;;  %v11421_v29 = vld [vmem:[#allocation7 + $0xa] sm:$0x3] }
 0x1bf   : > { %v1978_v51 = vsel %vm11098_vm12, %v1973_v41, %v1977_v8  ;;  %v2285_v0 = vrot.slane %v2283_v23, 5  ;;  %v2293_v22 = vshll.u32 %v11402_v9, 16 }
 0x1c0   : > { %v11369_v15 = vcombine.low %v1968_v59, %v1978_v51  ;;  %v2289_v20 = vrot.slane %v2287_v58, 4  ;;  %v2800_v51 = vrot.slane %v11053_v49, 5  ;;  %v2803_v58 = vrot.slane %v11065_v2, 5 }
 0x1c1   : > { %v2295_v35 = vrot.slane %v2293_v22, 5 }
 0x1c2   : > { %v2290_v40 = vor.u32 %v2289_v20, %v2285_v0  ;;  %v2802_v23 = vrot.slane %v2800_v51, 4  ;;  %v2814_v20 = vrot.slane %v11069_v3, 5 }
 0x1c4   : > { %8687 = vmatmul.mubr.msk.bf16.gmra.mrb[16].mxu0 %vm946_vm9, %v11293_v21  ;;  %v2291_v30 = vrot.slane %v2290_v40, 4 }
 0x1c5   : > { %8690 = vmatprep.mubr.msk.bf16.mxu0 %vm946_vm9, %v11312_v57 }
 0x1c6   : > { %v2296_v32 = vsel %vm11098_vm12, %v2291_v30, %v2295_v35  ;;  %v2810_v30 = vrot.slane %v11078_v26, 5 }
 0x1cc   : > { %8691 = vmatmul.mubr.msk.bf16.gmra.mrb[20].mxu0 %vm946_vm9, %v11338_v63 }
 0x1cd   : > { %8694 = vmatprep.mubr.msk.bf16.mxu0 %vm946_vm9, %v11340_v61 }
 0x1d4   : > { %8695 = vmatmul.mubr.msk.bf16.gmra.mrb[24].mxu0 %vm946_vm9, %v11357_v42 }
 0x1d5   : > { %8698 = vmatprep.mubr.msk.bf16.mxu0 %vm946_vm9, %v11359_v17 }
 0x1dc   : > { %8699 = vmatmul.mubr.msk.bf16.gmra.mrb[28].mxu0 %vm946_vm9, %v11369_v15 }
 0x1dd   : > { %8704 = vmatprep.mubr.msk.bf16.mxu0 %vm946_vm9, %v11151_v43  ;;  %v1586_v43 = vld [vmem:[#allocation2 + $0xc0] sm:$0xf] }
 0x1de   : > { %v2274_v31 = vshrl.u32 %v1586_v43, 16  ;;  %v2277_v50 = vshll.u32 %v1586_v43, 16 }
 0x1e0   : > { %v2276_v1 = vrot.slane %v2274_v31, 4  ;;  %v2279_v6 = vrot.slane %v2277_v50, 5 }
 0x1e2   : > { %v2280_v45 = vor.u32 %v2279_v6, %v2276_v1  ;;  %v2807_v1 = vrot.slane %v11057_v48, 5  ;;  %v2804_v6 = vsel %vm11458_vm15, %v2802_v23, %v2803_v58  ;;  %v2817_v48 = vrot.slane %v11094_v11, 5 }
 0x1e3   : > { %v2828_v11 = vrot.slane %v11090_v39, 5 }
 0x1e4   : > { %8705 = vmatmul.mubr.msk.bf16.vlgmr.msra.gmra.mrb[0].mxu0 %vm946_vm9, %v11159_v60  ;;  %v2281_v18 = vrot.slane %v2280_v45, 4 }
 0x1e5   : > { %8737 = vmatpush3.bf16.msra.mxu0 %v2534_v44  ;;  %8708 = vmatprep.mubr.msk.bf16.mxu0 %vm946_vm9, %v11200_v25  ;;  %v2729_v44 = vld [vmem:[#allocation2] sm:$0xe] }
 0x1e6   : > { %9838 = vmatprep.subr.msk.bf16.mxu0 %vm995_vm2, %v2911_v13  ;;  %v2286_v24 = vsel %vm11098_vm12, %v2281_v18, %v2285_v0  ;;  %v7896_v50 = vrot.slane %v2729_v44, 9  ;;  %v2730_v0 = vld [vmem:[#allocation2 + $0xc] sm:$0xe]  ;;  %v2809_v18 = vrot.slane %v2807_v1, 4  ;;  %v2842_v44 = vrot.slane %v11142_v33, 5 }
 0x1e7   : > { %v7862_v14 = vcombine.low %v2286_v24, %v2296_v32  ;;  %v7897_v22 = vrot.slane %v2730_v0, 9  ;;  %v2816_v24 = vrot.slane %v2814_v20, 4  ;;  %v2856_v0 = vrot.slane %v11169_v5, 5 }
 0x1e8   : > { %v2801_v2 = vsel %vm11458_vm15, %v7896_v50, %v2800_v51  ;;  %v2811_v3 = vsel %vm11458_vm15, %v2809_v18, %v2810_v30  ;;  %v2734_v51 = vld [vmem:[#allocation2 + $0x3c] sm:$0xe]  ;;  %v2852_v18 = vrot.slane %v11202_v53, 5 }
 0x1e9   : > { %v7912_v40 = vcombine.low %v2801_v2, %v2804_v6  ;;  %v2808_v32 = vsel %vm11458_vm15, %v7897_v22, %v2807_v1  ;;  %v2818_v26 = vsel %vm11458_vm15, %v2816_v24, %v2817_v48  ;;  %v7901_v50 = vrot.slane %v2734_v51, 9  ;;  %v2736_v6 = vld [vmem:[#allocation2 + $0x54] sm:$0xe] }
 0x1ea   : > { %v2849_v2 = vrot.slane %v11166_v62, 5  ;;  %v2858_v62 = vrot.slane %v2856_v0, 4  ;;  %v12696_v48 = vld [vmem:[#allocation19_spill] sm:$0xff] }
 0x1ec   : > { %8709 = vmatmul.mubr.msk.bf16.gmra.mrb[4].mxu0 %vm946_vm9, %v11208_v47  ;;  %v2851_v22 = vrot.slane %v2849_v2, 4 }
 0x1ed   : > { %8712 = vmatprep.mubr.msk.bf16.mxu0 %vm946_vm9, %v11227_v27 }
 0x1ee   : > { %v2853_v24 = vsel %vm11458_vm15, %v2851_v22, %v2852_v18 }
 0x1f4   : > { %8713 = vmatmul.mubr.msk.bf16.gmra.mrb[8].mxu0 %vm946_vm9, %v11247_v10 }
 0x1f5   : > { %8716 = vmatprep.mubr.msk.bf16.mxu0 %vm946_vm9, %v11274_v19 }
 0x1fc   : > { %8717 = vmatmul.mubr.msk.bf16.gmra.mrb[12].mxu0 %vm946_vm9, %v11276_v36 }
 0x1fd   : > { %8720 = vmatprep.mubr.msk.bf16.mxu0 %vm946_vm9, %v11293_v21 }
 0x204   : > { %8721 = vmatmul.mubr.msk.bf16.gmra.mrb[16].mxu0 %vm946_vm9, %v11312_v57 }
 0x205   : > { %8724 = vmatprep.mubr.msk.bf16.mxu0 %vm946_vm9, %v11338_v63 }
 0x20c   : > { %8725 = vmatmul.mubr.msk.bf16.gmra.mrb[20].mxu0 %vm946_vm9, %v11340_v61 }
 0x20d   : > { %8728 = vmatprep.mubr.msk.bf16.mxu0 %vm946_vm9, %v11357_v42 }
 0x214   : > { %8729 = vmatmul.mubr.msk.bf16.gmra.mrb[24].mxu0 %vm946_vm9, %v11359_v17 }
 0x215   : > { %8732 = vmatprep.mubr.msk.bf16.mxu0 %vm946_vm9, %v11369_v15 }
 0x21c   : > { %8733 = vmatmul.mubr.msk.bf16.gmra.mrb[28].mxu0 %vm946_vm9, %v7862_v14 }
 0x21d   : > { %8738 = vmatprep.mubr.msk.bf16.mxu0 %vm946_vm9, %v11159_v60  ;;  %v1589_v60 = vld [vmem:[#allocation2 + $0xcc] sm:$0xf] }
 0x224   : > { %8739 = vmatmul.mubr.msk.bf16.vlgmr.msra.gmra.mrb[0].mxu0 %vm946_vm9, %v11200_v25  ;;  %v11441_v25 = vld [vmem:[#allocation2 + $0xd0] sm:$0xf] }
 0x225   : > { %8771 = vmatpush3.bf16.msra.mxu0 %v3009_v34  ;;  %8742 = vmatprep.mubr.msk.bf16.mxu0 %vm946_vm9, %v11208_v47  ;;  %v2502_v47 = vshrl.u32 %v1589_v60, 16 }
 0x226   : > { %9839 = vmatprep.subr.msk.bf16.mxu0 %vm995_vm2, %v11421_v29 }
 0x22c   : > { %8743 = vmatmul.mubr.msk.bf16.gmra.mrb[4].mxu0 %vm946_vm9, %v11227_v27  ;;  %v2505_v27 = vshll.u32 %v1589_v60, 16  ;;  %v2732_v60 = vld [vmem:[#allocation2 + $0x24] sm:$0xe] }
 0x22d   : > { %8746 = vmatprep.mubr.msk.bf16.mxu0 %vm946_vm9, %v11247_v10  ;;  %v2511_v10 = vshll.u32 %v11441_v25, 16 }
 0x22f   : > { %v2513_v41 = vrot.slane %v2511_v10, 5 }
 0x234   : > { %8747 = vmatmul.mubr.msk.bf16.gmra.mrb[8].mxu0 %vm946_vm9, %v11274_v19  ;;  %v2515_v19 = vshrl.u32 %v11441_v25, 16 }
 0x235   : > { %8750 = vmatprep.mubr.msk.bf16.mxu0 %vm946_vm9, %v11276_v36  ;;  %v2504_v36 = vrot.slane %v2502_v47, 4  ;;  %v2733_v47 = vld [vmem:[#allocation2 + $0x30] sm:$0xe] }
 0x236   : > { %v2517_v8 = vrot.slane %v2515_v19, 4  ;;  %v7899_v19 = vrot.slane %v2732_v60, 9 }
 0x23c   : > { %8751 = vmatmul.mubr.msk.bf16.gmra.mrb[12].mxu0 %vm946_vm9, %v11293_v21  ;;  %v2507_v21 = vrot.slane %v2505_v27, 5  ;;  %v11489_v27 = vcombine.low %v2808_v32, %v2811_v3  ;;  %v2863_v32 = vrot.slane %v12696_v48, 5  ;;  %v2738_v3 = vld [vmem:[#allocation2 + $0x6c] sm:$0xe] }
 0x23d   : > { %8754 = vmatprep.mubr.msk.bf16.mxu0 %vm946_vm9, %v11312_v57  ;;  %v11449_v57 = vld [vmem:[#allocation2 + $0xd4] sm:$0x1] }
 0x23e   : > { %v2521_v59 = vshll.u32 %v11449_v57, 16 }
 0x240   : > { %v2523_v31 = vrot.slane %v2521_v59, 5 }
 0x244   : > { %8755 = vmatmul.mubr.msk.bf16.gmra.mrb[16].mxu0 %vm946_vm9, %v11338_v63  ;;  %v2508_v63 = vor.u32 %v2507_v21, %v2504_v36  ;;  %v2824_v21 = vrot.slane %v11119_v4, 5 }
 0x245   : > { %8758 = vmatprep.mubr.msk.bf16.mxu0 %vm946_vm9, %v11340_v61  ;;  %v2518_v61 = vor.u32 %v2517_v8, %v2513_v41  ;;  %v2830_v8 = vrot.slane %v2828_v11, 4 }
 0x246   : > { %v2509_v13 = vrot.slane %v2508_v63, 4  ;;  %v2831_v63 = vrot.slane %v11128_v16, 5 }
 0x247   : > { %v2519_v43 = vrot.slane %v2518_v61, 4  ;;  %v11497_v61 = vld [vmem:[#allocation7 + $0x10] sm:$0x3] }
 0x248   : > { %v2514_v49 = vsel %vm11098_vm12, %v2509_v13, %v2513_v41  ;;  %v7900_v41 = vrot.slane %v2733_v47, 9  ;;  %v2832_v59 = vsel %vm11458_vm15, %v2830_v8, %v2831_v63  ;;  %v2735_v13 = vld [vmem:[#allocation2 + $0x48] sm:$0xe]  ;;  %v7905_v47 = vrot.slane %v2738_v3, 9  ;;  %v12699_v8 = vld [vmem:[#allocation24_spill] sm:$0xff]  ;;  %v12706_v3 = vld [vmem:[#allocation29_spill] sm:$0xff] }
 0x249   : > { %v7902_v58 = vrot.slane %v2735_v13, 9  ;;  %v2873_v63 = vrot.slane %v12699_v8, 5  ;;  %v12701_v13 = vld [vmem:[#allocation23_spill] sm:$0xff] }
 0x24a   : > { %v2829_v16 = vsel %vm11458_vm15, %v7900_v41, %v2828_v11 }
 0x24c   : > { %8759 = vmatmul.mubr.msk.bf16.gmra.mrb[20].mxu0 %vm946_vm9, %v11357_v42  ;;  %v12693_v42 = vmov 0 }
 0x24d   : > { %8762 = vmatprep.mubr.msk.bf16.mxu0 %vm946_vm9, %v11359_v17  ;;  %v12694_v42 = vsel %vm11458_vm15, 4294967295, %v12693_v42  ;;  %v2524_v17 = vsel %vm11098_vm12, %v2519_v43, %v2523_v31  ;;  %v11517_v31 = vcombine.low %v2829_v16, %v2832_v59 }
 0x24e   : > { %12695 = vst [vmem:[#allocation30_spill] sm:$0xff] %v12694_v42  ;;  %v7879_v45 = vcombine.low %v2514_v49, %v2524_v17  ;;  %v2844_v49 = vrot.slane %v2842_v44, 4  ;;  %v2845_v17 = vrot.slane %v11184_v7, 5 }
 0x250   : > { %v2846_v7 = vsel %vm11458_vm15, %v2844_v49, %v2845_v17 }
 0x254   : > { %8763 = vmatmul.mubr.msk.bf16.gmra.mrb[24].mxu0 %vm946_vm9, %v11369_v15  ;;  %v2731_v15 = vld [vmem:[#allocation2 + $0x18] sm:$0xe] }
 0x255   : > { %8766 = vmatprep.mubr.msk.bf16.mxu0 %vm946_vm9, %v7862_v14  ;;  %v7898_v35 = vrot.slane %v2731_v15, 9  ;;  %v2821_v14 = vrot.slane %v11082_v12, 5  ;;  %v3223_v12 = vsel %vm995_vm2, %v11421_v29, 0  ;;  %v2835_v29 = vrot.slane %v11115_v54, 5 }
 0x256   : > { %v2838_v54 = vrot.slane %v11147_v52, 5  ;;  %v2843_v52 = vsel %vm11458_vm15, %v7902_v58, %v2842_v44  ;;  %v2740_v44 = vld [vmem:[#allocation2 + $0x84] sm:$0xe] }
 0x257   : > { %v2815_v34 = vsel %vm11458_vm15, %v7898_v35, %v2814_v20  ;;  %v2823_v36 = vrot.slane %v2821_v14, 4  ;;  %v2822_v39 = vsel %vm11458_vm15, %v7899_v19, %v2821_v14  ;;  %v2837_v23 = vrot.slane %v2835_v29, 4  ;;  %v2737_v20 = vld [vmem:[#allocation2 + $0x60] sm:$0xe]  ;;  %v12697_v14 = vld [vmem:[#allocation20_spill] sm:$0xff] }
 0x258   : > { %v11491_v10 = vcombine.low %v2815_v34, %v2818_v26  ;;  %v2836_v33 = vsel %vm11458_vm15, %v7901_v50, %v2835_v29  ;;  %v7904_v30 = vrot.slane %v2737_v20, 9  ;;  %v2859_v35 = vrot.slane %v11215_v28, 5  ;;  %v2739_v26 = vld [vmem:[#allocation2 + $0x78] sm:$0xe]  ;;  %v12700_v29 = vld [vmem:[#allocation22_spill] sm:$0xff] }
 0x259   : > { %v2825_v4 = vsel %vm11458_vm15, %v2823_v36, %v2824_v21  ;;  %v2839_v1 = vsel %vm11458_vm15, %v2837_v23, %v2838_v54  ;;  %v2870_v34 = vrot.slane %v12697_v14, 5  ;;  %v2865_v19 = vrot.slane %v2863_v32, 4  ;;  %v12698_v36 = vld [vmem:[#allocation21_spill] sm:$0xff]  ;;  %v2741_v23 = vld [vmem:[#allocation2 + $0x90] sm:$0xe] }
 0x25a   : > { %v11515_v43 = vcombine.low %v2822_v39, %v2825_v4  ;;  %v11535_v15 = vcombine.low %v2836_v33, %v2839_v1  ;;  %v2857_v53 = vsel %vm11458_vm15, %v7904_v30, %v2856_v0  ;;  %v2860_v28 = vsel %vm11458_vm15, %v2858_v62, %v2859_v35  ;;  %v12702_v33 = vld [vmem:[#allocation25_spill] sm:$0xff]  ;;  %v12705_v35 = vld [vmem:[#allocation28_spill] sm:$0xff] }
 0x25b   : > { %v11557_v11 = vcombine.low %v2857_v53, %v2860_v28  ;;  %v2866_v21 = vrot.slane %v12698_v36, 5  ;;  %v2872_v41 = vrot.slane %v2870_v34, 4  ;;  %v2864_v39 = vsel %vm11458_vm15, %v7905_v47, %v2863_v32  ;;  %v2742_v62 = vld [vmem:[#allocation2 + $0x9c] sm:$0xe] }
 0x25c   : > { %8767 = vmatmul.mubr.msk.bf16.gmra.mrb[28].mxu0 %vm946_vm9, %v7879_v45  ;;  %v11537_v45 = vcombine.low %v2843_v52, %v2846_v7  ;;  %v2877_v16 = vrot.slane %v12700_v29, 5  ;;  %v2884_v50 = vrot.slane %v12701_v13, 5  ;;  %v7907_v49 = vrot.slane %v2740_v44, 9  ;;  %v12703_v7 = vld [vmem:[#allocation26_spill] sm:$0xff] }
 0x25d   : > { %8772 = vmatprep.mubr.msk.bf16.mxu0 %vm946_vm9, %v7912_v40  ;;  %v7903_v40 = vrot.slane %v2736_v6, 9  ;;  %v2867_v4 = vsel %vm11458_vm15, %v2865_v19, %v2866_v21  ;;  %v2874_v51 = vsel %vm11458_vm15, %v2872_v41, %v2873_v63  ;;  %v2880_v1 = vrot.slane %v12702_v33, 5  ;;  %v2744_v41 = vld [vmem:[#allocation2 + $0xb4] sm:$0xe] }
 0x25e   : > { %v11575_v54 = vcombine.low %v2864_v39, %v2867_v4  ;;  %v2879_v17 = vrot.slane %v2877_v16, 4  ;;  %v2886_v52 = vrot.slane %v2884_v50, 4  ;;  %v2887_v6 = vrot.slane %v12703_v7, 5  ;;  %v9959_v33 = vld [vmem:[#allocation10 + $0xf0] sm:$0xff]  }
 0x25f   : > { %v2850_v5 = vsel %vm11458_vm15, %v7903_v40, %v2849_v2  ;;  %v7908_v2 = vrot.slane %v2741_v23, 9  ;;  %v2878_v0 = vsel %vm11458_vm15, %v7907_v49, %v2877_v16  ;;  %v12704_v40 = vld [vmem:[#allocation27_spill] sm:$0xff]  ;;  %v7909_v53 = vrot.slane %v2742_v62, 9 }
 0x260   : > { %v11555_v60 = vcombine.low %v2850_v5, %v2853_v24  ;;  %v2881_v20 = vsel %vm11458_vm15, %v2879_v17, %v2880_v1  ;;  %v2891_v22 = vrot.slane %v12704_v40, 5  ;;  %v2888_v30 = vsel %vm11458_vm15, %v2886_v52, %v2887_v6  ;;  %v2743_v24 = vld [vmem:[#allocation2 + $0xa8] sm:$0xe]  ;;  %v9960_v1 = vld [vmem:[#allocation10 + $0xf8] sm:$0xff]  }
 0x261   : > { %v2885_v18 = vsel %vm11458_vm15, %v7908_v2, %v2884_v50  ;;  %v2898_v5 = vrot.slane %v12705_v35, 5  ;;  %v11595_v48 = vcombine.low %v2878_v0, %v2881_v20  ;;  %v2894_v14 = vrot.slane %v12706_v3, 5  ;;  %v11691_v2 = vld [vmem:[#allocation10] sm:$0xff]   ;;  %v11694_v52 = vld [vmem:[#allocation9] ss:$0 sm:$0xff] }
 0x262   : > { %v11597_v32 = vcombine.low %v2885_v18, %v2888_v30  ;;  %v2893_v28 = vrot.slane %v2891_v22, 4  ;;  %v2901_v47 = vrot.slane %v11326_v46, 5  ;;  %v2892_v19 = vsel %vm11458_vm15, %v7909_v53, %v2891_v22 }
 0x263   : > { %v2905_v21 = vrot.slane %v11316_v38, 5  ;;  %v7911_v39 = vrot.slane %v2744_v41, 9  ;;  %v2908_v29 = vrot.slane %v11342_v56, 5  ;;  %v3437_v56 = vsel %vm995_vm2, %v11497_v61, 0 }
 0x264   : > { %8773 = vmatmul.mubr.msk.bf16.vlgmr.msra.gmra.mrb[0].mxu0 %vm946_vm9, %v11489_v27  ;;  %v2895_v36 = vsel %vm11458_vm15, %v2893_v28, %v2894_v14  ;;  %v3212_v50 = vrot.slane %v11402_v9, 5  ;;  %v2746_v9 = vld [vmem:[#allocation2 + $0xcc] sm:$0xe] }
 0x265   : > { %8805 = vmatpush3.bf16.msra.mxu0 %v3223_v12  ;;  %8776 = vmatprep.mubr.msk.bf16.mxu0 %vm946_vm9, %v11491_v10  ;;  %v7906_v12 = vrot.slane %v2739_v26, 9  ;;  %v2900_v26 = vrot.slane %v2898_v5, 4  ;;  %v7925_v8 = vcombine.low %v2892_v19, %v2895_v36  ;;  %v2907_v4 = vrot.slane %v2905_v21, 4 }
 0x266   : > { %9840 = vmatprep.subr.msk.bf16.mxu0 %vm995_vm2, %v11497_v61  ;;  %v2906_v38 = vsel %vm11458_vm15, %v7911_v39, %v2905_v21  ;;  %v2745_v61 = vld [vmem:[#allocation2 + $0xc0] sm:$0xe]  ;;  %vm11702_vm2 = vmand %vm4174_vm0, %vm711_vm5 }
 0x267   : > { %v2871_v59 = vsel %vm11458_vm15, %v7906_v12, %v2870_v34  ;;  %v7910_v34 = vrot.slane %v2743_v24, 9  ;;  %v2902_v46 = vsel %vm11458_vm15, %v2900_v26, %v2901_v47  ;;  %v2909_v16 = vsel %vm11458_vm15, %v2907_v4, %v2908_v29 }
 0x268   : > { %v11577_v58 = vcombine.low %v2871_v59, %v2874_v51  ;;  %v7927_v59 = vcombine.low %v2906_v38, %v2909_v16  ;;  %v9953_v51 = vld [vmem:[#allocation10 + $0xc0] sm:$0xff]   ;;  %v7944_v44 = vrot.slane %v2745_v61, 9 }
 0x269   : > { %v2899_v12 = vsel %vm11458_vm15, %v7910_v34, %v2898_v5  ;;  %9304 = vmatprep.subr.bf16.mxu1 %v9953_v51 }
 0x26a   : > { %v7926_v63 = vcombine.low %v2899_v12, %v2902_v46  ;;  %9312 = vmatpush3.bf16.msra.mxu1 %v9953_v51 }
 0x26c   : > { %8777 = vmatmul.mubr.msk.bf16.gmra.mrb[4].mxu0 %vm946_vm9, %v11515_v43 }
 0x26d   : > { %8780 = vmatprep.mubr.msk.bf16.mxu0 %vm946_vm9, %v11517_v31 }
 0x274   : > { %8781 = vmatmul.mubr.msk.bf16.gmra.mrb[8].mxu0 %vm946_vm9, %v11535_v15 }
 0x275   : > { %8784 = vmatprep.mubr.msk.bf16.mxu0 %vm946_vm9, %v11537_v45 }
 0x27c   : > { %8785 = vmatmul.mubr.msk.bf16.gmra.mrb[12].mxu0 %vm946_vm9, %v11555_v60 }
 0x27d   : > { %8788 = vmatprep.mubr.msk.bf16.mxu0 %vm946_vm9, %v11557_v11 }
 0x284   : > { %8789 = vmatmul.mubr.msk.bf16.gmra.mrb[16].mxu0 %vm946_vm9, %v11575_v54 }
 0x285   : > { %8792 = vmatprep.mubr.msk.bf16.mxu0 %vm946_vm9, %v11577_v58 }
 0x28c   : > { %8793 = vmatmul.mubr.msk.bf16.gmra.mrb[20].mxu0 %vm946_vm9, %v11595_v48 }
 0x28d   : > { %8796 = vmatprep.mubr.msk.bf16.mxu0 %vm946_vm9, %v11597_v32 }
 0x294   : > { %8797 = vmatmul.mubr.msk.bf16.gmra.mrb[24].mxu0 %vm946_vm9, %v7925_v8 }
 0x295   : > { %8800 = vmatprep.mubr.msk.bf16.mxu0 %vm946_vm9, %v7926_v63 }
 0x29c   : > { %8801 = vmatmul.mubr.msk.bf16.gmra.mrb[28].mxu0 %vm946_vm9, %v7927_v59 }
 0x29d   : > { %8806 = vmatprep.mubr.msk.bf16.mxu0 %vm946_vm9, %v11489_v27  ;;  %v3209_v27 = vrot.slane %v11394_v37, 5  ;;  %v3423_v37 = vrot.slane %v11441_v25, 5  ;;  %v9955_v25 = vld [vmem:[#allocation10 + $0xd0] sm:$0xff]  }
 0x29f   : > { %v3211_v13 = vrot.slane %v3209_v27, 4  ;;  %v3210_v23 = vsel %vm11458_vm15, %v7944_v44, %v3209_v27 }
 0x2a1   : > { %v3213_v49 = vsel %vm11458_vm15, %v3211_v13, %v3212_v50  ;;  %v9988_v50 = vld [vmem:[#allocation10 + $0x190] sm:$0xff]  }
 0x2a2   : > { %v7945_v17 = vcombine.low %v3210_v23, %v3213_v49  ;;  %v4189_v23 = vld [vmem:[#allocation3 + $0x20] sm:$0x1] }
 0x2a4   : > { %8807 = vmatmul.mubr.msk.bf16.vlgmr.msra.gmra.mrb[0].mxu0 %vm946_vm9, %v11491_v10 }
 0x2a5   : > { %8839 = vmatpush3.bf16.msra.mxu0 %v3437_v56  ;;  %8810 = vmatprep.mubr.msk.bf16.mxu0 %vm946_vm9, %v11515_v43 }
 0x2a6   : > { %8872 = vmatprep.subr.bf16.mxu0 %v9953_v51 }
 0x2ac   : > { %8811 = vmatmul.mubr.msk.bf16.gmra.mrb[4].mxu0 %vm946_vm9, %v11517_v31 }
 0x2ad   : > { %8814 = vmatprep.mubr.msk.bf16.mxu0 %vm946_vm9, %v11535_v15 }
 0x2b4   : > { %8815 = vmatmul.mubr.msk.bf16.gmra.mrb[8].mxu0 %vm946_vm9, %v11537_v45 }
 0x2b5   : > { %8818 = vmatprep.mubr.msk.bf16.mxu0 %vm946_vm9, %v11555_v60 }
 0x2bc   : > { %8819 = vmatmul.mubr.msk.bf16.gmra.mrb[12].mxu0 %vm946_vm9, %v11557_v11 }
 0x2bd   : > { %8822 = vmatprep.mubr.msk.bf16.mxu0 %vm946_vm9, %v11575_v54 }
 0x2c4   : > { %8823 = vmatmul.mubr.msk.bf16.gmra.mrb[16].mxu0 %vm946_vm9, %v11577_v58 }
 0x2c5   : > { %8826 = vmatprep.mubr.msk.bf16.mxu0 %vm946_vm9, %v11595_v48 }
 0x2cc   : > { %8827 = vmatmul.mubr.msk.bf16.gmra.mrb[20].mxu0 %vm946_vm9, %v11597_v32 }
 0x2cd   : > { %8830 = vmatprep.mubr.msk.bf16.mxu0 %vm946_vm9, %v7925_v8 }
 0x2d4   : > { %8831 = vmatmul.mubr.msk.bf16.gmra.mrb[24].mxu0 %vm946_vm9, %v7926_v63 }
 0x2d5   : > { %8834 = vmatprep.mubr.msk.bf16.mxu0 %vm946_vm9, %v7927_v59 }
 0x2dc   : > { %8835 = vmatmul.mubr.msk.bf16.gmra.mrb[28].mxu0 %vm946_vm9, %v7945_v17 }
 0x2dd   : > { %8840 = vmatprep.mubr.msk.bf16.mxu0 %vm946_vm9, %v11491_v10  ;;  %v7962_v10 = vrot.slane %v2746_v9, 9 }
 0x2e4   : > { %8841 = vmatmul.mubr.msk.bf16.vlgmr.msra.gmra.mrb[0].mxu0 %vm946_vm9, %v11515_v43  ;;  %v3425_v43 = vrot.slane %v3423_v37, 4 }
 0x2e5   : > { %8844 = vmatprep.mubr.msk.bf16.mxu0 %vm946_vm9, %v11517_v31  ;;  %8873 = vmatpush3.bf16.msra.mxu0 %v9953_v51  ;;  %v3426_v31 = vrot.slane %v11449_v57, 5  ;;  %v9956_v57 = vld [vmem:[#allocation10 + $0xd8] sm:$0xff]   ;;  %v4176_v51 = vld [vmem:[#allocation3 + $0xc] sm:$0xf] }
 0x2ec   : > { %8845 = vmatmul.mubr.msk.bf16.gmra.mrb[4].mxu0 %vm946_vm9, %v11535_v15  ;;  %v3424_v15 = vsel %vm11458_vm15, %v7962_v10, %v3423_v37 }
 0x2ed   : > { %8848 = vmatprep.mubr.msk.bf16.mxu0 %vm946_vm9, %v11537_v45  ;;  %v3427_v45 = vsel %vm11458_vm15, %v3425_v43, %v3426_v31  ;;  %v4182_v43 = vld [vmem:[#allocation3 + $0x14] sm:$0x1] }
 0x2f4   : > { %8849 = vmatmul.mubr.msk.bf16.gmra.mrb[8].mxu0 %vm946_vm9, %v11555_v60  ;;  %v7963_v60 = vcombine.low %v3424_v15, %v3427_v45 }
 0x2f5   : > { %8852 = vmatprep.mubr.msk.bf16.mxu0 %vm946_vm9, %v11557_v11  ;;  %v9954_v11 = vld [vmem:[#allocation10 + $0xc8] sm:$0xff]  }
 0x2f6   : > { %8874 = vmatprep.subr.bf16.mxu0 %v9954_v11  ;;  %9305 = vmatprep.subr.bf16.mxu1 %v9954_v11 }
 0x2f7   : > { %8875 = vmatpush3.bf16.msra.mxu0 %v9954_v11  ;;  %9313 = vmatpush3.bf16.msra.mxu1 %v9954_v11 }
 0x2f8   : > { %8876 = vmatprep.subr.bf16.mxu0 %v9955_v25  ;;  %9306 = vmatprep.subr.bf16.mxu1 %v9955_v25 }
 0x2fb   : > { %8877 = vmatpush3.bf16.msra.mxu0 %v9955_v25  ;;  %9314 = vmatpush3.bf16.msra.mxu1 %v9955_v25  ;;  %v9987_v25 = vld [vmem:[#allocation10 + $0x188] sm:$0xff]  }
 0x2fc   : > { %8853 = vmatmul.mubr.msk.bf16.gmra.mrb[12].mxu0 %vm946_vm9, %v11575_v54  ;;  %8878 = vmatprep.subr.bf16.mxu0 %v9956_v57  ;;  %v9957_v54 = vld [vmem:[#allocation10 + $0xe0] sm:$0xff]  }
 0x2fd   : > { %8856 = vmatprep.mubr.msk.bf16.mxu0 %vm946_vm9, %v11577_v58  ;;  %9307 = vmatprep.subr.bf16.mxu1 %v9956_v57  ;;  %v9958_v58 = vld [vmem:[#allocation10 + $0xe8] sm:$0xff]  }
 0x2ff   : > { %8879 = vmatpush3.bf16.msra.mxu0 %v9956_v57  ;;  %9315 = vmatpush3.bf16.msra.mxu1 %v9956_v57 }
 0x300   : > { %8880 = vmatprep.subr.bf16.mxu0 %v9957_v54  ;;  %9308 = vmatprep.subr.bf16.mxu1 %v9957_v54 }
 0x303   : > { %8881 = vmatpush3.bf16.msra.mxu0 %v9957_v54  ;;  %9316 = vmatpush3.bf16.msra.mxu1 %v9957_v54 }
 0x304   : > { %8857 = vmatmul.mubr.msk.bf16.gmra.mrb[16].mxu0 %vm946_vm9, %v11595_v48  ;;  %8882 = vmatprep.subr.bf16.mxu0 %v9958_v58 }
 0x305   : > { %8860 = vmatprep.mubr.msk.bf16.mxu0 %vm946_vm9, %v11597_v32  ;;  %9309 = vmatprep.subr.bf16.mxu1 %v9958_v58 }
 0x307   : > { %8883 = vmatpush3.bf16.msra.mxu0 %v9958_v58  ;;  %9317 = vmatpush3.bf16.msra.mxu1 %v9958_v58 }
 0x308   : > { %8884 = vmatprep.subr.bf16.mxu0 %v9959_v33  ;;  %9310 = vmatprep.subr.bf16.mxu1 %v9959_v33 }
 0x30b   : > { %8885 = vmatpush3.bf16.msra.mxu0 %v9959_v33  ;;  %9318 = vmatpush3.bf16.msra.mxu1 %v9959_v33 }
 0x30c   : > { %8861 = vmatmul.mubr.msk.bf16.gmra.mrb[20].mxu0 %vm946_vm9, %v7925_v8  ;;  %8886 = vmatprep.subr.bf16.mxu0 %v9960_v1  ;;  %v4185_v8 = vld [vmem:[#allocation3 + $0x18] sm:$0xf] }
 0x30d   : > { %8864 = vmatprep.mubr.msk.bf16.mxu0 %vm946_vm9, %v7926_v63  ;;  %9311 = vmatprep.subr.bf16.mxu1 %v9960_v1 }
 0x30f   : > { %8887 = vmatpush3.bf16.msra.mxu0 %v9960_v1  ;;  %9319 = vmatpush3.bf16.msra.mxu1 %v9960_v1 }
 0x310   : > { %8920 = vmatprep.subr.bf16.mxu1 %v11691_v2 }
 0x314   : > { %8865 = vmatmul.mubr.msk.bf16.gmra.mrb[24].mxu0 %vm946_vm9, %v7927_v59 }
 0x315   : > { %8868 = vmatprep.mubr.msk.bf16.mxu0 %vm946_vm9, %v7945_v17 }
 0x31c   : > { %8869 = vmatmul.mubr.msk.bf16.gmra.mrb[28].mxu0 %vm946_vm9, %v7963_v60 }
 0x3b7   : > { %v8842_v7 = vpop.f32.mrb[0].mxu0 }
 0x3b8   : > { %v3641_v6 = vadd.f32 %v8842_v7, %v11694_v52  ;;  %v3473_v0 = vpop.f32.mrb[1].mxu0 }
 0x3b9   : > { %v3639_v20 = vadd.f32 %v11694_v52, %v3473_v0  ;;  %v8843_v40 = vpop.f32.mrb[2].mxu0 }
 0x3ba   : > { %v3673_v22 = vmax.f32 %v3641_v6, 0.0  ;;  %v3642_v18 = vadd.f32 %v8843_v40, %v11694_v52  ;;  %v3476_v30 = vpop.f32.mrb[3].mxu0 }
 0x3bb   : > { %v3671_v62 = vmax.f32 %v3639_v20, 0.0  ;;  %v3640_v35 = vadd.f32 %v11694_v52, %v3476_v30 }
 0x3bc   : > { %v8166_v5 = vpack.c.bf16 %v3673_v22, %v3673_v22  ;;  %v3674_v24 = vmax.f32 %v3642_v18, 0.0 }
 0x3bd   : > { %v8164_v48 = vpack.c.bf16 %v3671_v62, %v3671_v62  ;;  %v3672_v32 = vmax.f32 %v3640_v35, 0.0  ;;  %v4199_v62 = vld [vmem:[#allocation3 + $0x30] sm:$0xf] }
 0x3be   : > { %v3871_v53 = vshrl.u32 %v8166_v5, 16  ;;  %v8167_v28 = vpack.c.bf16 %v3674_v24, %v3674_v24  ;;  %v3874_v3 = vshll.u32 %v8166_v5, 16 }
 0x3bf   : > { %v3854_v14 = vshrl.u32 %v8164_v48, 16  ;;  %v3857_v34 = vshll.u32 %v8164_v48, 16  ;;  %v8165_v26 = vpack.c.bf16 %v3672_v32, %v3672_v32  ;;  %v8846_v47 = vpop.f32.mrb[4].mxu0 }
 0x3c0   : > { %v3873_v19 = vrot.slane %v3871_v53, 7  ;;  %v3879_v36 = vshrl.u32 %v8167_v28, 16  ;;  %v3882_v21 = vshll.u32 %v8167_v28, 16  ;;  %v3645_v12 = vadd.f32 %v8846_v47, %v11694_v52  ;;  %v3489_v46 = vpop.f32.mrb[5].mxu0  ;;  %v4192_v28 = vld [vmem:[#allocation3 + $0x24] sm:$0xf] }
 0x3c1   : > { %v3856_v63 = vrot.slane %v3854_v14, 7  ;;  %v3862_v39 = vshrl.u32 %v8165_v26, 16  ;;  %v3865_v4 = vshll.u32 %v8165_v26, 16  ;;  %v3643_v29 = vadd.f32 %v11694_v52, %v3489_v46  ;;  %v8847_v38 = vpop.f32.mrb[6].mxu0 }
 0x3c2   : > { %v3876_v16 = vor.u32 %v3874_v3, %v3873_v19  ;;  %v3877_v59 = vrot.slane %v3873_v19, 4  ;;  %v3881_v56 = vrot.slane %v3879_v36, 7  ;;  %v3677_v27 = vmax.f32 %v3645_v12, 0.0  ;;  %v3492_v61 = vpop.f32.mrb[7].mxu0 }
 0x3c3   : > { %v3859_v44 = vor.u32 %v3857_v34, %v3856_v63  ;;  %v3860_v13 = vrot.slane %v3856_v63, 4  ;;  %v3864_v49 = vrot.slane %v3862_v39, 7  ;;  %v3675_v17 = vmax.f32 %v3643_v29, 0.0 }
 0x3c4   : > { %v4186_v37 = vsel %vm11702_vm2, %v3876_v16, %v4185_v8  ;;  %v3884_v9 = vor.u32 %v3882_v21, %v3881_v56  ;;  %v3886_v10 = vrot.slane %v3881_v56, 4  ;;  %v8170_v31 = vpack.c.bf16 %v3677_v27, %v3677_v27  ;;  %v4203_v56 = vld [vmem:[#allocation3 + $0x38] sm:$0x1]  ;;  %v4196_v27 = vld [vmem:[#allocation3 + $0x2c] sm:$0x1] }
 0x3c5   : > { %4187 = vst [vmem:[#allocation3 + $0x18] sm:$0xf] %v4186_v37  ;;  %v4177_v15 = vsel %vm11702_vm2, %v3859_v44, %v4176_v51  ;;  %v3867_v45 = vor.u32 %v3865_v4, %v3864_v49  ;;  %v3869_v60 = vrot.slane %v3864_v49, 4  ;;  %v8168_v11 = vpack.c.bf16 %v3675_v17, %v3675_v17 }
 0x3c6   : > { %4178 = vst [vmem:[#allocation3 + $0xc] sm:$0xf] %v4177_v15  ;;  %v3885_v57 = vsel %vm10711_vm6, %v3877_v59, %v3884_v9  ;;  %v4190_v54 = vsel %vm11709_vm4, %v3886_v10, %v4189_v23  ;;  %v3905_v58 = vshrl.u32 %v8170_v31, 16  ;;  %v3908_v7 = vshll.u32 %v8170_v31, 16  ;;  %v4213_v10 = vld [vmem:[#allocation3 + $0x48] sm:$0xf] }
 0x3c7   : > { %4188 = vst [vmem:[#allocation3 + $0x1c] sm:$0xf] %v3885_v57  ;;  %4191 = vst [vmem:[#allocation3 + $0x20] sm:$0x1] %v4190_v54  ;;  %v3868_v33 = vsel %vm10711_vm6, %v3860_v13, %v3867_v45  ;;  %v4183_v1 = vsel %vm11709_vm4, %v3869_v60, %v4182_v43  ;;  %v3888_v6 = vshrl.u32 %v8168_v11, 16  ;;  %v8850_v0 = vpop.f32.mrb[8].mxu0  ;;  %v3646_v40 = vadd.f32 %v8847_v38, %v11694_v52 }
 0x3c8   : > { %4179 = vst [vmem:[#allocation3 + $0x10] sm:$0xf] %v3868_v33  ;;  %4184 = vst [vmem:[#allocation3 + $0x14] sm:$0x1] %v4183_v1  ;;  %v11725_v20 = vrot.slane %v3905_v58, 7  ;;  %v3644_v22 = vadd.f32 %v11694_v52, %v3492_v61  ;;  %v3649_v18 = vadd.f32 %v8850_v0, %v11694_v52  ;;  %v3505_v30 = vpop.f32.mrb[9].mxu0 }
 0x3c9   : > { %v11730_v35 = vrot.slane %v3888_v6, 7  ;;  %v3891_v5 = vshll.u32 %v8168_v11, 16  ;;  %v3647_v24 = vadd.f32 %v11694_v52, %v3505_v30  ;;  %v8851_v48 = vpop.f32.mrb[10].mxu0  ;;  %v3678_v3 = vmax.f32 %v3646_v40, 0.0  ;;  %v4206_v0 = vld [vmem:[#allocation3 + $0x3c] sm:$0xf] }
 0x3ca   : > { %v3910_v32 = vor.u32 %v3908_v7, %v11725_v20  ;;  %v3911_v53 = vrot.slane %v11725_v20, 4  ;;  %v3676_v14 = vmax.f32 %v3644_v22, 0.0  ;;  %v3508_v34 = vpop.f32.mrb[11].mxu0  ;;  %v3681_v19 = vmax.f32 %v3649_v18, 0.0 }
 0x3cb   : > { %v3893_v26 = vor.u32 %v3891_v5, %v11730_v35  ;;  %v3894_v47 = vrot.slane %v11730_v35, 4  ;;  %v3679_v36 = vmax.f32 %v3647_v24, 0.0  ;;  %v8171_v12 = vpack.c.bf16 %v3678_v3, %v3678_v3 }
 0x3cc   : > { %v4200_v21 = vsel %vm11702_vm2, %v3910_v32, %v4199_v62  ;;  %v8169_v46 = vpack.c.bf16 %v3676_v14, %v3676_v14  ;;  %v3650_v8 = vadd.f32 %v8851_v48, %v11694_v52  ;;  %v8174_v39 = vpack.c.bf16 %v3681_v19, %v3681_v19 }
 0x3cd   : > { %4201 = vst [vmem:[#allocation3 + $0x30] sm:$0xf] %v4200_v21  ;;  %v4193_v63 = vsel %vm11702_vm2, %v3893_v26, %v4192_v28  ;;  %v8172_v4 = vpack.c.bf16 %v3679_v36, %v3679_v36  ;;  %v3648_v29 = vadd.f32 %v11694_v52, %v3508_v34  ;;  %v3913_v38 = vshrl.u32 %v8171_v12, 16 }
 0x3ce   : > { %4194 = vst [vmem:[#allocation3 + $0x24] sm:$0xf] %v4193_v63  ;;  %v3916_v16 = vshll.u32 %v8171_v12, 16  ;;  %v3896_v59 = vshrl.u32 %v8169_v46, 16  ;;  %v3899_v51 = vshll.u32 %v8169_v46, 16  ;;  %v3939_v61 = vshrl.u32 %v8174_v39, 16 }
 0x3cf   : > { %v3942_v44 = vshll.u32 %v8174_v39, 16  ;;  %v3922_v13 = vshrl.u32 %v8172_v4, 16  ;;  %v3925_v23 = vshll.u32 %v8172_v4, 16  ;;  %v8854_v49 = vpop.f32.mrb[12].mxu0  ;;  %v11743_v17 = vld [vmem:[#allocation3 + $0xc] sm:$0xff]   ;;  %v3915_v37 = vrot.slane %v3913_v38, 7 }
 0x3d0   : > { %v3898_v9 = vrot.slane %v3896_v59, 7  ;;  %v3682_v43 = vmax.f32 %v3650_v8, 0.0  ;;  %v3680_v31 = vmax.f32 %v3648_v29, 0.0  ;;  %v3521_v15 = vpop.f32.mrb[13].mxu0  ;;  %v11745_v45 = vld [vmem:[#allocation3 + $0x18] sm:$0xff]   ;;  %v11747_v60 = vrot.slane %v3939_v61, 7  ;;  %8888 = vmatprep.mubr.bf16.mxu0 %v11743_v17 }
 0x3d1   : > { %v11749_v11 = vrot.slane %v3922_v13, 7  ;;  %v3653_v57 = vadd.f32 %v8854_v49, %v11694_v52  ;;  %v3651_v54 = vadd.f32 %v11694_v52, %v3521_v15  ;;  %v8855_v58 = vpop.f32.mrb[14].mxu0  ;;  %v3918_v33 = vor.u32 %v3916_v16, %v3915_v37  ;;  %8889 = vmatmul.mubr.bf16.vlgmr.msra.gmra.mrb[32].mxu0 %v11745_v45  ;;  %v4217_v46 = vld [vmem:[#allocation3 + $0x50] sm:$0x1]  ;;  %v4210_v59 = vld [vmem:[#allocation3 + $0x44] sm:$0x1] }
 0x3d2   : > { %v3920_v1 = vrot.slane %v3915_v37, 4  ;;  %v3901_v7 = vor.u32 %v3899_v51, %v3898_v9  ;;  %v3903_v6 = vrot.slane %v3898_v9, 4  ;;  %v3524_v20 = vpop.f32.mrb[15].mxu0  ;;  %v3944_v40 = vor.u32 %v3942_v44, %v11747_v60  ;;  %v4220_v15 = vld [vmem:[#allocation3 + $0x54] sm:$0xf] }
 0x3d3   : > { %v3945_v22 = vrot.slane %v11747_v60, 4  ;;  %v3927_v18 = vor.u32 %v3925_v23, %v11749_v11  ;;  %v3928_v30 = vrot.slane %v11749_v11, 4  ;;  %v3919_v62 = vsel %vm10711_vm6, %v3911_v53, %v3918_v33  ;;  %v9966_v60 = vld [vmem:[#allocation10 + $0x8] sm:$0xff]  }
 0x3d4   : > { %v4204_v35 = vsel %vm11709_vm4, %v3920_v1, %v4203_v56  ;;  %v3902_v5 = vsel %vm10711_vm6, %v3894_v47, %v3901_v7  ;;  %v4197_v24 = vsel %vm11709_vm4, %v3903_v6, %v4196_v27  ;;  %4202 = vst [vmem:[#allocation3 + $0x34] sm:$0xf] %v3919_v62  ;;  %v4214_v48 = vsel %vm11702_vm2, %v3944_v40, %v4213_v10 }
 0x3d5   : > { %4205 = vst [vmem:[#allocation3 + $0x38] sm:$0x1] %v4204_v35  ;;  %4195 = vst [vmem:[#allocation3 + $0x28] sm:$0xf] %v3902_v5  ;;  %v4207_v32 = vsel %vm11702_vm2, %v3927_v18, %v4206_v0  ;;  %v8175_v53 = vpack.c.bf16 %v3682_v43, %v3682_v43  ;;  %v8173_v28 = vpack.c.bf16 %v3680_v31, %v3680_v31  ;;  %v3685_v3 = vmax.f32 %v3653_v57, 0.0 }
 0x3d6   : > { %4198 = vst [vmem:[#allocation3 + $0x2c] sm:$0x1] %v4197_v24  ;;  %4215 = vst [vmem:[#allocation3 + $0x48] sm:$0xf] %v4214_v48  ;;  %v3683_v14 = vmax.f32 %v3651_v54, 0.0  ;;  %v3654_v34 = vadd.f32 %v8855_v58, %v11694_v52  ;;  %v3652_v26 = vadd.f32 %v11694_v52, %v3524_v20 }
 0x3d7   : > { %4208 = vst [vmem:[#allocation3 + $0x3c] sm:$0xf] %v4207_v32  ;;  %v3947_v47 = vshrl.u32 %v8175_v53, 16  ;;  %v3950_v19 = vshll.u32 %v8175_v53, 16  ;;  %v3930_v36 = vshrl.u32 %v8173_v28, 16  ;;  %v3933_v21 = vshll.u32 %v8173_v28, 16 }
 0x3d8   : > { %v8858_v12 = vpop.f32.mrb[16].mxu0  ;;  %v8178_v8 = vpack.c.bf16 %v3685_v3, %v3685_v3  ;;  %v8176_v63 = vpack.c.bf16 %v3683_v14, %v3683_v14  ;;  %v3686_v39 = vmax.f32 %v3654_v34, 0.0  ;;  %v3684_v4 = vmax.f32 %v3652_v26, 0.0  ;;  %v4227_v31 = vld [vmem:[#allocation3 + $0x60] sm:$0xf] }
 0x3d9   : > { %v3537_v29 = vpop.f32.mrb[17].mxu0  ;;  %v3949_v38 = vrot.slane %v3947_v47, 7  ;;  %v3932_v16 = vrot.slane %v3930_v36, 7  ;;  %v3657_v51 = vadd.f32 %v8858_v12, %v11694_v52  ;;  %v4231_v12 = vld [vmem:[#allocation3 + $0x68] sm:$0x1] }
 0x3da   : > { %v3655_v56 = vadd.f32 %v11694_v52, %v3537_v29  ;;  %v8859_v27 = vpop.f32.mrb[18].mxu0  ;;  %v3973_v61 = vshrl.u32 %v8178_v8, 16  ;;  %v3976_v44 = vshll.u32 %v8178_v8, 16  ;;  %v3956_v13 = vshrl.u32 %v8176_v63, 16 }
 0x3db   : > { %v3959_v23 = vshll.u32 %v8176_v63, 16  ;;  %v3540_v49 = vpop.f32.mrb[19].mxu0  ;;  %v3952_v37 = vor.u32 %v3950_v19, %v3949_v38  ;;  %v3954_v9 = vrot.slane %v3949_v38, 4  ;;  %v3935_v10 = vor.u32 %v3933_v21, %v3932_v16  ;;  %v11777_v1 = vld [vmem:[#allocation3 + $0x30] sm:$0xff]   ;;  %v9969_v21 = vld [vmem:[#allocation10 + $0x10] sm:$0xff]  }
 0x3dc   : > { %v3937_v43 = vrot.slane %v3932_v16, 4  ;;  %v3975_v11 = vrot.slane %v3973_v61, 7  ;;  %v3958_v57 = vrot.slane %v3956_v13, 7  ;;  %v8179_v54 = vpack.c.bf16 %v3686_v39, %v3686_v39  ;;  %v11775_v33 = vld [vmem:[#allocation3 + $0x24] sm:$0xff]  }
 0x3dd   : > { %v8177_v58 = vpack.c.bf16 %v3684_v4, %v3684_v4  ;;  %v3953_v7 = vsel %vm10711_vm6, %v3945_v22, %v3952_v37  ;;  %v4218_v6 = vsel %vm11709_vm4, %v3954_v9, %v4217_v46  ;;  %v3936_v0 = vsel %vm10711_vm6, %v3928_v30, %v3935_v10  ;;  %8892 = vmatprep.mubr.bf16.mxu1 %v11775_v33  ;;  %v4224_v46 = vld [vmem:[#allocation3 + $0x5c] sm:$0x1]  ;;  %v4241_v37 = vld [vmem:[#allocation3 + $0x78] sm:$0xf] }
 0x3de   : > { %v4211_v20 = vsel %vm11709_vm4, %v3937_v43, %v4210_v59  ;;  %4216 = vst [vmem:[#allocation3 + $0x4c] sm:$0xf] %v3953_v7  ;;  %4219 = vst [vmem:[#allocation3 + $0x50] sm:$0x1] %v4218_v6  ;;  %v3978_v40 = vor.u32 %v3976_v44, %v3975_v11  ;;  %v3979_v18 = vrot.slane %v3975_v11, 4  ;;  %v3961_v62 = vor.u32 %v3959_v23, %v3958_v57  ;;  %v9972_v11 = vld [vmem:[#allocation10 + $0x18] sm:$0xff]  }
 0x3df   : > { %4209 = vst [vmem:[#allocation3 + $0x40] sm:$0xf] %v3936_v0  ;;  %4212 = vst [vmem:[#allocation3 + $0x44] sm:$0x1] %v4211_v20  ;;  %v3962_v35 = vrot.slane %v3958_v57, 4  ;;  %v3981_v22 = vshrl.u32 %v8179_v54, 16  ;;  %8893 = vmatmul.mubr.bf16.vlgmr.msra.gmra.mrb[0].mxu1 %v11777_v1  ;;  %v3658_v47 = vadd.f32 %v8859_v27, %v11694_v52  ;;  %v3656_v19 = vadd.f32 %v11694_v52, %v3540_v49 }
 0x3e0   : > { %v3984_v5 = vshll.u32 %v8179_v54, 16  ;;  %v3964_v24 = vshrl.u32 %v8177_v58, 16  ;;  %v3967_v48 = vshll.u32 %v8177_v58, 16  ;;  %v8862_v30 = vpop.f32.mrb[20].mxu0  ;;  %v4228_v32 = vsel %vm11702_vm2, %v3978_v40, %v4227_v31  ;;  %8921 = vmatpush3.bf16.msra.mxu1 %v11691_v2  ;;  %v4234_v57 = vld [vmem:[#allocation3 + $0x6c] sm:$0xf] }
 0x3e1   : > { %v4221_v53 = vsel %vm11702_vm2, %v3961_v62, %v4220_v15  ;;  %v3689_v28 = vmax.f32 %v3657_v51, 0.0  ;;  %v3687_v3 = vmax.f32 %v3655_v56, 0.0  ;;  %v3553_v14 = vpop.f32.mrb[21].mxu0  ;;  %4229 = vst [vmem:[#allocation3 + $0x60] sm:$0xf] %v4228_v32  ;;  %v3983_v34 = vrot.slane %v3981_v22, 7  ;;  %8922 = vmatprep.subr.bf16.mxu1 %v9966_v60 }
 0x3e2   : > { %4222 = vst [vmem:[#allocation3 + $0x54] sm:$0xf] %v4221_v53  ;;  %v3966_v26 = vrot.slane %v3964_v24, 7  ;;  %v8863_v36 = vpop.f32.mrb[22].mxu0  ;;  %v3661_v39 = vadd.f32 %v8862_v30, %v11694_v52  ;;  %v3659_v2 = vadd.f32 %v11694_v52, %v3553_v14  ;;  %v3690_v31 = vmax.f32 %v3658_v47, 0.0 }
 0x3e3   : > { %v8182_v8 = vpack.c.bf16 %v3689_v28, %v3689_v28  ;;  %v8180_v63 = vpack.c.bf16 %v3687_v3, %v3687_v3  ;;  %v3556_v4 = vpop.f32.mrb[23].mxu0  ;;  %v3986_v29 = vor.u32 %v3984_v5, %v3983_v34  ;;  %v3988_v38 = vrot.slane %v3983_v34, 4  ;;  %v9975_v34 = vld [vmem:[#allocation10 + $0x20] sm:$0xff]  }
 0x3e4   : > { %v3969_v16 = vor.u32 %v3967_v48, %v3966_v26  ;;  %v3971_v59 = vrot.slane %v3966_v26, 4  ;;  %8923 = vmatpush3.bf16.msra.mxu1 %v9966_v60  ;;  %v3688_v15 = vmax.f32 %v3656_v19, 0.0  ;;  %v3693_v54 = vmax.f32 %v3661_v39, 0.0 }
 0x3e5   : > { %v4007_v51 = vshrl.u32 %v8182_v8, 16  ;;  %v4010_v56 = vshll.u32 %v8182_v8, 16  ;;  %v3990_v27 = vshrl.u32 %v8180_v63, 16  ;;  %v3993_v61 = vshll.u32 %v8180_v63, 16  ;;  %8924 = vmatprep.subr.bf16.mxu1 %v9969_v21  ;;  %v11812_v60 = vld [vmem:[#allocation3 + $0x48] sm:$0xff]  }
 0x3e6   : > { %v3987_v44 = vsel %vm10711_vm6, %v3979_v18, %v3986_v29  ;;  %v4232_v13 = vsel %vm11709_vm4, %v3988_v38, %v4231_v12  ;;  %v3970_v23 = vsel %vm10711_vm6, %v3962_v35, %v3969_v16  ;;  %v4225_v49 = vsel %vm11709_vm4, %v3971_v59, %v4224_v46  ;;  %v11806_v9 = vld [vmem:[#allocation3 + $0x3c] sm:$0xff]   ;;  %v4255_v29 = vld [vmem:[#allocation3 + $0x90] sm:$0xf] }
 0x3e7   : > { %4230 = vst [vmem:[#allocation3 + $0x64] sm:$0xf] %v3987_v44  ;;  %4233 = vst [vmem:[#allocation3 + $0x68] sm:$0x1] %v4232_v13  ;;  %v11808_v10 = vrot.slane %v4007_v51, 7  ;;  %v11810_v43 = vrot.slane %v3990_v27, 7  ;;  %v3662_v7 = vadd.f32 %v8863_v36, %v11694_v52  ;;  %v3660_v6 = vadd.f32 %v11694_v52, %v3556_v4  ;;  %8896 = vmatprep.mubr.bf16.mxu1 %v11806_v9 }
 0x3e8   : > { %4223 = vst [vmem:[#allocation3 + $0x58] sm:$0xf] %v3970_v23  ;;  %4226 = vst [vmem:[#allocation3 + $0x5c] sm:$0x1] %v4225_v49  ;;  %v3691_v58 = vmax.f32 %v3659_v2, 0.0  ;;  %v8866_v0 = vpop.f32.mrb[24].mxu0  ;;  %8897 = vmatmul.mubr.bf16.gmra.mrb[4].mxu1 %v11812_v60  ;;  %v8183_v22 = vpack.c.bf16 %v3690_v31, %v3690_v31  ;;  %v8181_v5 = vpack.c.bf16 %v3688_v15, %v3688_v15 }
 0x3e9   : > { %v4012_v20 = vor.u32 %v4010_v56, %v11808_v10  ;;  %v4013_v40 = vrot.slane %v11808_v10, 4  ;;  %v3995_v18 = vor.u32 %v3993_v61, %v11810_v43  ;;  %v3996_v62 = vrot.slane %v11810_v43, 4  ;;  %v3569_v35 = vpop.f32.mrb[25].mxu0  ;;  %8925 = vmatpush3.bf16.msra.mxu1 %v9969_v21  ;;  %v4245_v12 = vld [vmem:[#allocation3 + $0x80] sm:$0x1]  ;;  %v9978_v13 = vld [vmem:[#allocation10 + $0x28] sm:$0xff]  }
 0x3ea   : > { %v8186_v24 = vpack.c.bf16 %v3693_v54, %v3693_v54  ;;  %v8184_v48 = vpack.c.bf16 %v3691_v58, %v3691_v58  ;;  %v11822_v30 = vpop.f32.mrb[26].mxu0  ;;  %v3694_v28 = vmax.f32 %v3662_v7, 0.0  ;;  %v3692_v3 = vmax.f32 %v3660_v6, 0.0  ;;  %8926 = vmatprep.subr.bf16.mxu1 %v9972_v11  ;;  %v4238_v21 = vld [vmem:[#allocation3 + $0x74] sm:$0x1] }
 0x3eb   : > { %v4242_v32 = vsel %vm11702_vm2, %v4012_v20, %v4241_v37  ;;  %v4235_v53 = vsel %vm11702_vm2, %v3995_v18, %v4234_v57  ;;  %v11828_v14 = vpop.f32.mrb[27].mxu0  ;;  %v4015_v26 = vshrl.u32 %v8183_v22, 16  ;;  %v4018_v47 = vshll.u32 %v8183_v22, 16  ;;  %v4248_v43 = vld [vmem:[#allocation3 + $0x84] sm:$0xf] }
 0x3ec   : > { %4243 = vst [vmem:[#allocation3 + $0x78] sm:$0xf] %v4242_v32  ;;  %4236 = vst [vmem:[#allocation3 + $0x6c] sm:$0xf] %v4235_v53  ;;  %v3998_v19 = vshrl.u32 %v8181_v5, 16  ;;  %v4001_v36 = vshll.u32 %v8181_v5, 16  ;;  %v8187_v38 = vpack.c.bf16 %v3694_v28, %v3694_v28  ;;  %v11830_v16 = vpack.c.bf16 %v3692_v3, %v3692_v3 }
 0x3ed   : > { %v4041_v46 = vshrl.u32 %v8186_v24, 16  ;;  %v4044_v8 = vshll.u32 %v8186_v24, 16  ;;  %v4024_v63 = vshrl.u32 %v8184_v48, 16  ;;  %v4027_v39 = vshll.u32 %v8184_v48, 16  ;;  %8927 = vmatpush3.bf16.msra.mxu1 %v9972_v11 }
 0x3ee   : > { %v4017_v2 = vrot.slane %v4015_v26, 7  ;;  %v4000_v4 = vrot.slane %v3998_v19, 7  ;;  %v3665_v27 = vadd.f32 %v8866_v0, %v11694_v52  ;;  %v3663_v61 = vadd.f32 %v11694_v52, %v3569_v35  ;;  %v11840_v44 = vld [vmem:[#allocation3 + $0x60] sm:$0xff]   ;;  %8928 = vmatprep.subr.bf16.mxu1 %v9975_v34  ;;  %v4259_v19 = vld [vmem:[#allocation3 + $0x98] sm:$0x1] }
 0x3ef   : > { %v11832_v59 = vld [vmem:[#allocation3 + $0x54] sm:$0xff]   ;;  %v11834_v51 = vrot.slane %v4041_v46, 7  ;;  %v11836_v56 = vrot.slane %v4024_v63, 7  ;;  %v8870_v31 = vpop.f32.mrb[28].mxu0  ;;  %v4049_v22 = vshrl.u32 %v8187_v38, 16  ;;  %v4052_v5 = vshll.u32 %v8187_v38, 16 }
 0x3f0   : > { %v4020_v23 = vor.u32 %v4018_v47, %v4017_v2  ;;  %v4022_v49 = vrot.slane %v4017_v2, 4  ;;  %v4003_v37 = vor.u32 %v4001_v36, %v4000_v4  ;;  %v4005_v10 = vrot.slane %v4000_v4, 4  ;;  %8900 = vmatprep.mubr.bf16.mxu1 %v11832_v59  ;;  %v3585_v58 = vpop.f32.mrb[29].mxu0 }
 0x3f1   : > { %v4046_v15 = vor.u32 %v4044_v8, %v11834_v51  ;;  %v4047_v11 = vrot.slane %v11834_v51, 4  ;;  %v4029_v57 = vor.u32 %v4027_v39, %v11836_v56  ;;  %v4030_v54 = vrot.slane %v11836_v56, 4  ;;  %8901 = vmatmul.mubr.bf16.gmra.mrb[8].mxu1 %v11840_v44  ;;  %v11856_v18 = vpop.f32.mrb[30].mxu0  ;;  %v4252_v39 = vld [vmem:[#allocation3 + $0x8c] sm:$0x1] }
 0x3f2   : > { %v4021_v7 = vsel %vm10711_vm6, %v4013_v40, %v4020_v23  ;;  %v4246_v6 = vsel %vm11709_vm4, %v4022_v49, %v4245_v12  ;;  %v4004_v0 = vsel %vm10711_vm6, %v3996_v62, %v4003_v37  ;;  %v4239_v20 = vsel %vm11709_vm4, %v4005_v10, %v4238_v21  ;;  %8929 = vmatpush3.bf16.msra.mxu1 %v9975_v34  ;;  %v11862_v24 = vpop.f32.mrb[31].mxu0  ;;  %v9981_v62 = vld [vmem:[#allocation10 + $0x30] sm:$0xff]   ;;  %v11876_v23 = vld [vmem:[#allocation10 + $0x180] sm:$0xff]  }
 0x3f3   : > { %4244 = vst [vmem:[#allocation3 + $0x7c] sm:$0xf] %v4021_v7  ;;  %4247 = vst [vmem:[#allocation3 + $0x80] sm:$0x1] %v4246_v6  ;;  %v4256_v35 = vsel %vm11702_vm2, %v4046_v15, %v4255_v29  ;;  %v4249_v40 = vsel %vm11702_vm2, %v4029_v57, %v4248_v43  ;;  %8930 = vmatprep.subr.bf16.mxu1 %v9978_v13  ;;  %v4032_v48 = vshrl.u32 %v11830_v16, 16  ;;  %v4035_v32 = vshll.u32 %v11830_v16, 16 }
 0x3f4   : > { %4237 = vst [vmem:[#allocation3 + $0x70] sm:$0xf] %v4004_v0  ;;  %4240 = vst [vmem:[#allocation3 + $0x74] sm:$0x1] %v4239_v20  ;;  %v3697_v53 = vmax.f32 %v3665_v27, 0.0  ;;  %v3695_v28 = vmax.f32 %v3663_v61, 0.0  ;;  %v3666_v34 = vadd.f32 %v11822_v30, %v11694_v52  ;;  %v3664_v26 = vadd.f32 %v11694_v52, %v11828_v14 }
 0x3f5   : > { %4257 = vst [vmem:[#allocation3 + $0x90] sm:$0xf] %v4256_v35  ;;  %4250 = vst [vmem:[#allocation3 + $0x84] sm:$0xf] %v4249_v40  ;;  %v4051_v3 = vrot.slane %v4049_v22, 7  ;;  %v3669_v47 = vadd.f32 %v8870_v31, %v11694_v52  ;;  %v4034_v36 = vrot.slane %v4032_v48, 7  ;;  %v3667_v46 = vadd.f32 %v11694_v52, %v3585_v58 }
 0x3f6   : > { %v8190_v12 = vpack.c.bf16 %v3697_v53, %v3697_v53  ;;  %v8188_v21 = vpack.c.bf16 %v3695_v28, %v3695_v28  ;;  %8931 = vmatpush3.bf16.msra.mxu1 %v9978_v13  ;;  %v3698_v2 = vmax.f32 %v3666_v34, 0.0  ;;  %v3696_v4 = vmax.f32 %v3664_v26, 0.0  ;;  %v9984_v29 = vld [vmem:[#allocation10 + $0x38] sm:$0xff]   ;;  %v4262_v43 = vld [vmem:[#allocation3 + $0x9c] sm:$0xf] }
 0x3f7   : > { %v4054_v8 = vor.u32 %v4052_v5, %v4051_v3  ;;  %v4056_v63 = vrot.slane %v4051_v3, 4  ;;  %8932 = vmatprep.subr.bf16.mxu1 %v9981_v62  ;;  %v4037_v30 = vor.u32 %v4035_v32, %v4034_v36  ;;  %v4039_v38 = vrot.slane %v4034_v36, 4  ;;  %v4269_v27 = vld [vmem:[#allocation3 + $0xa8] sm:$0xf]  ;;  %v4273_v34 = vld [vmem:[#allocation3 + $0xb0] sm:$0x1] }
 0x3f8   : > { %v4075_v16 = vshrl.u32 %v8190_v12, 16  ;;  %v4078_v14 = vshll.u32 %v8190_v12, 16  ;;  %v4058_v61 = vshrl.u32 %v8188_v21, 16  ;;  %v4061_v13 = vshll.u32 %v8188_v21, 16  ;;  %v4266_v21 = vld [vmem:[#allocation3 + $0xa4] sm:$0x1] }
 0x3f9   : > { %v4055_v51 = vsel %vm10711_vm6, %v4047_v11, %v4054_v8  ;;  %v4260_v56 = vsel %vm11709_vm4, %v4056_v63, %v4259_v19  ;;  %v4038_v49 = vsel %vm10711_vm6, %v4030_v54, %v4037_v30  ;;  %v4253_v37 = vsel %vm11709_vm4, %v4039_v38, %v4252_v39 }
 0x3fa   : > { %4258 = vst [vmem:[#allocation3 + $0x94] sm:$0xf] %v4055_v51  ;;  %4261 = vst [vmem:[#allocation3 + $0x98] sm:$0x1] %v4260_v56  ;;  %v4077_v10 = vrot.slane %v4075_v16, 7  ;;  %v8191_v31 = vpack.c.bf16 %v3698_v2, %v3698_v2  ;;  %8933 = vmatpush3.bf16.msra.mxu1 %v9981_v62  ;;  %v4060_v11 = vrot.slane %v4058_v61, 7  ;;  %v8189_v57 = vpack.c.bf16 %v3696_v4, %v3696_v4 }
 0x3fb   : > { %v11882_v15 = vld [vmem:[#allocation3 + $0x6c] sm:$0xff]   ;;  %4251 = vst [vmem:[#allocation3 + $0x88] sm:$0xf] %v4038_v49  ;;  %4254 = vst [vmem:[#allocation3 + $0x8c] sm:$0x1] %v4253_v37  ;;  %v3701_v58 = vmax.f32 %v3669_v47, 0.0  ;;  %8934 = vmatprep.subr.bf16.mxu1 %v9984_v29  ;;  %v3670_v47 = vadd.f32 %v11856_v18, %v11694_v52  ;;  %v3668_v19 = vadd.f32 %v11694_v52, %v11862_v24 }
 0x3fc   : > { %v3699_v7 = vmax.f32 %v3667_v46, 0.0  ;;  %v11884_v6 = vld [vmem:[#allocation3 + $0x78] sm:$0xff]   ;;  %v4080_v0 = vor.u32 %v4078_v14, %v4077_v10  ;;  %v4081_v54 = vrot.slane %v4077_v10, 4  ;;  %v4083_v20 = vshrl.u32 %v8191_v31, 16  ;;  %8904 = vmatprep.mubr.bf16.mxu1 %v11882_v15  ;;  %v4283_v14 = vld [vmem:[#allocation3 + $0xc0] sm:$0xf] }
 0x3fd   : > { %v4086_v35 = vshll.u32 %v8191_v31, 16  ;;  %v4063_v40 = vor.u32 %v4061_v13, %v4060_v11  ;;  %v4064_v22 = vrot.slane %v4060_v11, 4  ;;  %v4066_v5 = vshrl.u32 %v8189_v57, 16  ;;  %8905 = vmatmul.mubr.bf16.gmra.mrb[12].mxu1 %v11884_v6  ;;  %v4276_v13 = vld [vmem:[#allocation3 + $0xb4] sm:$0xf] }
 0x3fe   : > { %v4069_v48 = vshll.u32 %v8189_v57, 16  ;;  %v4270_v62 = vsel %vm11702_vm2, %v4080_v0, %v4269_v27  ;;  %v4085_v32 = vrot.slane %v4083_v20, 7  ;;  %v8194_v53 = vpack.c.bf16 %v3701_v58, %v3701_v58  ;;  %8935 = vmatpush3.bf16.msra.mxu1 %v9984_v29  ;;  %v4287_v0 = vld [vmem:[#allocation3 + $0xc8] sm:$0x1] }
 0x3ff   : > { %v8192_v28 = vpack.c.bf16 %v3699_v7, %v3699_v7  ;;  %4271 = vst [vmem:[#allocation3 + $0xa8] sm:$0xf] %v4270_v62  ;;  %v4263_v3 = vsel %vm11702_vm2, %v4063_v40, %v4262_v43  ;;  %v4068_v26 = vrot.slane %v4066_v5, 7  ;;  %8968 = vmatprep.subr.bf16.mxu1 %v11876_v23  ;;  %v3702_v52 = vmax.f32 %v3670_v47, 0.0  ;;  %v4280_v5 = vld [vmem:[#allocation3 + $0xbc] sm:$0x1] }
 0x400   : > { %4264 = vst [vmem:[#allocation3 + $0x9c] sm:$0xf] %v4263_v3  ;;  %v4088_v36 = vor.u32 %v4086_v35, %v4085_v32  ;;  %v4090_v12 = vrot.slane %v4085_v32, 4  ;;  %v4109_v46 = vshrl.u32 %v8194_v53, 16  ;;  %v4112_v8 = vshll.u32 %v8194_v53, 16 }
 0x401   : > { %v4071_v63 = vor.u32 %v4069_v48, %v4068_v26  ;;  %v4073_v39 = vrot.slane %v4068_v26, 4  ;;  %v4092_v2 = vshrl.u32 %v8192_v28, 16  ;;  %v4095_v4 = vshll.u32 %v8192_v28, 16  ;;  %v11907_v27 = vld [vmem:[#allocation3 + $0x90] sm:$0xff]  }
 0x402   : > { %v4089_v29 = vsel %vm10711_vm6, %v4081_v54, %v4088_v36  ;;  %v4274_v18 = vsel %vm11709_vm4, %v4090_v12, %v4273_v34  ;;  %v4111_v30 = vrot.slane %v4109_v46, 7  ;;  %v11901_v24 = vld [vmem:[#allocation3 + $0x84] sm:$0xff]   ;;  %v3700_v56 = vmax.f32 %v3668_v19, 0.0  ;;  %v9991_v46 = vld [vmem:[#allocation10 + $0x1a8] sm:$0xff]  }
 0x403   : > { %4272 = vst [vmem:[#allocation3 + $0xac] sm:$0xf] %v4089_v29  ;;  %4275 = vst [vmem:[#allocation3 + $0xb0] sm:$0x1] %v4274_v18  ;;  %v4072_v38 = vsel %vm10711_vm6, %v4064_v22, %v4071_v63  ;;  %v4267_v16 = vsel %vm11709_vm4, %v4073_v39, %v4266_v21  ;;  %v4094_v51 = vrot.slane %v4092_v2, 7  ;;  %v8195_v49 = vpack.c.bf16 %v3702_v52, %v3702_v52  ;;  %v9985_v19 = vld [vmem:[#allocation3] sm:$0xff]  }
 0x404   : > { %4265 = vst [vmem:[#allocation3 + $0xa0] sm:$0xf] %v4072_v38  ;;  %4268 = vst [vmem:[#allocation3 + $0xa4] sm:$0x1] %v4267_v16  ;;  %v4114_v61 = vor.u32 %v4112_v8, %v4111_v30  ;;  %8908 = vmatprep.mubr.bf16.mxu1 %v11901_v24  ;;  %v8193_v10 = vpack.c.bf16 %v3700_v56, %v3700_v56  ;;  %v4115_v35 = vrot.slane %v4111_v30, 4  ;;  %v9989_v12 = vld [vmem:[#allocation10 + $0x198] sm:$0xff]  }
 0x405   : > { %v4097_v37 = vor.u32 %v4095_v4, %v4094_v51  ;;  %8909 = vmatmul.mubr.bf16.gmra.mrb[16].mxu1 %v11907_v27  ;;  %v4117_v31 = vshrl.u32 %v8195_v49, 16  ;;  %v4120_v7 = vshll.u32 %v8195_v49, 16  ;;  %v4098_v48 = vrot.slane %v4094_v51, 4  ;;  %v9990_v21 = vld [vmem:[#allocation10 + $0x1a0] sm:$0xff]   ;;  %v11953_v63 = vld [vmem:[#allocation3 + $0x34] sm:$0xf] }
 0x406   : > { %v4284_v43 = vsel %vm11702_vm2, %v4114_v61, %v4283_v14  ;;  %v4100_v57 = vshrl.u32 %v8193_v10, 16  ;;  %v4103_v20 = vshll.u32 %v8193_v10, 16  ;;  %v11944_v8 = vld [vmem:[#allocation10 + $0x40] sm:$0xff]   ;;  %v11955_v2 = vld [vmem:[#allocation3 + $0x38] sm:$0x1]  ;;  %v6571_v29 = vrot.slane %v11953_v63, 5 }
 0x407   : > { %4285 = vst [vmem:[#allocation3 + $0xc0] sm:$0xf] %v4284_v43  ;;  %v4277_v11 = vsel %vm11702_vm2, %v4097_v37, %v4276_v13  ;;  %v4119_v58 = vrot.slane %v4117_v31, 7  ;;  %v6479_v39 = vld [vmem:[#allocation3 + $0x30] sm:$0xe]  ;;  %v6574_v61 = vrot.slane %v11955_v2, 5 }
 0x408   : > { %4278 = vst [vmem:[#allocation3 + $0xb4] sm:$0xf] %v4277_v11  ;;  %v4102_v54 = vrot.slane %v4100_v57, 7  ;;  %v11957_v4 = vld [vmem:[#allocation3 + $0x40] sm:$0xf]  ;;  %v8101_v14 = vrot.slane %v6479_v39, 9 }
 0x409   : > { %v4122_v40 = vor.u32 %v4120_v7, %v4119_v58  ;;  %v4124_v22 = vrot.slane %v4119_v58, 4  ;;  %v11960_v18 = vld [vmem:[#allocation3 + $0x4c] sm:$0xf]  ;;  %v6480_v30 = vld [vmem:[#allocation3 + $0x3c] sm:$0xe]  ;;  %v6573_v56 = vrot.slane %v6571_v29, 4 }
 0x40a   : > { %v4105_v62 = vor.u32 %v4103_v20, %v4102_v54  ;;  %v4107_v32 = vrot.slane %v4102_v54, 4  ;;  %v11921_v3 = vld [vmem:[#allocation3 + $0xa8] sm:$0xff]   ;;  %v11962_v38 = vld [vmem:[#allocation3 + $0x44] sm:$0x1]  ;;  %v11964_v16 = vld [vmem:[#allocation3 + $0x50] sm:$0x1]  ;;  %v6572_v37 = vsel %vm11458_vm15, %v8101_v14, %v6571_v29 }
 0x40b   : > { %v11915_v53 = vld [vmem:[#allocation3 + $0x9c] sm:$0xff]   ;;  %v4123_v41 = vsel %vm10711_vm6, %v4115_v35, %v4122_v40  ;;  %v4288_v28 = vsel %vm11709_vm4, %v4124_v22, %v4287_v0  ;;  %v6481_v52 = vld [vmem:[#allocation3 + $0x48] sm:$0xe]  ;;  %v11967_v51 = vld [vmem:[#allocation3 + $0x58] sm:$0xf]  ;;  %v6578_v13 = vrot.slane %v11957_v4, 5  ;;  %v6575_v57 = vsel %vm11458_vm15, %v6573_v56, %v6574_v61 }
 0x40c   : > { %4286 = vst [vmem:[#allocation3 + $0xc4] sm:$0xf] %v4123_v41  ;;  %4289 = vst [vmem:[#allocation3 + $0xc8] sm:$0x1] %v4288_v28  ;;  %v4106_v34 = vsel %vm10711_vm6, %v4098_v48, %v4105_v62  ;;  %v4281_v26 = vsel %vm11709_vm4, %v4107_v32, %v4280_v5  ;;  %8912 = vmatprep.mubr.bf16.mxu1 %v11915_v53  ;;  %v11972_v49 = vld [vmem:[#allocation3 + $0x5c] sm:$0x1] }
 0x40d   : > { %4279 = vst [vmem:[#allocation3 + $0xb8] sm:$0xf] %v4106_v34  ;;  %4282 = vst [vmem:[#allocation3 + $0xbc] sm:$0x1] %v4281_v26  ;;  %8913 = vmatmul.mubr.bf16.gmra.mrb[20].mxu1 %v11921_v3  ;;  %v8102_v10 = vrot.slane %v6480_v30, 9  ;;  %v6585_v43 = vrot.slane %v11960_v18, 5 }
 0x40e   : > { %v6482_v31 = vld [vmem:[#allocation3 + $0x54] sm:$0xe]  ;;  %v11977_v11 = vld [vmem:[#allocation3 + $0x64] sm:$0xf]  ;;  %v6580_v58 = vrot.slane %v6578_v13, 4  ;;  %v6581_v7 = vrot.slane %v11962_v38, 5 }
 0x40f   : > { %v8103_v0 = vrot.slane %v6481_v52, 9  ;;  %v11982_v54 = vld [vmem:[#allocation3 + $0x68] sm:$0x1]  ;;  %v6579_v20 = vsel %vm11458_vm15, %v8102_v10, %v6578_v13  ;;  %v6587_v35 = vrot.slane %v6585_v43, 4  ;;  %v6588_v40 = vrot.slane %v11964_v16, 5  ;;  %v9996_v13 = vld [vmem:[#allocation10 + $0x50] sm:$0xff]  }
 0x410   : > { %v6483_v22 = vld [vmem:[#allocation3 + $0x60] sm:$0xe]  ;;  %v11989_v5 = vld [vmem:[#allocation3 + $0x70] sm:$0xf]  ;;  %v6582_v48 = vsel %vm11458_vm15, %v6580_v58, %v6581_v7  ;;  %v8104_v32 = vrot.slane %v6482_v31, 9  ;;  %v6592_v41 = vrot.slane %v11967_v51, 5 }
 0x411   : > { %v6586_v62 = vsel %vm11458_vm15, %v8103_v0, %v6585_v43  ;;  %v6484_v28 = vld [vmem:[#allocation3 + $0x6c] sm:$0xe]  ;;  %v11996_v34 = vld [vmem:[#allocation3 + $0x74] sm:$0x1]  ;;  %v11998_v26 = vld [vmem:[#allocation3 + $0x7c] sm:$0xf] }
 0x412   : > { %v6602_v39 = vrot.slane %v11982_v54, 5  ;;  %v6485_v29 = vld [vmem:[#allocation3 + $0x78] sm:$0xe]  ;;  %v12009_v30 = vld [vmem:[#allocation3 + $0x80] sm:$0x1]  ;;  %v6593_v52 = vsel %vm11458_vm15, %v8104_v32, %v6592_v41  ;;  %v8106_v56 = vrot.slane %v6484_v28, 9 }
 0x413   : > { %v11931_v36 = vld [vmem:[#allocation3 + $0xc0] sm:$0xff]   ;;  %v6606_v61 = vrot.slane %v11989_v5, 5  ;;  %v12017_v10 = vld [vmem:[#allocation3 + $0x8c] sm:$0x1]  ;;  %v6613_v58 = vrot.slane %v11998_v26, 5 }
 0x414   : > { %v11929_v47 = vld [vmem:[#allocation3 + $0xb4] sm:$0xff]   ;;  %v6487_v32 = vld [vmem:[#allocation3 + $0x90] sm:$0xe] }
 0x415   : > { %8916 = vmatprep.mubr.bf16.mxu1 %v11929_v47  ;;  %v6607_v28 = vsel %vm11458_vm15, %v8106_v56, %v6606_v61  ;;  %v12056_v56 = vld [vmem:[#allocation3 + $0xb0] sm:$0x1] }
 0x416   : > { %8917 = vmatmul.mubr.bf16.gmra.mrb[24].mxu1 %v11931_v36 }
 0x417   : > { %8936 = vmatprep.mubr.bf16.mxu1 %v9985_v19  ;;  %v12000_v19 = vcombine.low %v6579_v20, %v6582_v48  ;;  %v6608_v20 = vrot.slane %v6606_v61, 4 }
 0x419   : > { %12713 = vst [vmem:[#allocation20_spill] sm:$0xff] %v12000_v19 }
 0x41e   : > { %8937 = vmatmul.mubr.bf16.vlgmr.msra.gmra.mrb[28].mxu1 %v11743_v17  ;;  %v9992_v17 = vld [vmem:[#allocation10 + $0x1b0] sm:$0xff]  }
 0x41f   : > { %8969 = vmatpush3.bf16.msra.mxu1 %v11876_v23  ;;  %8940 = vmatprep.mubr.bf16.mxu1 %v11745_v45  ;;  %v9993_v23 = vld [vmem:[#allocation10 + $0x1b8] sm:$0xff]  }
 0x420   : > { %8970 = vmatprep.subr.bf16.mxu1 %v9987_v25 }
 0x423   : > { %8971 = vmatpush3.bf16.msra.mxu1 %v9987_v25  ;;  %v6589_v25 = vsel %vm11458_vm15, %v6587_v35, %v6588_v40  ;;  %v8107_v35 = vrot.slane %v6485_v29, 9  ;;  %v6486_v40 = vld [vmem:[#allocation3 + $0x84] sm:$0xe] }
 0x424   : > { %8972 = vmatprep.subr.bf16.mxu1 %v9988_v50  ;;  %v8108_v29 = vrot.slane %v6486_v40, 9 }
 0x426   : > { %8941 = vmatmul.mubr.bf16.gmra.mrb[0].mxu1 %v11775_v33 }
 0x427   : > { %8944 = vmatprep.mubr.bf16.mxu1 %v11777_v1  ;;  %8973 = vmatpush3.bf16.msra.mxu1 %v9988_v50  ;;  %v6595_v50 = vrot.slane %v11972_v49, 5 }
 0x428   : > { %8974 = vmatprep.subr.bf16.mxu1 %v9989_v12 }
 0x42b   : > { %8975 = vmatpush3.bf16.msra.mxu1 %v9989_v12  ;;  %v6599_v12 = vrot.slane %v11977_v11, 5 }
 0x42c   : > { %8976 = vmatprep.subr.bf16.mxu1 %v9990_v21 }
 0x42d   : > { %v6601_v14 = vrot.slane %v6599_v12, 4 }
 0x42e   : > { %8945 = vmatmul.mubr.bf16.gmra.mrb[4].mxu1 %v11806_v9 }
 0x42f   : > { %8948 = vmatprep.mubr.bf16.mxu1 %v11812_v60  ;;  %8977 = vmatpush3.bf16.msra.mxu1 %v9990_v21  ;;  %v9995_v21 = vld [vmem:[#allocation10 + $0x48] sm:$0xff]   ;;  %v6603_v0 = vsel %vm11458_vm15, %v6601_v14, %v6602_v39  ;;  %v6488_v14 = vld [vmem:[#allocation3 + $0x9c] sm:$0xe] }
 0x430   : > { %8978 = vmatprep.subr.bf16.mxu1 %v9991_v46 }
 0x433   : > { %8979 = vmatpush3.bf16.msra.mxu1 %v9991_v46  ;;  %v12006_v46 = vcombine.low %v6586_v62, %v6589_v25  ;;  %v6615_v62 = vrot.slane %v6613_v58, 4 }
 0x434   : > { %8980 = vmatprep.subr.bf16.mxu1 %v9992_v17 }
 0x435   : > { %12714 = vst [vmem:[#allocation21_spill] sm:$0xff] %v12006_v46 }
 0x436   : > { %8949 = vmatmul.mubr.bf16.gmra.mrb[8].mxu1 %v11832_v59 }
 0x437   : > { %8952 = vmatprep.mubr.bf16.mxu1 %v11840_v44  ;;  %8981 = vmatpush3.bf16.msra.mxu1 %v9992_v17  ;;  %v6594_v17 = vrot.slane %v6592_v41, 4  ;;  %v12040_v41 = vld [vmem:[#allocation3 + $0xa4] sm:$0x1] }
 0x438   : > { %8982 = vmatprep.subr.bf16.mxu1 %v9993_v23 }
 0x439   : > { %v6596_v43 = vsel %vm11458_vm15, %v6594_v17, %v6595_v50  ;;  %v6614_v50 = vsel %vm11458_vm15, %v8107_v35, %v6613_v58  ;;  %v12049_v17 = vld [vmem:[#allocation3 + $0xac] sm:$0xf]  ;;  %v9997_v58 = vld [vmem:[#allocation10 + $0x58] sm:$0xff]  }
 0x43a   : > { %v12029_v7 = vcombine.low %v6593_v52, %v6596_v43 }
 0x43b   : > { %8983 = vmatpush3.bf16.msra.mxu1 %v9993_v23  ;;  %v8105_v23 = vrot.slane %v6483_v22, 9  ;;  %v12033_v22 = vld [vmem:[#allocation3 + $0x98] sm:$0x1] }
 0x43c   : > { %9016 = vmatprep.subr.bf16.mxu1 %v11944_v8  ;;  %12715 = vst [vmem:[#allocation24_spill] sm:$0xff] %v12029_v7  ;;  %v6630_v35 = vrot.slane %v12033_v22, 5 }
 0x43d   : > { %v6600_v31 = vsel %vm11458_vm15, %v8105_v23, %v6599_v12 }
 0x43e   : > { %8953 = vmatmul.mubr.bf16.gmra.mrb[12].mxu1 %v11882_v15  ;;  %v12035_v48 = vcombine.low %v6600_v31, %v6603_v0  ;;  %v6623_v31 = vrot.slane %v12017_v10, 5 }
 0x43f   : > { %8956 = vmatprep.mubr.bf16.mxu1 %v11884_v6 }
 0x440   : > { %12716 = vst [vmem:[#allocation22_spill] sm:$0xff] %v12035_v48 }
 0x446   : > { %8957 = vmatmul.mubr.bf16.gmra.mrb[16].mxu1 %v11901_v24 }
 0x447   : > { %8960 = vmatprep.mubr.bf16.mxu1 %v11907_v27 }
 0x44e   : > { %8961 = vmatmul.mubr.bf16.gmra.mrb[20].mxu1 %v11915_v53 }
 0x44f   : > { %8964 = vmatprep.mubr.bf16.mxu1 %v11921_v3 }
 0x456   : > { %8965 = vmatmul.mubr.bf16.gmra.mrb[24].mxu1 %v11929_v47 }
 0x457   : > { %8984 = vmatprep.mubr.bf16.mxu1 %v11745_v45  ;;  %v11984_v45 = vcombine.low %v6572_v37, %v6575_v57  ;;  %v12015_v37 = vld [vmem:[#allocation3 + $0x88] sm:$0xf]  ;;  %v6609_v57 = vrot.slane %v11996_v34, 5 }
 0x458   : > { %v6620_v12 = vrot.slane %v12015_v37, 5 }
 0x459   : > { %12712 = vst [vmem:[#allocation19_spill] sm:$0xff] %v11984_v45  ;;  %v6610_v25 = vsel %vm11458_vm15, %v6608_v20, %v6609_v57  ;;  %v8109_v57 = vrot.slane %v6487_v32, 9  ;;  %v8110_v32 = vrot.slane %v6488_v14, 9 }
 0x45a   : > { %v12051_v23 = vcombine.low %v6607_v28, %v6610_v25  ;;  %v6622_v43 = vrot.slane %v6620_v12, 4  ;;  %v6621_v0 = vsel %vm11458_vm15, %v8108_v29, %v6620_v12  ;;  %v6641_v25 = vrot.slane %v12049_v17, 5  ;;  %v12075_v12 = vld [vmem:[#allocation3 + $0xc4] sm:$0xf] }
 0x45c   : > { %12717 = vst [vmem:[#allocation23_spill] sm:$0xff] %v12051_v23  ;;  %v9998_v23 = vld [vmem:[#allocation10 + $0x60] sm:$0xff]  }
 0x45e   : > { %8985 = vmatmul.mubr.bf16.vlgmr.msra.gmra.mrb[28].mxu1 %v11775_v33  ;;  %v12027_v33 = vld [vmem:[#allocation3 + $0x94] sm:$0xf] }
 0x45f   : > { %9017 = vmatpush3.bf16.msra.mxu1 %v11944_v8  ;;  %8988 = vmatprep.mubr.bf16.mxu1 %v11777_v1  ;;  %v6616_v8 = vrot.slane %v12009_v30, 5  ;;  %v12038_v1 = vld [vmem:[#allocation3 + $0xa0] sm:$0xf]  ;;  %v6627_v52 = vrot.slane %v12027_v33, 5 }
 0x460   : > { %9018 = vmatprep.subr.bf16.mxu1 %v9995_v21  ;;  %v6634_v40 = vrot.slane %v12038_v1, 5 }
 0x461   : > { %v6617_v39 = vsel %vm11458_vm15, %v6615_v62, %v6616_v8  ;;  %v6629_v20 = vrot.slane %v6627_v52, 4  ;;  %v6489_v62 = vld [vmem:[#allocation3 + $0xa8] sm:$0xe]  ;;  %v6624_v8 = vsel %vm11458_vm15, %v6622_v43, %v6623_v31  ;;  %v6628_v28 = vsel %vm11458_vm15, %v8109_v57, %v6627_v52  ;;  %v6490_v57 = vld [vmem:[#allocation3 + $0xb4] sm:$0xe] }
 0x462   : > { %v12058_v61 = vcombine.low %v6614_v50, %v6617_v39  ;;  %v12073_v50 = vld [vmem:[#allocation3 + $0xbc] sm:$0x1]  ;;  %v12077_v39 = vcombine.low %v6621_v0, %v6624_v8  ;;  %v6637_v43 = vrot.slane %v12040_v41, 5  ;;  %v8111_v14 = vrot.slane %v6489_v62, 9  ;;  %v12086_v0 = vld [vmem:[#allocation3 + $0xc8] sm:$0x1] }
 0x463   : > { %9019 = vmatpush3.bf16.msra.mxu1 %v9995_v21  ;;  %v12065_v21 = vld [vmem:[#allocation3 + $0xb8] sm:$0xf]  ;;  %v6631_v29 = vsel %vm11458_vm15, %v6629_v20, %v6630_v35  ;;  %v6643_v31 = vrot.slane %v6641_v25, 4  ;;  %v6635_v20 = vsel %vm11458_vm15, %v8110_v32, %v6634_v40  ;;  %v6651_v32 = vrot.slane %v12073_v50, 5 }
 0x464   : > { %12718 = vst [vmem:[#allocation25_spill] sm:$0xff] %v12058_v61  ;;  %9020 = vmatprep.subr.bf16.mxu1 %v9996_v13  ;;  %12719 = vst [vmem:[#allocation26_spill] sm:$0xff] %v12077_v39  ;;  %v6636_v61 = vrot.slane %v6634_v40, 4  ;;  %v12083_v52 = vcombine.low %v6628_v28, %v6631_v29  ;;  %v6642_v62 = vsel %vm11458_vm15, %v8111_v14, %v6641_v25  ;;  %v6980_v29 = vrot.slane %v12075_v12, 5 }
 0x465   : > { %v8112_v39 = vrot.slane %v6490_v57, 9 }
 0x466   : > { %8989 = vmatmul.mubr.bf16.gmra.mrb[0].mxu1 %v11806_v9  ;;  %12720 = vst [vmem:[#allocation27_spill] sm:$0xff] %v12083_v52  ;;  %v6644_v9 = vrot.slane %v12056_v56, 5  ;;  %v6638_v35 = vsel %vm11458_vm15, %v6636_v61, %v6637_v43  ;;  %v6982_v43 = vrot.slane %v6980_v29, 4 }
 0x467   : > { %8992 = vmatprep.mubr.bf16.mxu1 %v11812_v60  ;;  %9021 = vmatpush3.bf16.msra.mxu1 %v9996_v13  ;;  %v6648_v60 = vrot.slane %v12065_v21, 5  ;;  %v6491_v13 = vld [vmem:[#allocation3 + $0xc0] sm:$0xe]  ;;  %v12093_v8 = vcombine.low %v6635_v20, %v6638_v35  ;;  %v6983_v20 = vrot.slane %v12086_v0, 5  ;;  %v9999_v35 = vld [vmem:[#allocation10 + $0x68] sm:$0xff]  }
 0x468   : > { %9022 = vmatprep.subr.bf16.mxu1 %v9997_v58  ;;  %v6645_v28 = vsel %vm11458_vm15, %v6643_v31, %v6644_v9  ;;  %v8137_v61 = vrot.slane %v6491_v13, 9  ;;  %v12120_v13 = vld [vmem:[#allocation10 + $0x100] sm:$0xff]  }
 0x469   : > { %12721 = vst [vmem:[#allocation28_spill] sm:$0xff] %v12093_v8  ;;  %v12100_v52 = vcombine.low %v6642_v62, %v6645_v28  ;;  %v6650_v40 = vrot.slane %v6648_v60, 4  ;;  %v6649_v25 = vsel %vm11458_vm15, %v8112_v39, %v6648_v60  ;;  %v10000_v39 = vld [vmem:[#allocation10 + $0x70] sm:$0xff]   ;;  %v10001_v60 = vld [vmem:[#allocation10 + $0x78] sm:$0xff]   ;;  %v5146_v28 = vld [vmem:[#allocation3 + $0xc] sm:$0xf] }
 0x46a   : > { %v6981_v9 = vsel %vm11458_vm15, %v8137_v61, %v6980_v29  ;;  %v12123_v62 = vld [vmem:[#allocation3 + $0x4] sm:$0xf]  ;;  %v12129_v29 = vld [vmem:[#allocation3 + $0x10] sm:$0xf]  ;;  %v5225_v61 = vshll.u32 %v5146_v28, 16 }
 0x46b   : > { %12722 = vst [vmem:[#allocation29_spill] sm:$0xff] %v12100_v52  ;;  %9023 = vmatpush3.bf16.msra.mxu1 %v9997_v58  ;;  %v6652_v14 = vsel %vm11458_vm15, %v6650_v40, %v6651_v32  ;;  %v6984_v58 = vsel %vm11458_vm15, %v6982_v43, %v6983_v20  ;;  %12725 = vst [vmem:[#allocation32_spill] sm:$0xff] %v12129_v29  ;;  %v5149_v40 = vld [vmem:[#allocation3 + $0x18] sm:$0xf]  ;;  %v5222_v32 = vshrl.u32 %v5146_v28, 16 }
 0x46c   : > { %9024 = vmatprep.subr.bf16.mxu1 %v9998_v23  ;;  %v12108_v31 = vcombine.low %v6649_v25, %v6652_v14  ;;  %v12115_v57 = vcombine.low %v6981_v9, %v6984_v58  ;;  %v12131_v43 = vld [vmem:[#allocation3 + $0x1c] sm:$0xf]  ;;  %v12137_v14 = vld [vmem:[#allocation3 + $0x8] sm:$0x1]  ;;  %v5231_v9 = vshll.u32 %v12129_v29, 16  ;;  %v5235_v58 = vshrl.u32 %v12129_v29, 16 }
 0x46d   : > { %12726 = vst [vmem:[#allocation33_spill] sm:$0xff] %v12131_v43  ;;  %12728 = vst [vmem:[#allocation35_spill] sm:$0xff] %v12137_v14  ;;  %v5217_v52 = vshll.u32 %v12137_v14, 16 }
 0x46e   : > { %12723 = vst [vmem:[#allocation18_spill] sm:$0xff] %v12108_v31  ;;  %8993 = vmatmul.mubr.bf16.gmra.mrb[4].mxu1 %v11832_v59  ;;  %12724 = vst [vmem:[#allocation31_spill] sm:$0xff] %v12115_v57  ;;  %v5143_v59 = vld [vmem:[#allocation3] sm:$0xf]  ;;  %v12149_v8 = vrot.slane %v5231_v9, 5 }
 0x46f   : > { %8996 = vmatprep.mubr.bf16.mxu1 %v11840_v44  ;;  %9025 = vmatpush3.bf16.msra.mxu1 %v9998_v23  ;;  %v5198_v44 = vshrl.u32 %v5143_v59, 16  ;;  %v5201_v23 = vshll.u32 %v5143_v59, 16  ;;  %v5255_v59 = vshll.u32 %v12131_v43, 16  ;;  %v12157_v9 = vld [vmem:[#allocation3 + $0x14] sm:$0x1] }
 0x470   : > { %9026 = vmatprep.subr.bf16.mxu1 %v9999_v35  ;;  %12729 = vst [vmem:[#allocation36_spill] sm:$0xff] %v12157_v9 }
 0x471   : > { %v5200_v20 = vrot.slane %v5198_v44, 4  ;;  %v5259_v44 = vshrl.u32 %v12131_v43, 16  ;;  %v12151_v46 = vrot.slane %v5255_v59, 5 }
 0x473   : > { %9027 = vmatpush3.bf16.msra.mxu1 %v9999_v35  ;;  %v5203_v35 = vrot.slane %v5201_v23, 5  ;;  %v5224_v23 = vrot.slane %v5222_v32, 4 }
 0x474   : > { %9028 = vmatprep.subr.bf16.mxu1 %v10000_v39 }
 0x475   : > { %v5204_v57 = vor.u32 %v5203_v35, %v5200_v20  ;;  %v5219_v35 = vrot.slane %v5217_v52, 5 }
 0x476   : > { %8997 = vmatmul.mubr.bf16.gmra.mrb[8].mxu1 %v11882_v15  ;;  %v5207_v15 = vshll.u32 %v12123_v62, 16 }
 0x477   : > { %9000 = vmatprep.mubr.bf16.mxu1 %v11884_v6  ;;  %9029 = vmatpush3.bf16.msra.mxu1 %v10000_v39  ;;  %v5211_v6 = vshrl.u32 %v12123_v62, 16  ;;  %v5246_v39 = vshrl.u32 %v5149_v40, 16 }
 0x478   : > { %9030 = vmatprep.subr.bf16.mxu1 %v10001_v60  ;;  %v12133_v25 = vrot.slane %v5207_v15, 5  ;;  %v5152_v15 = vld [vmem:[#allocation3 + $0x24] sm:$0xf] }
 0x479   : > { %v5248_v48 = vrot.slane %v5246_v39, 4  ;;  %v5270_v32 = vshrl.u32 %v5152_v15, 16  ;;  %v5273_v19 = vshll.u32 %v5152_v15, 16 }
 0x47b   : > { %9031 = vmatpush3.bf16.msra.mxu1 %v10001_v60  ;;  %v5249_v60 = vshll.u32 %v5149_v40, 16  ;;  %v5227_v40 = vrot.slane %v5225_v61, 5  ;;  %v5272_v59 = vrot.slane %v5270_v32, 4 }
 0x47c   : > { %9064 = vmatprep.subr.bf16.mxu1 %v12120_v13 }
 0x47d   : > { %v5251_v7 = vrot.slane %v5249_v60, 5  ;;  %v5228_v29 = vor.u32 %v5227_v40, %v5224_v23  ;;  %v10002_v40 = vld [vmem:[#allocation3 + $0xcc] sm:$0xff]  }
 0x47e   : > { %9001 = vmatmul.mubr.bf16.gmra.mrb[12].mxu1 %v11901_v24  ;;  %v5213_v24 = vrot.slane %v5211_v6, 4 }
 0x47f   : > { %9004 = vmatprep.mubr.bf16.mxu1 %v11907_v27  ;;  %v12135_v27 = vld [vmem:[#allocation3 + $0x28] sm:$0xf]  ;;  %v5252_v39 = vor.u32 %v5251_v7, %v5248_v48  ;;  %v5303_v7 = vshll.u32 %v11953_v63, 16  ;;  %v5307_v48 = vshrl.u32 %v11953_v63, 16 }
 0x480   : > { %12727 = vst [vmem:[#allocation34_spill] sm:$0xff] %v12135_v27  ;;  %v5279_v6 = vshll.u32 %v12135_v27, 16  ;;  %v5283_v28 = vshrl.u32 %v12135_v27, 16  ;;  %v5214_v31 = vor.u32 %v5213_v24, %v12133_v25  ;;  %v5205_v27 = vrot.slane %v5204_v57, 4  ;;  %v5155_v24 = vld [vmem:[#allocation3 + $0x30] sm:$0xf] }
 0x481   : > { %v12163_v57 = vld [vmem:[#allocation3 + $0x2c] sm:$0x1]  ;;  %v5297_v23 = vshll.u32 %v5155_v24, 16  ;;  %v12176_v42 = vrot.slane %v5303_v7, 5  ;;  %v5309_v63 = vrot.slane %v5307_v48, 4 }
 0x482   : > { %v12153_v45 = vrot.slane %v5279_v6, 5  ;;  %v5285_v43 = vrot.slane %v5283_v28, 4  ;;  %v5215_v20 = vrot.slane %v5214_v31, 4  ;;  %v5294_v31 = vshrl.u32 %v5155_v24, 16 }
 0x483   : > { %v5310_v7 = vor.u32 %v5309_v63, %v12176_v42 }
 0x484   : > { %v5286_v52 = vor.u32 %v5285_v43, %v12153_v45  ;;  %v5220_v15 = vsel %vm11098_vm12, %v5215_v20, %v5219_v35  ;;  %v5158_v43 = vld [vmem:[#allocation3 + $0x3c] sm:$0xf]  ;;  %v5296_v20 = vrot.slane %v5294_v31, 4  ;;  %v5299_v35 = vrot.slane %v5297_v23, 5 }
 0x486   : > { %9005 = vmatmul.mubr.bf16.gmra.mrb[16].mxu1 %v11915_v53  ;;  %v5237_v53 = vrot.slane %v5235_v58, 4  ;;  %v12159_v58 = vld [vmem:[#allocation3 + $0x20] sm:$0x1]  ;;  %v5287_v24 = vrot.slane %v5286_v52, 4  ;;  %v5161_v52 = vld [vmem:[#allocation3 + $0x48] sm:$0xf] }
 0x487   : > { %9008 = vmatprep.mubr.bf16.mxu1 %v11921_v3  ;;  %v5261_v3 = vrot.slane %v5259_v44, 4  ;;  %12730 = vst [vmem:[#allocation37_spill] sm:$0xff] %v12159_v58  ;;  %v5275_v44 = vrot.slane %v5273_v19, 5  ;;  %v5229_v19 = vrot.slane %v5228_v29, 4  ;;  %v5265_v28 = vshll.u32 %v12159_v58, 16 }
 0x488   : > { %v5238_v61 = vor.u32 %v5237_v53, %v12149_v8  ;;  %v5253_v53 = vrot.slane %v5252_v39, 4  ;;  %v5318_v29 = vshrl.u32 %v5158_v43, 16 }
 0x489   : > { %v5262_v60 = vor.u32 %v5261_v3, %v12151_v46  ;;  %v5276_v32 = vor.u32 %v5275_v44, %v5272_v59  ;;  %v5234_v58 = vsel %vm11098_vm12, %v5229_v19, %v12149_v8  ;;  %v5267_v14 = vrot.slane %v5265_v28, 5 }
 0x48a   : > { %v5239_v6 = vrot.slane %v5238_v61, 4  ;;  %v5321_v61 = vshll.u32 %v5158_v43, 16  ;;  %v5327_v59 = vshll.u32 %v11957_v4, 16  ;;  %v5331_v44 = vshrl.u32 %v11957_v4, 16 }
 0x48b   : > { %v5263_v3 = vrot.slane %v5262_v60, 4  ;;  %v5277_v39 = vrot.slane %v5276_v32, 4  ;;  %v5258_v23 = vsel %vm11098_vm12, %v5253_v53, %v12151_v46  ;;  %v5320_v48 = vrot.slane %v5318_v29, 4  ;;  %v5164_v32 = vld [vmem:[#allocation3 + $0x54] sm:$0xf] }
 0x48c   : > { %v5323_v4 = vrot.slane %v5321_v61, 5  ;;  %v5342_v19 = vshrl.u32 %v5161_v52, 16  ;;  %v5351_v28 = vshll.u32 %v11960_v18, 16  ;;  %v5333_v43 = vrot.slane %v5331_v44, 4 }
 0x48d   : > { %v5268_v8 = vsel %vm11098_vm12, %v5263_v3, %v5267_v14  ;;  %v5282_v46 = vsel %vm11098_vm12, %v5277_v39, %v12153_v45  ;;  %v5313_v14 = vshll.u32 %v11955_v2, 16  ;;  %v5366_v39 = vshrl.u32 %v5164_v32, 16 }
 0x48e   : > { %9009 = vmatmul.mubr.bf16.gmra.mrb[20].mxu1 %v11929_v47  ;;  %v5210_v47 = vsel %vm11098_vm12, %v5205_v27, %v12133_v25  ;;  %v5289_v25 = vshll.u32 %v12163_v57, 16  ;;  %v12203_v53 = vcombine.low %v5258_v23, %v5268_v8  ;;  %v5344_v45 = vrot.slane %v5342_v19, 4  ;;  %v10005_v23 = vld [vmem:[#allocation10 + $0x110] sm:$0xff]  }
 0x48f   : > { %9012 = vmatprep.mubr.bf16.mxu1 %v11931_v36  ;;  %v5241_v36 = vshll.u32 %v12157_v9, 16  ;;  %v8055_v27 = vcombine.low %v5210_v47, %v5220_v15  ;;  %v5300_v47 = vor.u32 %v5299_v35, %v5296_v20  ;;  %v5337_v20 = vshll.u32 %v11962_v38, 16  ;;  %v5167_v35 = vld [vmem:[#allocation3 + $0x60] sm:$0xf] }
 0x490   : > { %v5291_v60 = vrot.slane %v5289_v25, 5  ;;  %v10004_v25 = vld [vmem:[#allocation10 + $0x108] sm:$0xff]   ;;  %v12208_v2 = vrot.slane %v5351_v28, 5  ;;  %v5379_v38 = vshrl.u32 %v11967_v51, 16  ;;  %v5390_v44 = vshrl.u32 %v5167_v35, 16 }
 0x491   : > { %v5243_v9 = vrot.slane %v5241_v36, 5  ;;  %v5345_v36 = vshll.u32 %v5161_v52, 16  ;;  %v5393_v52 = vshll.u32 %v5167_v35, 16  ;;  %v5339_v8 = vrot.slane %v5337_v20, 5 }
 0x492   : > { %v5292_v15 = vsel %vm11098_vm12, %v5287_v24, %v5291_v60  ;;  %v5311_v24 = vrot.slane %v5310_v7, 4  ;;  %v5369_v60 = vshll.u32 %v5164_v32, 16  ;;  %v5361_v19 = vshll.u32 %v11964_v16, 16  ;;  %v10006_v32 = vld [vmem:[#allocation10 + $0x118] sm:$0xff]  }
 0x493   : > { %v5244_v31 = vsel %vm11098_vm12, %v5239_v6, %v5243_v9  ;;  %v5355_v9 = vshrl.u32 %v11960_v18, 16  ;;  %v12199_v6 = vrot.slane %v5327_v59, 5  ;;  %v12205_v3 = vcombine.low %v5282_v46, %v5292_v15 }
 0x494   : > { %v5324_v18 = vor.u32 %v5323_v4, %v5320_v48  ;;  %v5347_v63 = vrot.slane %v5345_v36, 5  ;;  %v5375_v59 = vshll.u32 %v11967_v51, 16  ;;  %v5403_v15 = vshrl.u32 %v11977_v11, 16 }
 0x495   : > { %v5357_v29 = vrot.slane %v5355_v9, 4  ;;  %v5334_v61 = vor.u32 %v5333_v43, %v12199_v6  ;;  %v5368_v36 = vrot.slane %v5366_v39, 4  ;;  %v5371_v28 = vrot.slane %v5369_v60, 5  ;;  %v5170_v43 = vld [vmem:[#allocation3 + $0x6c] sm:$0xf] }
 0x496   : > { %9013 = vmatmul.mubr.bf16.gmra.mrb[24].mxu1 %v10002_v40  ;;  %v12201_v40 = vcombine.low %v5234_v58, %v5244_v31  ;;  %v5315_v58 = vrot.slane %v5313_v14, 5  ;;  %v5325_v7 = vrot.slane %v5324_v18, 4  ;;  %v5348_v48 = vor.u32 %v5347_v63, %v5344_v45 }
 0x497   : > { %9032 = vmatprep.mubr.bf16.mxu1 %v8055_v27  ;;  %v5301_v27 = vrot.slane %v5300_v47, 4  ;;  %v5399_v47 = vshll.u32 %v11977_v11, 16  ;;  %v5358_v51 = vor.u32 %v5357_v29, %v12208_v2  ;;  %v5335_v4 = vrot.slane %v5334_v61, 4 }
 0x498   : > { %v5381_v9 = vrot.slane %v5379_v38, 4  ;;  %v5392_v46 = vrot.slane %v5390_v44, 4  ;;  %v5395_v14 = vrot.slane %v5393_v52, 5  ;;  %v5423_v18 = vshll.u32 %v11989_v5, 16  ;;  %v10007_v52 = vld [vmem:[#allocation10 + $0x120] sm:$0xff]  }
 0x499   : > { %v5306_v31 = vsel %vm11098_vm12, %v5301_v27, %v12176_v42  ;;  %v12225_v42 = vrot.slane %v5375_v59, 5  ;;  %v12229_v27 = vrot.slane %v5399_v47, 5  ;;  %v5427_v16 = vshrl.u32 %v11989_v5, 16  ;;  %v5173_v47 = vld [vmem:[#allocation3 + $0x78] sm:$0xf] }
 0x49a   : > { %v5359_v35 = vrot.slane %v5358_v51, 4  ;;  %v5330_v63 = vsel %vm11098_vm12, %v5325_v7, %v12199_v6  ;;  %v5340_v29 = vsel %vm11098_vm12, %v5335_v4, %v5339_v8  ;;  %v5372_v61 = vor.u32 %v5371_v28, %v5368_v36 }
 0x49b   : > { %v5363_v5 = vrot.slane %v5361_v19, 5  ;;  %v5382_v60 = vor.u32 %v5381_v9, %v12225_v42  ;;  %v5414_v59 = vshrl.u32 %v5170_v43, 16  ;;  %v5417_v38 = vshll.u32 %v5170_v43, 16 }
 0x49c   : > { %v5396_v44 = vor.u32 %v5395_v14, %v5392_v46  ;;  %v5429_v8 = vrot.slane %v5427_v16, 4  ;;  %v5385_v7 = vshll.u32 %v11972_v49, 16  ;;  %v5409_v51 = vshll.u32 %v11982_v54, 16 }
 0x49d   : > { %v5447_v4 = vshll.u32 %v11998_v26, 16  ;;  %v5451_v19 = vshrl.u32 %v11998_v26, 16  ;;  %v5416_v36 = vrot.slane %v5414_v59, 4  ;;  %v5419_v28 = vrot.slane %v5417_v38, 5 }
 0x49e   : > { %9033 = vmatmul.mubr.bf16.vlgmr.msra.gmra.mrb[28].mxu1 %v12201_v40  ;;  %v5438_v9 = vshrl.u32 %v5173_v47, 16  ;;  %v5441_v46 = vshll.u32 %v5173_v47, 16  ;;  %v5383_v14 = vrot.slane %v5382_v60, 4  ;;  %v5397_v43 = vrot.slane %v5396_v44, 4  ;;  %v10009_v44 = vld [vmem:[#allocation10 + $0x130] sm:$0xff]  }
 0x49f   : > { %9065 = vmatpush3.bf16.msra.mxu1 %v12120_v13  ;;  %9036 = vmatprep.mubr.bf16.mxu1 %v12203_v53  ;;  %v5316_v13 = vsel %vm11098_vm12, %v5311_v24, %v5315_v58  ;;  %v5405_v24 = vrot.slane %v5403_v15, 4  ;;  %v12252_v15 = vcombine.low %v5330_v63, %v5340_v29  ;;  %v5387_v16 = vrot.slane %v5385_v7, 5  ;;  %v5179_v47 = vld [vmem:[#allocation3 + $0x90] sm:$0xf] }
 0x4a0   : > { %9066 = vmatprep.subr.bf16.mxu1 %v10004_v25  ;;  %v12233_v20 = vcombine.low %v5306_v31, %v5316_v13  ;;  %v12250_v31 = vrot.slane %v5423_v18, 5  ;;  %v5364_v13 = vsel %vm11098_vm12, %v5359_v35, %v5363_v5  ;;  %v10008_v18 = vld [vmem:[#allocation10 + $0x128] sm:$0xff]   ;;  %v5411_v54 = vrot.slane %v5409_v51, 5  ;;  %v5176_v35 = vld [vmem:[#allocation3 + $0x84] sm:$0xf] }
 0x4a1   : > { %v5406_v6 = vor.u32 %v5405_v24, %v12229_v27  ;;  %v5433_v26 = vshll.u32 %v11996_v34, 16  ;;  %v5420_v29 = vor.u32 %v5419_v28, %v5416_v36  ;;  %v5443_v5 = vrot.slane %v5441_v46, 5  ;;  %v10010_v46 = vld [vmem:[#allocation10 + $0x138] sm:$0xff]  }
 0x4a2   : > { %v5430_v24 = vor.u32 %v5429_v8, %v12250_v31  ;;  %v5388_v60 = vsel %vm11098_vm12, %v5383_v14, %v5387_v16  ;;  %v5402_v34 = vsel %vm11098_vm12, %v5397_v43, %v12229_v27  ;;  %v5465_v8 = vshll.u32 %v5176_v35, 16 }
 0x4a3   : > { %9067 = vmatpush3.bf16.msra.mxu1 %v10004_v25  ;;  %v5349_v25 = vrot.slane %v5348_v48, 4  ;;  %v5373_v48 = vrot.slane %v5372_v61, 4  ;;  %v5440_v61 = vrot.slane %v5438_v9, 4  ;;  %v5495_v7 = vshll.u32 %v12027_v33, 16 }
 0x4a4   : > { %9068 = vmatprep.subr.bf16.mxu1 %v10005_v23  ;;  %v12227_v11 = vpop.f32.mrb[32].mxu0  ;;  %v5431_v38 = vrot.slane %v5430_v24, 4  ;;  %v5499_v27 = vshrl.u32 %v12027_v33, 16  ;;  %v5486_v28 = vshrl.u32 %v5179_v47, 16  ;;  %v5489_v9 = vshll.u32 %v5179_v47, 16 }
 0x4a5   : > { %v12235_v45 = vpop.f32.mrb[33].mxu0  ;;  %v5378_v63 = vsel %vm11098_vm12, %v5373_v48, %v12225_v42  ;;  %v5471_v42 = vshll.u32 %v12015_v37, 16  ;;  %v5467_v43 = vrot.slane %v5465_v8, 5  ;;  %v12296_v16 = vrot.slane %v5495_v7, 5 }
 0x4a6   : > { %9037 = vmatmul.mubr.bf16.gmra.mrb[0].mxu1 %v12205_v3  ;;  %v12243_v58 = vpop.f32.mrb[34].mxu0  ;;  %v12286_v48 = vcombine.low %v5378_v63, %v5388_v60  ;;  %v5491_v63 = vrot.slane %v5489_v9, 5  ;;  %v5547_v8 = vshrl.u32 %v12049_v17, 16 }
 0x4a7   : > { %9040 = vmatprep.mubr.bf16.mxu1 %v12233_v20  ;;  %9069 = vmatpush3.bf16.msra.mxu1 %v10005_v23  ;;  %v12246_v39 = vpop.f32.mrb[35].mxu0  ;;  %v5354_v23 = vsel %vm11098_vm12, %v5349_v25, %v12208_v2  ;;  %v5407_v2 = vrot.slane %v5406_v6, 4  ;;  %v5453_v25 = vrot.slane %v5451_v19, 4  ;;  %v5462_v6 = vshrl.u32 %v5176_v35, 16 }
 0x4a8   : > { %9070 = vmatprep.subr.bf16.mxu1 %v10006_v32  ;;  %v12264_v49 = vcombine.low %v5354_v23, %v5364_v13  ;;  %v5435_v23 = vrot.slane %v5433_v26, 5  ;;  %v5444_v19 = vor.u32 %v5443_v5, %v5440_v61  ;;  %v5488_v35 = vrot.slane %v5486_v28, 4  ;;  %v12304_v61 = vld [vmem:[#allocation10 + $0x1c0] sm:$0xff]  }
 0x4a9   : > { %v5412_v59 = vsel %vm11098_vm12, %v5407_v2, %v5411_v54  ;;  %v5464_v14 = vrot.slane %v5462_v6, 4  ;;  %v12293_v2 = vrot.slane %v5471_v42, 5  ;;  %v5543_v6 = vshll.u32 %v12049_v17, 16 }
 0x4aa   : > { %v12288_v51 = vcombine.low %v5402_v34, %v5412_v59  ;;  %v5436_v36 = vsel %vm11098_vm12, %v5431_v38, %v5435_v23  ;;  %v5445_v54 = vrot.slane %v5444_v19, 4  ;;  %v5519_v34 = vshll.u32 %v12038_v1, 16  ;;  %v5185_v38 = vld [vmem:[#allocation3 + $0xa8] sm:$0xf] }
 0x4ab   : > { %9071 = vmatpush3.bf16.msra.mxu1 %v10006_v32  ;;  %v12268_v32 = vrot.slane %v5447_v4, 5  ;;  %v5421_v4 = vrot.slane %v5420_v29, 4  ;;  %v5182_v29 = vld [vmem:[#allocation3 + $0x9c] sm:$0xf]  ;;  %v5468_v5 = vor.u32 %v5467_v43, %v5464_v14  ;;  %v5523_v59 = vshrl.u32 %v12038_v1, 16 }
 0x4ac   : > { %9072 = vmatprep.subr.bf16.mxu1 %v10007_v52  ;;  %v5510_v47 = vshrl.u32 %v5182_v29, 16  ;;  %v5513_v23 = vshll.u32 %v5182_v29, 16  ;;  %v5492_v1 = vor.u32 %v5491_v63, %v5488_v35  ;;  %v5534_v7 = vshrl.u32 %v5185_v38, 16 }
 0x4ad   : > { %v5454_v13 = vor.u32 %v5453_v25, %v12268_v32  ;;  %v5450_v42 = vsel %vm11098_vm12, %v5445_v54, %v12268_v32  ;;  %v5521_v17 = vrot.slane %v5519_v34, 5  ;;  %v5469_v32 = vrot.slane %v5468_v5, 4 }
 0x4ae   : > { %9041 = vmatmul.mubr.bf16.gmra.mrb[4].mxu1 %v12252_v15  ;;  %v5549_v28 = vrot.slane %v5547_v8, 4  ;;  %v5493_v14 = vrot.slane %v5492_v1, 4  ;;  %v5571_v35 = vshrl.u32 %v12065_v21, 16  ;;  %v5529_v34 = vshll.u32 %v12040_v41, 16 }
 0x4af   : > { %9044 = vmatprep.mubr.bf16.mxu1 %v12264_v49  ;;  %9073 = vmatpush3.bf16.msra.mxu1 %v10007_v52  ;;  %v5475_v52 = vshrl.u32 %v12015_v37, 16  ;;  %v5457_v37 = vshll.u32 %v12009_v30, 16  ;;  %v5455_v24 = vrot.slane %v5454_v13, 4  ;;  %v5426_v30 = vsel %vm11098_vm12, %v5421_v4, %v12250_v31 }
 0x4b0   : > { %9074 = vmatprep.subr.bf16.mxu1 %v10008_v18  ;;  %v12302_v26 = vcombine.low %v5426_v30, %v5436_v36  ;;  %v5505_v13 = vshll.u32 %v12033_v22, 16  ;;  %v5525_v36 = vrot.slane %v5523_v59, 4  ;;  %v5515_v22 = vrot.slane %v5513_v23, 5 }
 0x4b1   : > { %v5477_v33 = vrot.slane %v5475_v52, 4  ;;  %v5459_v25 = vrot.slane %v5457_v37, 5  ;;  %v5481_v52 = vshll.u32 %v12017_v10, 16  ;;  %v5545_v10 = vrot.slane %v5543_v6, 5 }
 0x4b2   : > { %v5507_v43 = vrot.slane %v5505_v13, 5  ;;  %v5526_v54 = vor.u32 %v5525_v36, %v5521_v17  ;;  %v5474_v63 = vsel %vm11098_vm12, %v5469_v32, %v12293_v2  ;;  %v5553_v6 = vshll.u32 %v12056_v56, 16 }
 0x4b3   : > { %9075 = vmatpush3.bf16.msra.mxu1 %v10008_v18  ;;  %v5501_v18 = vrot.slane %v5499_v27, 4  ;;  %v5478_v60 = vor.u32 %v5477_v33, %v12293_v2  ;;  %v5460_v31 = vsel %vm11098_vm12, %v5455_v24, %v5459_v25  ;;  %v5537_v27 = vshll.u32 %v5185_v38, 16 }
 0x4b4   : > { %9076 = vmatprep.subr.bf16.mxu1 %v10009_v44  ;;  %v12320_v4 = vcombine.low %v5450_v42, %v5460_v31  ;;  %v5483_v9 = vrot.slane %v5481_v52, 5  ;;  %v5536_v33 = vrot.slane %v5534_v7, 4  ;;  %v5567_v25 = vshll.u32 %v12065_v21, 16 }
 0x4b5   : > { %v5479_v19 = vrot.slane %v5478_v60, 4  ;;  %v5539_v24 = vrot.slane %v5537_v27, 5  ;;  %v5550_v5 = vor.u32 %v5549_v28, %v5545_v10  ;;  %v5527_v2 = vrot.slane %v5526_v54, 4  ;;  %v10018_v54 = vld [vmem:[#allocation10 + $0x1f8] sm:$0xff]  }
 0x4b6   : > { %9045 = vmatmul.mubr.bf16.gmra.mrb[8].mxu1 %v12286_v48  ;;  %v5569_v42 = vrot.slane %v5567_v25, 5  ;;  %v5573_v52 = vrot.slane %v5571_v35, 4  ;;  %v5531_v23 = vrot.slane %v5529_v34, 5  ;;  %v5555_v27 = vrot.slane %v5553_v6, 5  ;;  %v10019_v25 = vld [vmem:[#allocation10 + $0x80] sm:$0xff]  }
 0x4b7   : > { %9048 = vmatprep.mubr.bf16.mxu1 %v12288_v51  ;;  %9077 = vmatpush3.bf16.msra.mxu1 %v10009_v44  ;;  %v5502_v44 = vor.u32 %v5501_v18, %v12296_v16  ;;  %v5188_v18 = vld [vmem:[#allocation3 + $0xb4] sm:$0xf]  ;;  %v5484_v30 = vsel %vm11098_vm12, %v5479_v19, %v5483_v9  ;;  %v5540_v21 = vor.u32 %v5539_v24, %v5536_v33  ;;  %v10013_v24 = vld [vmem:[#allocation10 + $0x1d0] sm:$0xff]  }
 0x4b8   : > { %9078 = vmatprep.subr.bf16.mxu1 %v10010_v46  ;;  %v5558_v59 = vshrl.u32 %v5188_v18, 16  ;;  %v5561_v38 = vshll.u32 %v5188_v18, 16  ;;  %v12334_v31 = vcombine.low %v5474_v63, %v5484_v30  ;;  %v5574_v56 = vor.u32 %v5573_v52, %v5569_v42  ;;  %v10014_v18 = vld [vmem:[#allocation10 + $0x1d8] sm:$0xff]   ;;  %v10015_v30 = vld [vmem:[#allocation10 + $0x1e0] sm:$0xff]   ;;  %v5191_v35 = vld [vmem:[#allocation3 + $0xc0] sm:$0xf] }
 0x4b9   : > { %v5503_v37 = vrot.slane %v5502_v44, 4  ;;  %v5498_v44 = vsel %vm11098_vm12, %v5493_v14, %v12296_v16  ;;  %v5541_v7 = vrot.slane %v5540_v21, 4  ;;  %v5532_v16 = vsel %vm11098_vm12, %v5527_v2, %v5531_v23 }
 0x4ba   : > { %v5560_v1 = vrot.slane %v5558_v59, 4  ;;  %v5563_v13 = vrot.slane %v5561_v38, 5  ;;  %v5913_v63 = vshll.u32 %v12075_v12, 16  ;;  %v5923_v2 = vshll.u32 %v12086_v0, 16  ;;  %v10021_v0 = vld [vmem:[#allocation10 + $0x90] sm:$0xff]  }
 0x4bb   : > { %9079 = vmatpush3.bf16.msra.mxu1 %v10010_v46  ;;  %v5512_v46 = vrot.slane %v5510_v47, 4  ;;  %v5508_v29 = vsel %vm11098_vm12, %v5503_v37, %v5507_v43  ;;  %v5551_v47 = vrot.slane %v5550_v5, 4  ;;  %v5577_v37 = vshll.u32 %v12073_v50, 16 }
 0x4bc   : > { %9112 = vmatprep.subr.bf16.mxu1 %v12304_v61  ;;  %v12340_v8 = vcombine.low %v5498_v44, %v5508_v29  ;;  %v5564_v32 = vor.u32 %v5563_v13, %v5560_v1  ;;  %v5546_v9 = vsel %vm11098_vm12, %v5541_v7, %v5545_v10  ;;  %v10012_v10 = vld [vmem:[#allocation10 + $0x1c8] sm:$0xff]   ;;  %v5917_v29 = vshrl.u32 %v12075_v12, 16  ;;  %v10022_v13 = vld [vmem:[#allocation10 + $0x98] sm:$0xff]   ;;  %v10023_v7 = vld [vmem:[#allocation10 + $0xa0] sm:$0xff]  }
 0x4bd   : > { %v5516_v60 = vor.u32 %v5515_v22, %v5512_v46  ;;  %v5556_v19 = vsel %vm11098_vm12, %v5551_v47, %v5555_v27  ;;  %v5575_v22 = vrot.slane %v5574_v56, 4  ;;  %v5579_v43 = vrot.slane %v5577_v37, 5  ;;  %v10020_v1 = vld [vmem:[#allocation10 + $0x88] sm:$0xff]   ;;  %v12398_v27 = vld [vmem:[#allocation3 + $0xd0] sm:$0xf] }
 0x4be   : > { %9049 = vmatmul.mubr.bf16.gmra.mrb[12].mxu1 %v12302_v26  ;;  %v12355_v46 = vcombine.low %v5546_v9, %v5556_v19  ;;  %v5565_v14 = vrot.slane %v5564_v32, 4  ;;  %v5904_v5 = vshrl.u32 %v5191_v35, 16  ;;  %v5915_v34 = vrot.slane %v5913_v63, 5  ;;  %v12404_v32 = vld [vmem:[#allocation3 + $0xd4] sm:$0x1] }
 0x4bf   : > { %9052 = vmatprep.mubr.bf16.mxu1 %v12320_v4  ;;  %v5517_v41 = vrot.slane %v5516_v60, 4  ;;  %v5907_v60 = vshll.u32 %v5191_v35, 16  ;;  %v5919_v59 = vrot.slane %v5917_v29, 4  ;;  %v5925_v52 = vrot.slane %v5923_v2, 5  ;;  %v12734_v35 = vld [vmem:[#allocation33_spill] sm:$0xff]  ;;  %v12737_v2 = vld [vmem:[#allocation34_spill] sm:$0xff] }
 0x4c0   : > { %v5570_v50 = vsel %vm11098_vm12, %v5565_v14, %v5569_v42  ;;  %v5906_v38 = vrot.slane %v5904_v5, 4  ;;  %v6543_v9 = vrot.slane %v12123_v62, 5  ;;  %v6557_v63 = vrot.slane %v12734_v35, 5  ;;  %v6476_v5 = vld [vmem:[#allocation3 + $0xc] sm:$0xe] }
 0x4c1   : > { %v5522_v36 = vsel %vm11098_vm12, %v5517_v41, %v5521_v17  ;;  %v5580_v17 = vsel %vm11098_vm12, %v5575_v22, %v5579_v43  ;;  %v5909_v44 = vrot.slane %v5907_v60, 5  ;;  %v5920_v21 = vor.u32 %v5919_v59, %v5915_v34  ;;  %v6475_v22 = vld [vmem:[#allocation3] sm:$0xe]  ;;  %v6477_v59 = vld [vmem:[#allocation3 + $0x18] sm:$0xe] }
 0x4c2   : > { %v12351_v28 = vcombine.low %v5522_v36, %v5532_v16  ;;  %v12363_v33 = vcombine.low %v5570_v50, %v5580_v17  ;;  %v6199_v16 = vshll.u32 %v12398_v27, 16  ;;  %v8097_v50 = vrot.slane %v6475_v22, 9  ;;  %v12744_v22 = vld [vmem:[#allocation25_spill] sm:$0xff] }
 0x4c3   : > { %v5910_v6 = vor.u32 %v5909_v44, %v5906_v38  ;;  %v5921_v42 = vrot.slane %v5920_v21, 4  ;;  %v6559_v60 = vrot.slane %v6557_v63, 4  ;;  %v12736_v38 = vld [vmem:[#allocation37_spill] sm:$0xff]  ;;  %v8098_v21 = vrot.slane %v6476_v5, 9 }
 0x4c4   : > { %v6201_v19 = vrot.slane %v6199_v16, 5  ;;  %v6544_v62 = vsel %vm11458_vm15, %v8097_v50, %v6543_v9  ;;  %v6560_v44 = vrot.slane %v12736_v38, 5  ;;  %v10030_v16 = vld [vmem:[#allocation10 + $0x158] sm:$0xff]   ;;  %v6492_v35 = vld [vmem:[#allocation3 + $0xcc] sm:$0xe] }
 0x4c5   : > { %v5911_v12 = vrot.slane %v5910_v6, 4  ;;  %v5926_v47 = vsel %vm11098_vm12, %v5921_v42, %v5925_v52  ;;  %v6564_v42 = vrot.slane %v12737_v2, 5  ;;  %v12748_v50 = vld [vmem:[#allocation29_spill] sm:$0xff] }
 0x4c6   : > { %9053 = vmatmul.mubr.bf16.gmra.mrb[16].mxu1 %v12334_v31  ;;  %v6561_v52 = vsel %vm11458_vm15, %v6559_v60, %v6560_v44 }
 0x4c7   : > { %9056 = vmatprep.mubr.bf16.mxu1 %v12340_v8  ;;  %v5916_v41 = vsel %vm11098_vm12, %v5911_v12, %v5915_v34  ;;  %v12735_v34 = vld [vmem:[#allocation36_spill] sm:$0xff]  ;;  %v8099_v12 = vrot.slane %v6477_v59, 9  ;;  %v12492_v59 = vld [vmem:[#allocation12] ss:$0 sm:$0xff] }
 0x4c8   : > { %v8079_v23 = vcombine.low %v5916_v41, %v5926_v47  ;;  %v6553_v55 = vrot.slane %v12735_v34, 5 }
 0x4ce   : > { %9057 = vmatmul.mubr.bf16.gmra.mrb[20].mxu1 %v12351_v28 }
 0x4cf   : > { %9060 = vmatprep.mubr.bf16.mxu1 %v12355_v46 }
 0x4d6   : > { %9061 = vmatmul.mubr.bf16.gmra.mrb[24].mxu1 %v12363_v33 }
 0x4d7   : > { %9080 = vmatprep.mubr.bf16.mxu1 %v12201_v40  ;;  %v10016_v40 = vld [vmem:[#allocation10 + $0x1e8] sm:$0xff]  }
 0x4de   : > { %9081 = vmatmul.mubr.bf16.vlgmr.msra.gmra.mrb[28].mxu1 %v12203_v53 }
 0x4df   : > { %9113 = vmatpush3.bf16.msra.mxu1 %v12304_v61  ;;  %9084 = vmatprep.mubr.bf16.mxu1 %v12205_v3  ;;  %v10017_v61 = vld [vmem:[#allocation10 + $0x1f0] sm:$0xff]  }
 0x4e0   : > { %9114 = vmatprep.subr.bf16.mxu1 %v10012_v10 }
 0x4e3   : > { %9115 = vmatpush3.bf16.msra.mxu1 %v10012_v10  ;;  %v6545_v10 = vrot.slane %v6543_v9, 4  ;;  %v12743_v9 = vld [vmem:[#allocation23_spill] sm:$0xff] }
 0x4e4   : > { %9116 = vmatprep.subr.bf16.mxu1 %v10013_v24 }
 0x4e6   : > { %9085 = vmatmul.mubr.bf16.gmra.mrb[0].mxu1 %v12233_v20 }
 0x4e7   : > { %9088 = vmatprep.mubr.bf16.mxu1 %v12252_v15  ;;  %9117 = vmatpush3.bf16.msra.mxu1 %v10013_v24  ;;  %v12731_v24 = vld [vmem:[#allocation35_spill] sm:$0xff] }
 0x4e8   : > { %9118 = vmatprep.subr.bf16.mxu1 %v10014_v18 }
 0x4eb   : > { %9119 = vmatpush3.bf16.msra.mxu1 %v10014_v18  ;;  %v6546_v18 = vrot.slane %v12731_v24, 5  ;;  %v10036_v24 = vld [vmem:[#allocation10 + $0x208] sm:$0xff]  }
 0x4ec   : > { %9120 = vmatprep.subr.bf16.mxu1 %v10015_v30 }
 0x4ee   : > { %9089 = vmatmul.mubr.bf16.gmra.mrb[4].mxu1 %v12264_v49 }
 0x4ef   : > { %9092 = vmatprep.mubr.bf16.mxu1 %v12286_v48  ;;  %9121 = vmatpush3.bf16.msra.mxu1 %v10015_v30 }
 0x4f0   : > { %9122 = vmatprep.subr.bf16.mxu1 %v10016_v40 }
 0x4f3   : > { %9123 = vmatpush3.bf16.msra.mxu1 %v10016_v40  ;;  %v6547_v40 = vsel %vm11458_vm15, %v6545_v10, %v6546_v18  ;;  %v12749_v10 = vld [vmem:[#allocation18_spill] sm:$0xff]  ;;  %v10037_v18 = vld [vmem:[#allocation10 + $0x210] sm:$0xff]  }
 0x4f4   : > { %9124 = vmatprep.subr.bf16.mxu1 %v10017_v61  ;;  %v8113_v29 = vcombine.low %v6544_v62, %v6547_v40  ;;  %v10040_v62 = vld [vmem:[#allocation10 + $0x228] sm:$0xff]   ;;  %v10041_v40 = vld [vmem:[#allocation10 + $0x230] sm:$0xff]  }
 0x4f6   : > { %9093 = vmatmul.mubr.bf16.gmra.mrb[8].mxu1 %v12288_v51 }
 0x4f7   : > { %9096 = vmatprep.mubr.bf16.mxu1 %v12302_v26  ;;  %9125 = vmatpush3.bf16.msra.mxu1 %v10017_v61  ;;  %v12733_v61 = vld [vmem:[#allocation32_spill] sm:$0xff] }
 0x4f8   : > { %9126 = vmatprep.subr.bf16.mxu1 %v10018_v54 }
 0x4fb   : > { %9127 = vmatpush3.bf16.msra.mxu1 %v10018_v54  ;;  %v6550_v54 = vrot.slane %v12733_v61, 5  ;;  %v10042_v61 = vld [vmem:[#allocation10 + $0x238] sm:$0xff]  }
 0x4fc   : > { %9160 = vmatprep.subr.bf16.mxu1 %v10019_v25 }
 0x4fd   : > { %v6551_v47 = vsel %vm11458_vm15, %v8098_v21, %v6550_v54 }
 0x4fe   : > { %9097 = vmatmul.mubr.bf16.gmra.mrb[12].mxu1 %v12320_v4 }
 0x4ff   : > { %9100 = vmatprep.mubr.bf16.mxu1 %v12334_v31 }
 0x506   : > { %9101 = vmatmul.mubr.bf16.gmra.mrb[16].mxu1 %v12340_v8 }
 0x507   : > { %9104 = vmatprep.mubr.bf16.mxu1 %v12351_v28 }
 0x50e   : > { %9105 = vmatmul.mubr.bf16.gmra.mrb[20].mxu1 %v12355_v46 }
 0x50f   : > { %9108 = vmatprep.mubr.bf16.mxu1 %v12363_v33 }
 0x516   : > { %9109 = vmatmul.mubr.bf16.gmra.mrb[24].mxu1 %v8079_v23 }
 0x517   : > { %9128 = vmatprep.mubr.bf16.mxu1 %v12203_v53  ;;  %v10024_v53 = vld [vmem:[#allocation10 + $0xa8] sm:$0xff]  }
 0x51e   : > { %9129 = vmatmul.mubr.bf16.vlgmr.msra.gmra.mrb[28].mxu1 %v12205_v3  ;;  %v10025_v3 = vld [vmem:[#allocation10 + $0xb0] sm:$0xff]  }
 0x51f   : > { %9161 = vmatpush3.bf16.msra.mxu1 %v10019_v25  ;;  %9132 = vmatprep.mubr.bf16.mxu1 %v12233_v20  ;;  %v10026_v20 = vld [vmem:[#allocation10 + $0xb8] sm:$0xff]  }
 0x520   : > { %9162 = vmatprep.subr.bf16.mxu1 %v10020_v1 }
 0x523   : > { %9163 = vmatpush3.bf16.msra.mxu1 %v10020_v1  ;;  %v10028_v1 = vld [vmem:[#allocation10 + $0x148] sm:$0xff]  }
 0x524   : > { %9164 = vmatprep.subr.bf16.mxu1 %v10021_v0 }
 0x526   : > { %9133 = vmatmul.mubr.bf16.gmra.mrb[0].mxu1 %v12252_v15  ;;  %v10027_v15 = vld [vmem:[#allocation10 + $0x140] sm:$0xff]  }
 0x527   : > { %9136 = vmatprep.mubr.bf16.mxu1 %v12264_v49  ;;  %9165 = vmatpush3.bf16.msra.mxu1 %v10021_v0  ;;  %v5194_v49 = vld [vmem:[#allocation3 + $0xcc] sm:$0xf] }
 0x528   : > { %9166 = vmatprep.subr.bf16.mxu1 %v10022_v13 }
 0x52b   : > { %9167 = vmatpush3.bf16.msra.mxu1 %v10022_v13  ;;  %v6566_v13 = vrot.slane %v6564_v42, 4 }
 0x52c   : > { %9168 = vmatprep.subr.bf16.mxu1 %v10023_v7 }
 0x52e   : > { %9137 = vmatmul.mubr.bf16.gmra.mrb[4].mxu1 %v12286_v48  ;;  %v6190_v48 = vshrl.u32 %v5194_v49, 16 }
 0x52f   : > { %9140 = vmatprep.mubr.bf16.mxu1 %v12288_v51  ;;  %9169 = vmatpush3.bf16.msra.mxu1 %v10023_v7  ;;  %v6193_v51 = vshll.u32 %v5194_v49, 16  ;;  %v6478_v7 = vld [vmem:[#allocation3 + $0x24] sm:$0xe] }
 0x530   : > { %9170 = vmatprep.subr.bf16.mxu1 %v10024_v53  ;;  %v6192_v56 = vrot.slane %v6190_v48, 4 }
 0x533   : > { %9171 = vmatpush3.bf16.msra.mxu1 %v10024_v53  ;;  %v6567_v53 = vrot.slane %v12163_v57, 5  ;;  %v10031_v57 = vld [vmem:[#allocation10 + $0x160] sm:$0xff]  }
 0x534   : > { %9172 = vmatprep.subr.bf16.mxu1 %v10025_v3 }
 0x535   : > { %v6568_v49 = vsel %vm11458_vm15, %v6566_v13, %v6567_v53 }
 0x536   : > { %9141 = vmatmul.mubr.bf16.gmra.mrb[8].mxu1 %v12302_v26  ;;  %v6203_v26 = vshrl.u32 %v12398_v27, 16 }
 0x537   : > { %9144 = vmatprep.mubr.bf16.mxu1 %v12320_v4  ;;  %9173 = vmatpush3.bf16.msra.mxu1 %v10025_v3  ;;  %v6195_v4 = vrot.slane %v6193_v51, 5  ;;  %v10029_v3 = vld [vmem:[#allocation10 + $0x150] sm:$0xff]  }
 0x538   : > { %9174 = vmatprep.subr.bf16.mxu1 %v10026_v20  ;;  %v6205_v36 = vrot.slane %v6203_v26, 4  ;;  %v10032_v26 = vld [vmem:[#allocation10 + $0x168] sm:$0xff]  }
 0x539   : > { %v6196_v37 = vor.u32 %v6195_v4, %v6192_v56  ;;  %v12739_v56 = vld [vmem:[#allocation20_spill] sm:$0xff]  ;;  %v12740_v4 = vld [vmem:[#allocation21_spill] sm:$0xff] }
 0x53b   : > { %9175 = vmatpush3.bf16.msra.mxu1 %v10026_v20  ;;  %v6197_v14 = vrot.slane %v6196_v37, 4  ;;  %v8100_v20 = vrot.slane %v6478_v7, 9  ;;  %v12741_v37 = vld [vmem:[#allocation24_spill] sm:$0xff] }
 0x53c   : > { %9208 = vmatprep.subr.bf16.mxu1 %v10027_v15 }
 0x53d   : > { %v6565_v48 = vsel %vm11458_vm15, %v8100_v20, %v6564_v42 }
 0x53e   : > { %9145 = vmatmul.mubr.bf16.gmra.mrb[12].mxu1 %v12334_v31  ;;  %v6206_v31 = vor.u32 %v6205_v36, %v6201_v19  ;;  %v12441_v51 = vcombine.low %v6565_v48, %v6568_v49  ;;  %v10034_v36 = vld [vmem:[#allocation10 + $0x178] sm:$0xff]  }
 0x53f   : > { %9148 = vmatprep.mubr.bf16.mxu1 %v12340_v8  ;;  %v6209_v8 = vshll.u32 %v12404_v32, 16 }
 0x540   : > { %v6207_v43 = vrot.slane %v6206_v31, 4  ;;  %v12742_v31 = vld [vmem:[#allocation22_spill] sm:$0xff] }
 0x541   : > { %v6211_v17 = vrot.slane %v6209_v8, 5  ;;  %v10035_v8 = vld [vmem:[#allocation10 + $0x200] sm:$0xff]  }
 0x546   : > { %9149 = vmatmul.mubr.bf16.gmra.mrb[16].mxu1 %v12351_v28  ;;  %v6202_v28 = vsel %vm11098_vm12, %v6197_v14, %v6201_v19  ;;  %v10033_v19 = vld [vmem:[#allocation10 + $0x170] sm:$0xff]   ;;  %v12745_v14 = vld [vmem:[#allocation26_spill] sm:$0xff] }
 0x547   : > { %9152 = vmatprep.mubr.bf16.mxu1 %v12355_v46  ;;  %v6212_v46 = vsel %vm11098_vm12, %v6207_v43, %v6211_v17  ;;  %v12746_v43 = vld [vmem:[#allocation27_spill] sm:$0xff]  ;;  %v12747_v17 = vld [vmem:[#allocation28_spill] sm:$0xff] }
 0x548   : > { %v8088_v25 = vcombine.low %v6202_v28, %v6212_v46  ;;  %v10038_v28 = vld [vmem:[#allocation10 + $0x218] sm:$0xff]   ;;  %v10039_v46 = vld [vmem:[#allocation10 + $0x220] sm:$0xff]  }
 0x54e   : > { %9153 = vmatmul.mubr.bf16.gmra.mrb[20].mxu1 %v12363_v33  ;;  %v6552_v33 = vrot.slane %v6550_v54, 4  ;;  %v12750_v54 = vld [vmem:[#allocation31_spill] sm:$0xff] }
 0x54f   : > { %9156 = vmatprep.mubr.bf16.mxu1 %v8079_v23  ;;  %v6558_v23 = vsel %vm11458_vm15, %v8099_v12, %v6557_v63  ;;  %v8147_v63 = vrot.slane %v6492_v35, 9 }
 0x550   : > { %v6554_v6 = vsel %vm11458_vm15, %v6552_v33, %v6553_v55  ;;  %v12433_v0 = vcombine.low %v6558_v23, %v6561_v52  ;;  %v7255_v33 = vrot.slane %v12404_v32, 5 }
 0x551   : > { %v8114_v41 = vcombine.low %v6551_v47, %v6554_v6 }
 0x556   : > { %9157 = vmatmul.mubr.bf16.gmra.mrb[24].mxu1 %v8088_v25  ;;  %v7252_v25 = vrot.slane %v12398_v27, 5 }
 0x557   : > { %9176 = vmatprep.mubr.bf16.mxu1 %v8113_v29 }
 0x558   : > { %v7254_v29 = vrot.slane %v7252_v25, 4  ;;  %v7253_v5 = vsel %vm11458_vm15, %v8147_v63, %v7252_v25 }
 0x55a   : > { %v7256_v60 = vsel %vm11458_vm15, %v7254_v29, %v7255_v33 }
 0x55b   : > { %v8148_v34 = vcombine.low %v7253_v5, %v7256_v60 }
 0x55e   : > { %9177 = vmatmul.mubr.bf16.vlgmr.msra.gmra.mrb[28].mxu1 %v8114_v41 }
 0x55f   : > { %9209 = vmatpush3.bf16.msra.mxu1 %v10027_v15  ;;  %9180 = vmatprep.mubr.bf16.mxu1 %v12433_v0  ;;  %v12738_v15 = vld [vmem:[#allocation19_spill] sm:$0xff] }
 0x560   : > { %9210 = vmatprep.subr.bf16.mxu1 %v10028_v1 }
 0x563   : > { %9211 = vmatpush3.bf16.msra.mxu1 %v10028_v1 }
 0x564   : > { %9212 = vmatprep.subr.bf16.mxu1 %v10029_v3 }
 0x566   : > { %9181 = vmatmul.mubr.bf16.gmra.mrb[0].mxu1 %v12441_v51 }
 0x567   : > { %9184 = vmatprep.mubr.bf16.mxu1 %v12738_v15  ;;  %9213 = vmatpush3.bf16.msra.mxu1 %v10029_v3 }
 0x568   : > { %9214 = vmatprep.subr.bf16.mxu1 %v10030_v16 }
 0x56b   : > { %9215 = vmatpush3.bf16.msra.mxu1 %v10030_v16 }
 0x56c   : > { %9216 = vmatprep.subr.bf16.mxu1 %v10031_v57 }
 0x56e   : > { %9185 = vmatmul.mubr.bf16.gmra.mrb[4].mxu1 %v12739_v56 }
 0x56f   : > { %9188 = vmatprep.mubr.bf16.mxu1 %v12740_v4  ;;  %9217 = vmatpush3.bf16.msra.mxu1 %v10031_v57 }
 0x570   : > { %9218 = vmatprep.subr.bf16.mxu1 %v10032_v26 }
 0x573   : > { %9219 = vmatpush3.bf16.msra.mxu1 %v10032_v26 }
 0x574   : > { %9220 = vmatprep.subr.bf16.mxu1 %v10033_v19 }
 0x576   : > { %9189 = vmatmul.mubr.bf16.gmra.mrb[8].mxu1 %v12741_v37 }
 0x577   : > { %9192 = vmatprep.mubr.bf16.mxu1 %v12742_v31  ;;  %9221 = vmatpush3.bf16.msra.mxu1 %v10033_v19 }
 0x578   : > { %9222 = vmatprep.subr.bf16.mxu1 %v10034_v36 }
 0x57b   : > { %9223 = vmatpush3.bf16.msra.mxu1 %v10034_v36 }
 0x57c   : > { %9256 = vmatprep.subr.bf16.mxu1 %v10035_v8 }
 0x57e   : > { %9193 = vmatmul.mubr.bf16.gmra.mrb[12].mxu1 %v12743_v9 }
 0x57f   : > { %9196 = vmatprep.mubr.bf16.mxu1 %v12744_v22 }
 0x586   : > { %9197 = vmatmul.mubr.bf16.gmra.mrb[16].mxu1 %v12745_v14 }
 0x587   : > { %9200 = vmatprep.mubr.bf16.mxu1 %v12746_v43 }
 0x58e   : > { %9201 = vmatmul.mubr.bf16.gmra.mrb[20].mxu1 %v12747_v17 }
 0x58f   : > { %9204 = vmatprep.mubr.bf16.mxu1 %v12748_v50 }
 0x596   : > { %9205 = vmatmul.mubr.bf16.gmra.mrb[24].mxu1 %v12749_v10 }
 0x597   : > { %9224 = vmatprep.mubr.bf16.mxu1 %v8114_v41 }
 0x59e   : > { %9225 = vmatmul.mubr.bf16.vlgmr.msra.gmra.mrb[28].mxu1 %v12433_v0 }
 0x59f   : > { %9257 = vmatpush3.bf16.msra.mxu1 %v10035_v8  ;;  %9228 = vmatprep.mubr.bf16.mxu1 %v12441_v51 }
 0x5a0   : > { %9258 = vmatprep.subr.bf16.mxu1 %v10036_v24 }
 0x5a3   : > { %9259 = vmatpush3.bf16.msra.mxu1 %v10036_v24 }
 0x5a4   : > { %9260 = vmatprep.subr.bf16.mxu1 %v10037_v18 }
 0x5a6   : > { %9229 = vmatmul.mubr.bf16.gmra.mrb[0].mxu1 %v12738_v15 }
 0x5a7   : > { %9232 = vmatprep.mubr.bf16.mxu1 %v12739_v56  ;;  %9261 = vmatpush3.bf16.msra.mxu1 %v10037_v18 }
 0x5a8   : > { %9262 = vmatprep.subr.bf16.mxu1 %v10038_v28 }
 0x5ab   : > { %9263 = vmatpush3.bf16.msra.mxu1 %v10038_v28 }
 0x5ac   : > { %9264 = vmatprep.subr.bf16.mxu1 %v10039_v46 }
 0x5ae   : > { %9233 = vmatmul.mubr.bf16.gmra.mrb[4].mxu1 %v12740_v4 }
 0x5af   : > { %9236 = vmatprep.mubr.bf16.mxu1 %v12741_v37  ;;  %9265 = vmatpush3.bf16.msra.mxu1 %v10039_v46 }
 0x5b0   : > { %9266 = vmatprep.subr.bf16.mxu1 %v10040_v62 }
 0x5b3   : > { %9267 = vmatpush3.bf16.msra.mxu1 %v10040_v62 }
 0x5b4   : > { %9268 = vmatprep.subr.bf16.mxu1 %v10041_v40 }
 0x5b6   : > { %9237 = vmatmul.mubr.bf16.gmra.mrb[8].mxu1 %v12742_v31 }
 0x5b7   : > { %9240 = vmatprep.mubr.bf16.mxu1 %v12743_v9  ;;  %9269 = vmatpush3.bf16.msra.mxu1 %v10041_v40 }
 0x5b8   : > { %9270 = vmatprep.subr.bf16.mxu1 %v10042_v61 }
 0x5bb   : > { %9271 = vmatpush3.bf16.msra.mxu1 %v10042_v61 }
 0x5be   : > { %9241 = vmatmul.mubr.bf16.gmra.mrb[12].mxu1 %v12744_v22 }
 0x5bf   : > { %9244 = vmatprep.mubr.bf16.mxu1 %v12745_v14 }
 0x5c6   : > { %9245 = vmatmul.mubr.bf16.gmra.mrb[16].mxu1 %v12746_v43 }
 0x5c7   : > { %9248 = vmatprep.mubr.bf16.mxu1 %v12747_v17 }
 0x5ce   : > { %9249 = vmatmul.mubr.bf16.gmra.mrb[20].mxu1 %v12748_v50 }
 0x5cf   : > { %9252 = vmatprep.mubr.bf16.mxu1 %v12749_v10 }
 0x5d6   : > { %9253 = vmatmul.mubr.bf16.gmra.mrb[24].mxu1 %v12750_v54 }
 0x5d7   : > { %9272 = vmatprep.mubr.bf16.mxu1 %v12433_v0 }
 0x5de   : > { %9273 = vmatmul.mubr.bf16.vlgmr.msra.gmra.mrb[28].mxu1 %v12441_v51 }
 0x5df   : > { %9276 = vmatprep.mubr.bf16.mxu1 %v12738_v15 }
 0x5e6   : > { %9277 = vmatmul.mubr.bf16.gmra.mrb[0].mxu1 %v12739_v56 }
 0x5e7   : > { %9280 = vmatprep.mubr.bf16.mxu1 %v12740_v4 }
 0x5ee   : > { %9281 = vmatmul.mubr.bf16.gmra.mrb[4].mxu1 %v12741_v37 }
 0x5ef   : > { %9284 = vmatprep.mubr.bf16.mxu1 %v12742_v31 }
 0x5f6   : > { %9285 = vmatmul.mubr.bf16.gmra.mrb[8].mxu1 %v12743_v9 }
 0x5f7   : > { %9288 = vmatprep.mubr.bf16.mxu1 %v12744_v22 }
 0x5fe   : > { %9289 = vmatmul.mubr.bf16.gmra.mrb[12].mxu1 %v12745_v14 }
 0x5ff   : > { %9292 = vmatprep.mubr.bf16.mxu1 %v12746_v43 }
 0x606   : > { %9293 = vmatmul.mubr.bf16.gmra.mrb[16].mxu1 %v12747_v17 }
 0x607   : > { %9296 = vmatprep.mubr.bf16.mxu1 %v12748_v50 }
 0x60e   : > { %9297 = vmatmul.mubr.bf16.gmra.mrb[20].mxu1 %v12749_v10 }
 0x60f   : > { %9300 = vmatprep.mubr.bf16.mxu1 %v12750_v54 }
 0x616   : > { %9301 = vmatmul.mubr.bf16.gmra.mrb[24].mxu1 %v8148_v34 }
 0x6b1   : > { %v9274_v55 = vpop.f32.mrb[28].mxu1 }
 0x6b2   : > { %v9320_v27 = vadd.f32 %v9274_v55, %v12227_v11  ;;  %v7360_v38 = vpop.f32.mrb[29].mxu1 }
 0x6b3   : > { %v9321_v32 = vadd.f32 %v7360_v38, %v12235_v45  ;;  %v9275_v44 = vpop.f32.mrb[30].mxu1 }
 0x6b4   : > { %v7528_v21 = vadd.f32 %v9320_v27, %v12492_v59  ;;  %v9322_v6 = vadd.f32 %v9275_v44, %v12243_v58  ;;  %v7363_v2 = vpop.f32.mrb[31].mxu1 }
 0x6b5   : > { %v7526_v30 = vadd.f32 %v9321_v32, %v12492_v59  ;;  %v9323_v42 = vadd.f32 %v7363_v2, %v12246_v39 }
 0x6b6   : > { %v7560_v12 = vmax.f32 %v7528_v21, 0.0  ;;  %v7529_v52 = vadd.f32 %v9322_v6, %v12492_v59 }
 0x6b7   : > { %v7558_v47 = vmax.f32 %v7526_v30, 0.0  ;;  %v7527_v41 = vadd.f32 %v9323_v42, %v12492_v59 }
 0x6b8   : > { %7592 = vst [vmem:[%s12503_s26 + $0x10] sm:$0xff] %v7560_v12  ;;  %v7561_v11 = vmax.f32 %v7529_v52, 0.0 }
 0x6b9   : > { %7590 = vst [vmem:[%s12503_s26] sm:$0xff] %v7558_v47  ;;  %v7559_v45 = vmax.f32 %v7527_v41, 0.0  ;;  %v9278_v58 = vpop.f32.mrb[0].mxu1 }
 0x6ba   : > { %7593 = vst [vmem:[%s12503_s26 + $0x18] sm:$0xff] %v7561_v11  ;;  %v7532_v39 = vadd.f32 %v9278_v58, %v12492_v59  ;;  %v7376_v23 = vpop.f32.mrb[1].mxu1 }
 0x6bb   : > { %7591 = vst [vmem:[%s12503_s26 + $0x8] sm:$0xff] %v7559_v45  ;;  %v7530_v1 = vadd.f32 %v12492_v59, %v7376_v23  ;;  %v9279_v0 = vpop.f32.mrb[2].mxu1 }
 0x6bc   : > { %v7564_v13 = vmax.f32 %v7532_v39, 0.0  ;;  %v7533_v7 = vadd.f32 %v9279_v0, %v12492_v59  ;;  %v7379_v53 = vpop.f32.mrb[3].mxu1 }
 0x6bd   : > { %v7562_v3 = vmax.f32 %v7530_v1, 0.0  ;;  %v7531_v20 = vadd.f32 %v12492_v59, %v7379_v53 }
 0x6be   : > { %7596 = vst [vmem:[%s12503_s26 + $0x30] sm:$0xff] %v7564_v13  ;;  %v7565_v49 = vmax.f32 %v7533_v7, 0.0 }
 0x6bf   : > { %7594 = vst [vmem:[%s12503_s26 + $0x20] sm:$0xff] %v7562_v3  ;;  %v7563_v48 = vmax.f32 %v7531_v20, 0.0 }
 0x6c0   : > { %7597 = vst [vmem:[%s12503_s26 + $0x38] sm:$0xff] %v7565_v49 }
 0x6c1   : > { %7595 = vst [vmem:[%s12503_s26 + $0x28] sm:$0xff] %v7563_v48  ;;  %v9282_v51 = vpop.f32.mrb[4].mxu1 }
 0x6c2   : > { %v7536_v16 = vadd.f32 %v9282_v51, %v12492_v59  ;;  %v7392_v15 = vpop.f32.mrb[5].mxu1 }
 0x6c3   : > { %v7534_v57 = vadd.f32 %v12492_v59, %v7392_v15  ;;  %v9283_v26 = vpop.f32.mrb[6].mxu1 }
 0x6c4   : > { %v7568_v56 = vmax.f32 %v7536_v16, 0.0  ;;  %v7537_v4 = vadd.f32 %v9283_v26, %v12492_v59  ;;  %v7395_v19 = vpop.f32.mrb[7].mxu1 }
 0x6c5   : > { %v7566_v36 = vmax.f32 %v7534_v57, 0.0  ;;  %v7535_v37 = vadd.f32 %v12492_v59, %v7395_v19 }
 0x6c6   : > { %7600 = vst [vmem:[%s12503_s26 + $0x50] sm:$0xff] %v7568_v56  ;;  %v7569_v31 = vmax.f32 %v7537_v4, 0.0 }
 0x6c7   : > { %7598 = vst [vmem:[%s12503_s26 + $0x40] sm:$0xff] %v7566_v36  ;;  %v7567_v8 = vmax.f32 %v7535_v37, 0.0 }
 0x6c8   : > { %7601 = vst [vmem:[%s12503_s26 + $0x58] sm:$0xff] %v7569_v31 }
 0x6c9   : > { %7599 = vst [vmem:[%s12503_s26 + $0x48] sm:$0xff] %v7567_v8  ;;  %v9286_v9 = vpop.f32.mrb[8].mxu1 }
 0x6ca   : > { %v7540_v22 = vadd.f32 %v9286_v9, %v12492_v59  ;;  %v7408_v14 = vpop.f32.mrb[9].mxu1 }
 0x6cb   : > { %v7538_v43 = vadd.f32 %v12492_v59, %v7408_v14  ;;  %v9287_v17 = vpop.f32.mrb[10].mxu1 }
 0x6cc   : > { %v7572_v50 = vmax.f32 %v7540_v22, 0.0  ;;  %v7541_v10 = vadd.f32 %v9287_v17, %v12492_v59  ;;  %v7411_v24 = vpop.f32.mrb[11].mxu1 }
 0x6cd   : > { %v7570_v18 = vmax.f32 %v7538_v43, 0.0  ;;  %v7539_v28 = vadd.f32 %v12492_v59, %v7411_v24 }
 0x6ce   : > { %7604 = vst [vmem:[%s12503_s26 + $0x70] sm:$0xff] %v7572_v50  ;;  %v7573_v46 = vmax.f32 %v7541_v10, 0.0 }
 0x6cf   : > { %7602 = vst [vmem:[%s12503_s26 + $0x60] sm:$0xff] %v7570_v18  ;;  %v7571_v62 = vmax.f32 %v7539_v28, 0.0 }
 0x6d0   : > { %7605 = vst [vmem:[%s12503_s26 + $0x78] sm:$0xff] %v7573_v46 }
 0x6d1   : > { %7603 = vst [vmem:[%s12503_s26 + $0x68] sm:$0xff] %v7571_v62  ;;  %v9290_v40 = vpop.f32.mrb[12].mxu1 }
 0x6d2   : > { %v7544_v61 = vadd.f32 %v9290_v40, %v12492_v59  ;;  %v7424_v54 = vpop.f32.mrb[13].mxu1 }
 0x6d3   : > { %v7542_v25 = vadd.f32 %v12492_v59, %v7424_v54  ;;  %v9291_v35 = vpop.f32.mrb[14].mxu1 }
 0x6d4   : > { %v7576_v63 = vmax.f32 %v7544_v61, 0.0  ;;  %v7545_v29 = vadd.f32 %v9291_v35, %v12492_v59  ;;  %v7427_v33 = vpop.f32.mrb[15].mxu1 }
 0x6d5   : > { %v7574_v5 = vmax.f32 %v7542_v25, 0.0  ;;  %v7543_v60 = vadd.f32 %v12492_v59, %v7427_v33 }
 0x6d6   : > { %7608 = vst [vmem:[%s12503_s26 + $0x90] sm:$0xff] %v7576_v63  ;;  %v7577_v34 = vmax.f32 %v7545_v29, 0.0 }
 0x6d7   : > { %7606 = vst [vmem:[%s12503_s26 + $0x80] sm:$0xff] %v7574_v5  ;;  %v7575_v55 = vmax.f32 %v7543_v60, 0.0 }
 0x6d8   : > { %7609 = vst [vmem:[%s12503_s26 + $0x98] sm:$0xff] %v7577_v34 }
 0x6d9   : > { %7607 = vst [vmem:[%s12503_s26 + $0x88] sm:$0xff] %v7575_v55  ;;  %v9294_v27 = vpop.f32.mrb[16].mxu1 }
 0x6da   : > { %v7548_v38 = vadd.f32 %v9294_v27, %v12492_v59  ;;  %v7440_v32 = vpop.f32.mrb[17].mxu1 }
 0x6db   : > { %v7546_v44 = vadd.f32 %v12492_v59, %v7440_v32  ;;  %v9295_v21 = vpop.f32.mrb[18].mxu1 }
 0x6dc   : > { %v7580_v6 = vmax.f32 %v7548_v38, 0.0  ;;  %v7549_v2 = vadd.f32 %v9295_v21, %v12492_v59  ;;  %v7443_v30 = vpop.f32.mrb[19].mxu1 }
 0x6dd   : > { %v7578_v42 = vmax.f32 %v7546_v44, 0.0  ;;  %v7547_v12 = vadd.f32 %v12492_v59, %v7443_v30 }
 0x6de   : > { %7612 = vst [vmem:[%s12503_s26 + $0xb0] sm:$0xff] %v7580_v6  ;;  %v7581_v52 = vmax.f32 %v7549_v2, 0.0 }
 0x6df   : > { %7610 = vst [vmem:[%s12503_s26 + $0xa0] sm:$0xff] %v7578_v42  ;;  %v7579_v47 = vmax.f32 %v7547_v12, 0.0 }
 0x6e0   : > { %7613 = vst [vmem:[%s12503_s26 + $0xb8] sm:$0xff] %v7581_v52 }
 0x6e1   : > { %7611 = vst [vmem:[%s12503_s26 + $0xa8] sm:$0xff] %v7579_v47  ;;  %v9298_v41 = vpop.f32.mrb[20].mxu1 }
 0x6e2   : > { %v7552_v11 = vadd.f32 %v9298_v41, %v12492_v59  ;;  %v7456_v45 = vpop.f32.mrb[21].mxu1 }
 0x6e3   : > { %v7550_v58 = vadd.f32 %v12492_v59, %v7456_v45  ;;  %v9299_v39 = vpop.f32.mrb[22].mxu1 }
 0x6e4   : > { %v7584_v23 = vmax.f32 %v7552_v11, 0.0  ;;  %v7553_v1 = vadd.f32 %v9299_v39, %v12492_v59  ;;  %v7459_v0 = vpop.f32.mrb[23].mxu1 }
 0x6e5   : > { %v7582_v13 = vmax.f32 %v7550_v58, 0.0  ;;  %v7551_v7 = vadd.f32 %v12492_v59, %v7459_v0 }
 0x6e6   : > { %7616 = vst [vmem:[%s12503_s26 + $0xd0] sm:$0xff] %v7584_v23  ;;  %v7585_v53 = vmax.f32 %v7553_v1, 0.0 }
 0x6e7   : > { %7614 = vst [vmem:[%s12503_s26 + $0xc0] sm:$0xff] %v7582_v13  ;;  %v7583_v3 = vmax.f32 %v7551_v7, 0.0 }
 0x6e8   : > { %7617 = vst [vmem:[%s12503_s26 + $0xd8] sm:$0xff] %v7585_v53 }
 0x6e9   : > { %7615 = vst [vmem:[%s12503_s26 + $0xc8] sm:$0xff] %v7583_v3  ;;  %v9302_v20 = vpop.f32.mrb[24].mxu1 }
 0x6ea   : > { %v7556_v49 = vadd.f32 %v9302_v20, %v12492_v59  ;;  %v7472_v48 = vpop.f32.mrb[25].mxu1 }
 0x6eb   : > { %v7554_v51 = vadd.f32 %v12492_v59, %v7472_v48  ;;  %v9303_v16 = vpop.f32.mrb[26].mxu1 }
 0x6ec   : > { %v7588_v15 = vmax.f32 %v7556_v49, 0.0  ;;  %v7557_v57 = vadd.f32 %v9303_v16, %v12492_v59  ;;  %v7475_v26 = vpop.f32.mrb[27].mxu1 }
 0x6ed   : > { %v7586_v56 = vmax.f32 %v7554_v51, 0.0  ;;  %v7555_v4 = vadd.f32 %v12492_v59, %v7475_v26 }
 0x6ee   : > { %7620 = vst [vmem:[%s12503_s26 + $0xf0] sm:$0xff] %v7588_v15  ;;  %v7589_v19 = vmax.f32 %v7557_v57, 0.0 }
 0x6ef   : > { %7618 = vst [vmem:[%s12503_s26 + $0xe0] sm:$0xff] %v7586_v56  ;;  %v7587_v36 = vmax.f32 %v7555_v4, 0.0 }
 0x6f0   : > { %7621 = vst [vmem:[%s12503_s26 + $0xf8] sm:$0xff] %v7589_v19 }
 0x6f1   : > { %7619 = vst [vmem:[%s12503_s26 + $0xe8] sm:$0xff] %v7587_v36 }
 0x6f2   : > { %10198 = shalt.err (!%p10195_p13)
}
 0x6f3   : > { %s10199_s11 = scalar_lea.hbm %s12567_s17, 4096  ;;  %s10203_s28 = scalar_lea.hbm %s12621_s5, 8192 }
 0x6f4   : > { %p10200_p9 = scmp.ne.s32.totalorder %s12567_s17, %s10199_s11  ;;  %p10204_p6 = scmp.lt.u32.totalorder %s12567_s17, %s12621_s5 }
 0x6f5   : > { %p10205_p10 = scmp.lt.u32.totalorder %s10203_s28, %s10199_s11  ;;  %p10207_p4 = scmp.lt.u32.totalorder %s10199_s11, %s12567_s17 }
 0x6f6   : > { %p10201_p0 = pnand %p10200_p9, %p10474_p8 }
 0x6f7   : > { %p10206_p3 = por %p10205_p10, %p10204_p6 }
 0x6f8   : > { %p10202_p11 = pneg %p10201_p0 }
 0x6f9   : > { %p10208_p5 = por %p10207_p4, %p10206_p3 }
 0x6fb   : > { %p10209_p7 = pnand %p10208_p5, %p10202_p11 }
 0x6fd   : > { %10212 = shalt.err (!%p10209_p7)
}
 0x6fe   : > { %s10272_s14 = smov 128   ;;  %s10273_s6 = smov 8  }
 0x6ff   : > { %9859 = dma.vmem_to_hbm [thread:$0]  (%p10474_p8), %s12569_s15, 4096, %s12567_s17, %s7623_s22, %s10272_s14, %s10272_s14, %s10273_s6  }
 0x700 PF: > { %s7651_s16 = sand.u32 1, %s10247_s18   ;;  %p12751_p12 = scmp.ne.s32.totalorder %s12660_s25, 0 }
 0x701   : > { %p12752_p2 = scmp.ge.s32.totalorder %s10259_s21, 2  ;;  %s7652_s23 = scalar_lea.sflag [#allocation6], %s7651_s16 }
 0x703   : > { %p9879_p1 = pnand %p12752_p2, %p12751_p12 }
 0x705   : > { %10242 = dma.done.wait (!%p9879_p1), %s7652_s23, 4096  }
 0x706   : > { %10244 = vsyncadd (!%p9879_p1), %s7652_s23, 4294963200  ;;  %p20_p13 = scmp.ge.s32.totalorder %s10461_s12, 4   ;;  %s12753_s18 = smov %s10251_s19 }
 0x707   : > { %s12754_s19 = smov %s10255_s20  ;;  %s12755_s20 = smov %s10470_s8 }
 0x708   : > { %s12756_s21 = smov %s10461_s12  ;;  %22 = sbr.rel (!%p20_p13) target bundleno = 7 (0x7), region = 119 }
 0x70f   :  { %7657 = vsyncpa [#allocation5], 1 }
 0x710   :  { %7659 = vsyncpa [#allocation5 + $0x1], 1 }
 0x711   :  { %7660 = vsyncpa [#allocation8], 1 }
 0x712   :  { %7661 = vsyncpa [#allocation11], 1 }
 0x713   :  { %7662 = vsyncpa [#allocation6], 1 }
 0x714   :  { %7664 = vsyncpa [#allocation6 + $0x1], 1 }

</bundles_post_ra>
